<compile_context>
chip_gen: v7x
topology: tpu7x:2x2x1
jax: 0.10.0
libtpu: 0.0.40
codegen_flags: <defaults>
</compile_context>

<pallas_src>
import functools

import jax
import jax.numpy as jnp
from jax.experimental import pallas as pl
from jax.experimental.pallas import tpu as pltpu


def _spatial_attention_kernel(x_ref, t_ref, b_ref, o_ref, *, num_batch, num_chan):
    """x_ref: (B, C, H*W) f32 VMEM.  t_ref: (2*H*W, H*W) f32 VMEM Toeplitz.
    b_ref: (1,) f32 SMEM bias.  o_ref: (B, H*W) f32 VMEM output."""
    inv_c = 1.0 / num_chan
    rows = []
    for b in range(num_batch):                                # static (B = 2)
        xb = x_ref[b]                                         # (C, H*W), lane-dense
        cmax = jnp.max(xb, axis=0, keepdims=True)             # (1, H*W)
        cavg = jnp.sum(xb, axis=0, keepdims=True) * inv_c     # (1, H*W)
        rows.append(jnp.concatenate([cmax, cavg], axis=1))    # (1, 2*H*W), lane-aligned
    lhs = jnp.concatenate(rows, axis=0)                       # (B, 2*H*W)

    # Whole KxK "same" conv (both channels, both batches) as one MXU matmul.
    conv = jnp.dot(lhs, t_ref[...],
                   precision=jax.lax.Precision.HIGHEST,
                   preferred_element_type=jnp.float32)        # (B, H*W)
    o_ref[...] = jax.nn.sigmoid(conv + b_ref[0])              # lane-dense store


def _conv_toeplitz(wsa, height, width):
    """Banded Toeplitz matrix T so that, with lhs[b] = [max_map(b).ravel(),
    avg_map(b).ravel()], the zero-padded 'same' cross-correlation with OIHW
    weight wsa (1, 2, K, K) is  out[b, h*W + w] = (lhs @ T)[b, h*W + w].
    Contraction index kappa = c*H*W + h_in*W + w_in; row/col padding folded in."""
    k = wsa.shape[-1]
    p = k // 2
    w = wsa.reshape(2, k, k).astype(jnp.float32)
    h_in = jnp.arange(height)[:, None, None, None]
    w_in = jnp.arange(width)[None, :, None, None]
    h_out = jnp.arange(height)[None, None, :, None]
    w_out = jnp.arange(width)[None, None, None, :]
    kh = h_in - h_out + p
    kw = w_in - w_out + p
    valid = (kh >= 0) & (kh < k) & (kw >= 0) & (kw < k)        # (H, W, H, W)
    taps = w[:, jnp.clip(kh, 0, k - 1), jnp.clip(kw, 0, k - 1)]  # (2, H, W, H, W)
    t = jnp.where(valid[None], taps, 0.0)
    return t.reshape(2 * height * width, height * width)


@jax.jit
def spatial_attention_forward(x, wsa, bsa):
    """x: (B, C, H, W) NCHW.  wsa: (1, 2, K, K) OIHW conv weight.  bsa: (1,) bias."""
    bsz, chan, height, width = x.shape
    hw = height * width
    x3 = x.reshape(bsz, chan, hw).astype(jnp.float32)          # free: NCHW contiguous
    # Depends only on the weights; in a real module this would be built once at init.
    t = _conv_toeplitz(wsa, height, width)                     # (2*HW, HW) f32

    kernel = functools.partial(_spatial_attention_kernel,
                               num_batch=bsz, num_chan=chan)
    out = pl.pallas_call(
        kernel,
        out_shape=jax.ShapeDtypeStruct((bsz, hw), jnp.float32),
        in_specs=[
            pl.BlockSpec(memory_space=pltpu.MemorySpace.VMEM),   # x  (B, C, H*W)
            pl.BlockSpec(memory_space=pltpu.MemorySpace.VMEM),   # Toeplitz (2*HW, HW)
            pl.BlockSpec(memory_space=pltpu.MemorySpace.SMEM),   # bias (1,)
        ],
        out_specs=pl.BlockSpec(memory_space=pltpu.MemorySpace.VMEM),
    )(x3, t, bsa.astype(jnp.float32))
    return out.reshape(bsz, 1, height, width)                  # (B, 1, H, W)


def spatial_attention_reference(x, wsa, bsa):
    """Pure-JAX reference matching the PyTorch forward."""
    p = wsa.shape[-1] // 2
    cmax = jnp.max(x, axis=1, keepdims=True)
    cavg = jnp.mean(x, axis=1, keepdims=True)
    maps = jnp.concatenate([cmax, cavg], axis=1)               # (B, 2, H, W)
    conv = jax.lax.conv_general_dilated(
        maps, wsa, window_strides=(1, 1), padding=[(p, p), (p, p)],
        dimension_numbers=("NCHW", "OIHW", "NCHW"),
        precision=jax.lax.Precision.HIGHEST)
    return jax.nn.sigmoid(conv + bsa.reshape(1, 1, 1, 1))      # (B, 1, H, W)


if __name__ == "__main__":
    B, C, H, W, K = 2, 64, 16, 16, 7                           # K=7: module default
    key = jax.random.PRNGKey(0)
    k_x, k_w, k_b = jax.random.split(key, 3)
    x = jax.random.normal(k_x, (B, C, H, W), jnp.float32)
    # Conv2d(2, 1, K, padding=K//2).weight / .bias
    wsa = jax.random.normal(k_w, (1, 2, K, K), jnp.float32) * 0.1
    bsa = jax.random.normal(k_b, (1,), jnp.float32) * 0.1

    y = spatial_attention_forward(x, wsa, bsa)
    y = jax.block_until_ready(y)

    y_ref = spatial_attention_reference(x, wsa, bsa)
    assert y.shape == (B, 1, H, W)
    err = float(jnp.max(jnp.abs(y - y_ref)))
    assert jnp.allclose(y, y_ref, rtol=1e-4, atol=1e-4), err
    print("KERNEL_OK")
</pallas_src>

<mosaic_0001>
module attributes {stable_mosaic.version = 11 : i64} {
  func.func @_spatial_attention_kernel(%arg0: memref<2x64x256xf32, #tpu.memory_space<vmem>>, %arg1: memref<512x256xf32, #tpu.memory_space<vmem>>, %arg2: memref<1xf32, #tpu.memory_space<smem>>, %arg3: memref<2x256xf32, #tpu.memory_space<vmem>>) attributes {dimension_semantics = [], scalar_prefetch = 0 : i64, scratch_operands = 0 : i64, tpu.core_type = #tpu.core_type<tc>} {
    %c0 = arith.constant 0 : index
    %c0_0 = arith.constant 0 : index
    %c0_1 = arith.constant 0 : index
    %0 = vector.load %arg0[%c0, %c0_0, %c0_1] : memref<2x64x256xf32, #tpu.memory_space<vmem>>, vector<1x64x256xf32>
    %1 = vector.shape_cast %0 : vector<1x64x256xf32> to vector<64x256xf32>
    %cst = arith.constant dense<0xFF800000> : vector<256xf32>
    %2 = vector.multi_reduction <maximumf>, %1, %cst [0] : vector<64x256xf32> to vector<256xf32>
    %3 = vector.shape_cast %2 : vector<256xf32> to vector<1x256xf32>
    %cst_2 = arith.constant dense<0.000000e+00> : vector<256xf32>
    %4 = vector.multi_reduction <add>, %1, %cst_2 [0] : vector<64x256xf32> to vector<256xf32>
    %5 = vector.shape_cast %4 : vector<256xf32> to vector<1x256xf32>
    %cst_3 = arith.constant 1.562500e-02 : f32
    %6 = vector.broadcast %cst_3 : f32 to vector<1x256xf32>
    %7 = arith.mulf %5, %6 : vector<1x256xf32>
    %8 = tpu.concatenate %3, %7 in 1 : vector<1x256xf32>, vector<1x256xf32> -> vector<1x512xf32>
    %c1 = arith.constant 1 : index
    %c0_4 = arith.constant 0 : index
    %c0_5 = arith.constant 0 : index
    %9 = vector.load %arg0[%c1, %c0_4, %c0_5] : memref<2x64x256xf32, #tpu.memory_space<vmem>>, vector<1x64x256xf32>
    %10 = vector.shape_cast %9 : vector<1x64x256xf32> to vector<64x256xf32>
    %cst_6 = arith.constant dense<0xFF800000> : vector<256xf32>
    %11 = vector.multi_reduction <maximumf>, %10, %cst_6 [0] : vector<64x256xf32> to vector<256xf32>
    %12 = vector.shape_cast %11 : vector<256xf32> to vector<1x256xf32>
    %cst_7 = arith.constant dense<0.000000e+00> : vector<256xf32>
    %13 = vector.multi_reduction <add>, %10, %cst_7 [0] : vector<64x256xf32> to vector<256xf32>
    %14 = vector.shape_cast %13 : vector<256xf32> to vector<1x256xf32>
    %cst_8 = arith.constant 1.562500e-02 : f32
    %15 = vector.broadcast %cst_8 : f32 to vector<1x256xf32>
    %16 = arith.mulf %14, %15 : vector<1x256xf32>
    %17 = tpu.concatenate %12, %16 in 1 : vector<1x256xf32>, vector<1x256xf32> -> vector<1x512xf32>
    %18 = tpu.concatenate %8, %17 in 0 : vector<1x512xf32>, vector<1x512xf32> -> vector<2x512xf32>
    %c0_9 = arith.constant 0 : index
    %c0_10 = arith.constant 0 : index
    %19 = vector.load %arg1[%c0_9, %c0_10] : memref<512x256xf32, #tpu.memory_space<vmem>>, vector<512x256xf32>
    %cst_11 = arith.constant dense<0.000000e+00> : vector<2x256xf32>
    %20 = tpu.matmul %18, %19, %cst_11 {dimension_numbers = #tpu.dot_dimension_numbers<[1], [0], [0], [1], [0, 0, 1, 1], [], []>, precision = #tpu.contract_precision<fp32>} : vector<2x512xf32>, vector<512x256xf32>, vector<2x256xf32> -> vector<2x256xf32>
    %c0_12 = arith.constant 0 : index
    %21 = memref.load %arg2[%c0_12] : memref<1xf32, #tpu.memory_space<smem>>
    %22 = vector.broadcast %21 : f32 to vector<2x256xf32>
    %23 = arith.addf %20, %22 : vector<2x256xf32>
    %24 = arith.negf %23 : vector<2x256xf32>
    %25 = math.exp %24 : vector<2x256xf32>
    %cst_13 = arith.constant 1.000000e+00 : f32
    %26 = vector.broadcast %cst_13 : f32 to vector<2x256xf32>
    %27 = arith.addf %26, %25 : vector<2x256xf32>
    %28 = arith.divf %26, %27 : vector<2x256xf32>
    %c0_14 = arith.constant 0 : index
    %c0_15 = arith.constant 0 : index
    %29 = vector.load %arg3[%c0_14, %c0_15] : memref<2x256xf32, #tpu.memory_space<vmem>>, vector<2x256xf32>
    tpu.vector_store %arg3[%c0_14, %c0_15], %28 {strides = array<i32>} : memref<2x256xf32, #tpu.memory_space<vmem>>, vector<2x256xf32>,
    return
  }
}

</mosaic_0001>

<bundles_post_ra>
// kernel: spatial_attention_forward.1
= control target key start
LH: loop header
LB: loop body
LE: loop exit
PB: predicated region body
PF: predicated region fallthrough
CT: control target
= control target key end

     0   :  { %vm168_vm0 = vcmask 1040384   ;;  %s5878_s1 = inlined_call_operand.vmem [shape: f32[512,256], index: 1, kind: input, shape index: {}]   ;;  %s5879_s0 = inlined_call_operand.vmem [shape: f32[2,64,256], index: 0, kind: input, shape index: {}]   ;;  %s5880_s2 = inlined_call_operand.<no memory space> [shape: f32[1], index: 2, kind: input, shape index: {}]   ;;  %s5881_s3 = inlined_call_operand.vmem [shape: f32[2,256], index: 3, kind: output, shape index: {}]  }
   0x1   :  { %v174_v0 = vld [vmem:[%s5878_s1 + $0x8] sm:$0xff]  ;;  %v176_v1 = vld [vmem:[%s5878_s1 + $0x18] sm:$0xff]  ;;  %v173_v7 = vld [vmem:[%s5878_s1] sm:$0xff] }
   0x2   :  { %v238_v2 = vld [vmem:[%s5878_s1 + $0x208] sm:$0xff]  ;;  %v303_v3 = vand.u32 4294901760, %v174_v0  ;;  %v307_v4 = vand.u32 4294901760, %v176_v1  ;;  %v240_v5 = vld [vmem:[%s5878_s1 + $0x218] sm:$0xff]  ;;  %v175_v8 = vld [vmem:[%s5878_s1 + $0x10] sm:$0xff]  ;;  %v305_v10 = vand.u32 4294901760, %v173_v7 }
   0x3   :  { %v1587_v6 = vand.u32 4294901760, %v238_v2  ;;  %v1591_v9 = vand.u32 4294901760, %v240_v5  ;;  %v309_v11 = vand.u32 4294901760, %v175_v8  ;;  %v237_v12 = vld [vmem:[%s5878_s1 + $0x200] sm:$0xff]  ;;  %v239_v13 = vld [vmem:[%s5878_s1 + $0x210] sm:$0xff]  ;;  %v178_v14 = vld [vmem:[%s5878_s1 + $0x28] sm:$0xff] }
   0x4   :  { %v3765_v15 = vpack.c.bf16 %v307_v4, %v303_v3  ;;  %v3767_v16 = vsub.f32 %v174_v0, %v303_v3  ;;  %v3769_v17 = vsub.f32 %v176_v1, %v307_v4  ;;  %v180_v19 = vld [vmem:[%s5878_s1 + $0x38] sm:$0xff]  ;;  %v242_v20 = vld [vmem:[%s5878_s1 + $0x228] sm:$0xff]  ;;  %v3788_v25 = vsub.f32 %v173_v7, %v305_v10  ;;  %v177_v26 = vld [vmem:[%s5878_s1 + $0x20] sm:$0xff] }
   0x5   :  { %v3771_v18 = vsub.f32 %v238_v2, %v1587_v6  ;;  %v244_v21 = vld [vmem:[%s5878_s1 + $0x238] sm:$0xff]  ;;  %v3782_v22 = vpack.c.bf16 %v1591_v9, %v1587_v6  ;;  %v3784_v23 = vsub.f32 %v240_v5, %v1591_v9  ;;  %v3786_v24 = vpack.c.bf16 %v309_v11, %v305_v10  ;;  %v179_v31 = vld [vmem:[%s5878_s1 + $0x30] sm:$0xff]  ;;  %v241_v36 = vld [vmem:[%s5878_s1 + $0x220] sm:$0xff] }
   0x6   :  { %6389 = vst [vmem:[#allocation3_spill] sm:$0xff] %v3765_v15  ;;  %6390 = vst [vmem:[#allocation4_spill] sm:$0xff] %v3767_v16  ;;  %2919 = vmatprep.subr.bf16.mxu1 %v3765_v15  ;;  %v3794_v27 = vsub.f32 %v175_v8, %v309_v11  ;;  %v1589_v28 = vand.u32 4294901760, %v237_v12  ;;  %v1593_v29 = vand.u32 4294901760, %v239_v13  ;;  %v311_v30 = vand.u32 4294901760, %v178_v14  ;;  %v243_v37 = vld [vmem:[%s5878_s1 + $0x230] sm:$0xff] }
   0x7   :  { %6391 = vst [vmem:[#allocation5_spill] sm:$0xff] %v3769_v17  ;;  %6392 = vst [vmem:[#allocation6_spill] sm:$0xff] %v3771_v18  ;;  %3303 = vmatprep.subr.bf16.mxu0 %v3782_v22  ;;  %2921 = vmatpush1.bf16.msra.mxu1 %v3786_v24  ;;  %v315_v32 = vand.u32 4294901760, %v180_v19  ;;  %v1595_v33 = vand.u32 4294901760, %v242_v20  ;;  %v1599_v34 = vand.u32 4294901760, %v244_v21  ;;  %v313_v35 = vand.u32 4294901760, %v177_v26 }
   0x8   :  { %6393 = vst [vmem:[#allocation7_spill] sm:$0xff] %v3782_v22  ;;  %6394 = vst [vmem:[#allocation8_spill] sm:$0xff] %v3784_v23  ;;  %v3807_v38 = vpack.c.bf16 %v1593_v29, %v1589_v28  ;;  %v3809_v39 = vsub.f32 %v237_v12, %v1589_v28  ;;  %v3811_v40 = vsub.f32 %v239_v13, %v1593_v29  ;;  %v182_v42 = vld [vmem:[%s5878_s1 + $0x48] sm:$0xff]  ;;  %v184_v43 = vld [vmem:[%s5878_s1 + $0x58] sm:$0xff]  ;;  %v317_v51 = vand.u32 4294901760, %v179_v31 }
   0x9   :  { %6395 = vst [vmem:[#allocation9_spill] sm:$0xff] %v3786_v24  ;;  %6396 = vst [vmem:[#allocation10_spill] sm:$0xff] %v3788_v25  ;;  %v3813_v41 = vsub.f32 %v178_v14, %v311_v30  ;;  %v246_v44 = vld [vmem:[%s5878_s1 + $0x248] sm:$0xff]  ;;  %v3824_v45 = vpack.c.bf16 %v315_v32, %v311_v30  ;;  %v3826_v46 = vsub.f32 %v180_v19, %v315_v32  ;;  %v248_v49 = vld [vmem:[%s5878_s1 + $0x258] sm:$0xff]  ;;  %v1597_v53 = vand.u32 4294901760, %v241_v36 }
   0xa   :  { %6397 = vst [vmem:[#allocation11_spill] sm:$0xff] %v3794_v27  ;;  %6398 = vst [vmem:[#allocation12_spill] sm:$0xff] %v3807_v38  ;;  %v3828_v47 = vpack.c.bf16 %v1599_v34, %v1595_v33  ;;  %v3830_v48 = vsub.f32 %v242_v20, %v1595_v33  ;;  %3305 = vmatpush1.bf16.msra.mxu0 %v3807_v38  ;;  %v3836_v50 = vsub.f32 %v244_v21, %v1599_v34  ;;  %v181_v58 = vld [vmem:[%s5878_s1 + $0x40] sm:$0xff]  ;;  %v183_v59 = vld [vmem:[%s5878_s1 + $0x50] sm:$0xff] }
   0xb   :  { %6399 = vst [vmem:[#allocation13_spill] sm:$0xff] %v3809_v39  ;;  %6400 = vst [vmem:[#allocation14_spill] sm:$0xff] %v3811_v40  ;;  %v3838_v52 = vsub.f32 %v177_v26, %v313_v35  ;;  %2923 = vmatprep.subr.bf16.mxu1 %v3824_v45  ;;  %v1601_v54 = vand.u32 4294901760, %v243_v37  ;;  %v319_v55 = vand.u32 4294901760, %v182_v42  ;;  %v323_v56 = vand.u32 4294901760, %v184_v43  ;;  %v245_v0 = vld [vmem:[%s5878_s1 + $0x240] sm:$0xff] }
   0xc   :  { %6401 = vst [vmem:[#allocation15_spill] sm:$0xff] %v3813_v41  ;;  %6402 = vst [vmem:[#allocation16_spill] sm:$0xff] %v3824_v45  ;;  %3307 = vmatprep.subr.bf16.mxu0 %v3828_v47  ;;  %v1603_v57 = vand.u32 4294901760, %v246_v44  ;;  %v3848_v60 = vpack.c.bf16 %v317_v51, %v313_v35  ;;  %v3850_v61 = vsub.f32 %v179_v31, %v317_v51  ;;  %v1607_v63 = vand.u32 4294901760, %v248_v49  ;;  %v247_v1 = vld [vmem:[%s5878_s1 + $0x250] sm:$0xff]  ;;  %v186_v2 = vld [vmem:[%s5878_s1 + $0x68] sm:$0xff] }
   0xd   :  { %6403 = vst [vmem:[#allocation17_spill] sm:$0xff] %v3826_v46  ;;  %6404 = vst [vmem:[#allocation18_spill] sm:$0xff] %v3828_v47  ;;  %v3852_v62 = vsub.f32 %v241_v36, %v1597_v53  ;;  %v3863_v3 = vpack.c.bf16 %v1601_v54, %v1597_v53  ;;  %v3865_v4 = vsub.f32 %v243_v37, %v1601_v54  ;;  %v188_v7 = vld [vmem:[%s5878_s1 + $0x78] sm:$0xff]  ;;  %v250_v8 = vld [vmem:[%s5878_s1 + $0x268] sm:$0xff]  ;;  %v321_v14 = vand.u32 4294901760, %v181_v58 }
   0xe   :  { %6405 = vst [vmem:[#allocation19_spill] sm:$0xff] %v3830_v48  ;;  %6406 = vst [vmem:[#allocation20_spill] sm:$0xff] %v3836_v50  ;;  %v3867_v5 = vpack.c.bf16 %v323_v56, %v319_v55  ;;  %v3869_v6 = vsub.f32 %v182_v42, %v319_v55  ;;  %v252_v9 = vld [vmem:[%s5878_s1 + $0x278] sm:$0xff]  ;;  %2925 = vmatpush1.bf16.msra.mxu1 %v3848_v60  ;;  %v3881_v10 = vsub.f32 %v184_v43, %v323_v56  ;;  %v185_v31 = vld [vmem:[%s5878_s1 + $0x60] sm:$0xff] }
   0xf   :  { %6407 = vst [vmem:[#allocation21_spill] sm:$0xff] %v3838_v52  ;;  %6408 = vst [vmem:[#allocation22_spill] sm:$0xff] %v3848_v60  ;;  %v3883_v11 = vpack.c.bf16 %v1607_v63, %v1603_v57  ;;  %v3885_v12 = vsub.f32 %v246_v44, %v1603_v57  ;;  %v3887_v13 = vsub.f32 %v248_v49, %v1607_v63  ;;  %3309 = vmatpush1.bf16.msra.mxu0 %v3863_v3  ;;  %v187_v36 = vld [vmem:[%s5878_s1 + $0x70] sm:$0xff]  ;;  %v249_v37 = vld [vmem:[%s5878_s1 + $0x260] sm:$0xff] }
  0x10   :  { %6409 = vst [vmem:[#allocation23_spill] sm:$0xff] %v3850_v61  ;;  %6410 = vst [vmem:[#allocation24_spill] sm:$0xff] %v3852_v62  ;;  %2927 = vmatprep.subr.bf16.mxu1 %v3867_v5  ;;  %v325_v19 = vand.u32 4294901760, %v183_v59  ;;  %v1605_v20 = vand.u32 4294901760, %v245_v0  ;;  %v1609_v21 = vand.u32 4294901760, %v247_v1  ;;  %v327_v26 = vand.u32 4294901760, %v186_v2 }
  0x11   :  { %6411 = vst [vmem:[#allocation25_spill] sm:$0xff] %v3863_v3  ;;  %6412 = vst [vmem:[#allocation26_spill] sm:$0xff] %v3865_v4  ;;  %3311 = vmatprep.subr.bf16.mxu0 %v3883_v11  ;;  %v331_v28 = vand.u32 4294901760, %v188_v7  ;;  %v1611_v29 = vand.u32 4294901760, %v250_v8  ;;  %v1615_v30 = vand.u32 4294901760, %v252_v9  ;;  %v3897_v33 = vsub.f32 %v181_v58, %v321_v14  ;;  %v251_v42 = vld [vmem:[%s5878_s1 + $0x270] sm:$0xff] }
  0x12   :  { %6413 = vst [vmem:[#allocation27_spill] sm:$0xff] %v3867_v5  ;;  %6414 = vst [vmem:[#allocation28_spill] sm:$0xff] %v3869_v6  ;;  %v3895_v32 = vpack.c.bf16 %v325_v19, %v321_v14  ;;  %v3899_v34 = vsub.f32 %v183_v59, %v325_v19  ;;  %v3901_v35 = vpack.c.bf16 %v1609_v21, %v1605_v20  ;;  %v190_v53 = vld [vmem:[%s5878_s1 + $0x88] sm:$0xff]  ;;  %v192_v54 = vld [vmem:[%s5878_s1 + $0x98] sm:$0xff]  ;;  %v329_v59 = vand.u32 4294901760, %v185_v31 }
  0x13   :  { %6415 = vst [vmem:[#allocation29_spill] sm:$0xff] %v3881_v10  ;;  %6416 = vst [vmem:[#allocation30_spill] sm:$0xff] %v3883_v11  ;;  %v3912_v43 = vsub.f32 %v245_v0, %v1605_v20  ;;  %v3914_v44 = vsub.f32 %v247_v1, %v1609_v21  ;;  %v3916_v49 = vpack.c.bf16 %v331_v28, %v327_v26  ;;  %v254_v55 = vld [vmem:[%s5878_s1 + $0x288] sm:$0xff]  ;;  %v333_v0 = vand.u32 4294901760, %v187_v36  ;;  %v256_v14 = vld [vmem:[%s5878_s1 + $0x298] sm:$0xff] }
  0x14   :  { %6417 = vst [vmem:[#allocation31_spill] sm:$0xff] %v3885_v12  ;;  %6418 = vst [vmem:[#allocation32_spill] sm:$0xff] %v3887_v13  ;;  %v3918_v51 = vsub.f32 %v186_v2, %v327_v26  ;;  %2929 = vmatpush1.bf16.msra.mxu1 %v3895_v32  ;;  %3313 = vmatpush1.bf16.msra.mxu0 %v3901_v35  ;;  %v3931_v56 = vsub.f32 %v188_v7, %v331_v28  ;;  %v1613_v1 = vand.u32 4294901760, %v249_v37  ;;  %v189_v21 = vld [vmem:[%s5878_s1 + $0x80] sm:$0xff]  ;;  %v198_v38 = vld [vmem:[%s5878_s1 + $0xc8] sm:$0xff] }
  0x15   :  { %6419 = vst [vmem:[#allocation33_spill] sm:$0xff] %v3895_v32  ;;  %6420 = vst [vmem:[#allocation34_spill] sm:$0xff] %v3897_v33  ;;  %v3933_v57 = vpack.c.bf16 %v1615_v30, %v1611_v29  ;;  %v3935_v58 = vsub.f32 %v250_v8, %v1611_v29  ;;  %2931 = vmatprep.subr.bf16.mxu1 %v3916_v49  ;;  %v3938_v63 = vsub.f32 %v252_v9, %v1615_v30  ;;  %v191_v9 = vld [vmem:[%s5878_s1 + $0x90] sm:$0xff]  ;;  %v253_v26 = vld [vmem:[%s5878_s1 + $0x280] sm:$0xff] }
  0x16   :  { %6421 = vst [vmem:[#allocation35_spill] sm:$0xff] %v3899_v34  ;;  %6422 = vst [vmem:[#allocation36_spill] sm:$0xff] %v3901_v35  ;;  %v1617_v2 = vand.u32 4294901760, %v251_v42  ;;  %v3944_v7 = vsub.f32 %v185_v31, %v329_v59  ;;  %v335_v19 = vand.u32 4294901760, %v190_v53  ;;  %v339_v20 = vand.u32 4294901760, %v192_v54  ;;  %v194_v35 = vld [vmem:[%s5878_s1 + $0xa8] sm:$0xff] }
  0x17   :  { %6423 = vst [vmem:[#allocation37_spill] sm:$0xff] %v3912_v43  ;;  %6424 = vst [vmem:[#allocation38_spill] sm:$0xff] %v3914_v44  ;;  %3315 = vmatprep.subr.bf16.mxu0 %v3933_v57  ;;  %v1619_v8 = vand.u32 4294901760, %v254_v55  ;;  %v3955_v28 = vpack.c.bf16 %v333_v0, %v329_v59  ;;  %v3957_v29 = vsub.f32 %v187_v36, %v333_v0  ;;  %v337_v11 = vand.u32 4294901760, %v189_v21  ;;  %v257_v47 = vld [vmem:[%s5878_s1 + $0x2a0] sm:$0xff]  ;;  %v200_v45 = vld [vmem:[%s5878_s1 + $0xd8] sm:$0xff] }
  0x18   :  { %6425 = vst [vmem:[#allocation39_spill] sm:$0xff] %v3916_v49  ;;  %6426 = vst [vmem:[#allocation40_spill] sm:$0xff] %v3918_v51  ;;  %v3959_v30 = vpack.c.bf16 %v1617_v2, %v1613_v1  ;;  %v3961_v31 = vsub.f32 %v249_v37, %v1613_v1  ;;  %v196_v49 = vld [vmem:[%s5878_s1 + $0xb8] sm:$0xff]  ;;  %v3972_v59 = vsub.f32 %v251_v42, %v1617_v2  ;;  %v1623_v1 = vand.u32 4294901760, %v256_v14 }
  0x19   :  { %6427 = vst [vmem:[#allocation41_spill] sm:$0xff] %v3931_v56  ;;  %6428 = vst [vmem:[#allocation42_spill] sm:$0xff] %v3933_v57  ;;  %v255_v57 = vld [vmem:[%s5878_s1 + $0x290] sm:$0xff]  ;;  %v3974_v36 = vpack.c.bf16 %v339_v20, %v335_v19  ;;  %v3976_v0 = vsub.f32 %v190_v53, %v335_v19  ;;  %v3978_v37 = vsub.f32 %v192_v54, %v339_v20  ;;  %2933 = vmatpush1.bf16.msra.mxu1 %v3955_v28  ;;  %v258_v53 = vld [vmem:[%s5878_s1 + $0x2a8] sm:$0xff] }
  0x1a   :  { %6429 = vst [vmem:[#allocation43_spill] sm:$0xff] %v3935_v58  ;;  %6430 = vst [vmem:[#allocation44_spill] sm:$0xff] %v3938_v63  ;;  %3317 = vmatpush1.bf16.msra.mxu0 %v3959_v30  ;;  %v3982_v32 = vsub.f32 %v254_v55, %v1619_v8  ;;  %v341_v3 = vand.u32 4294901760, %v191_v9  ;;  %v1621_v5 = vand.u32 4294901760, %v253_v26  ;;  %v1625_v42 = vand.u32 4294901760, %v255_v57  ;;  %v260_v54 = vld [vmem:[%s5878_s1 + $0x2b8] sm:$0xff] }
  0x1b   :  { %6431 = vst [vmem:[#allocation45_spill] sm:$0xff] %v3944_v7  ;;  %6432 = vst [vmem:[#allocation46_spill] sm:$0xff] %v3955_v28  ;;  %2935 = vmatprep.subr.bf16.mxu1 %v3974_v36  ;;  %v343_v2 = vand.u32 4294901760, %v194_v35  ;;  %v347_v60 = vand.u32 4294901760, %v196_v49  ;;  %v3991_v19 = vpack.c.bf16 %v1623_v1, %v1619_v8  ;;  %v3993_v55 = vsub.f32 %v256_v14, %v1623_v1  ;;  %v195_v28 = vld [vmem:[%s5878_s1 + $0xb0] sm:$0xff] }
  0x1c   :  { %6433 = vst [vmem:[#allocation47_spill] sm:$0xff] %v3957_v29  ;;  %6434 = vst [vmem:[#allocation48_spill] sm:$0xff] %v3959_v30  ;;  %v3995_v20 = vpack.c.bf16 %v341_v3, %v337_v11  ;;  %v3997_v30 = vsub.f32 %v189_v21, %v337_v11  ;;  %v4008_v8 = vsub.f32 %v191_v9, %v341_v3  ;;  %v259_v21 = vld [vmem:[%s5878_s1 + $0x2b0] sm:$0xff]  ;;  %v1627_v9 = vand.u32 4294901760, %v258_v53 }
  0x1d   :  { %6435 = vst [vmem:[#allocation49_spill] sm:$0xff] %v3961_v31  ;;  %6436 = vst [vmem:[#allocation50_spill] sm:$0xff] %v3972_v59  ;;  %v4010_v14 = vpack.c.bf16 %v1625_v42, %v1621_v5  ;;  %v4012_v1 = vsub.f32 %v253_v26, %v1621_v5  ;;  %v4014_v11 = vsub.f32 %v255_v57, %v1625_v42  ;;  %3319 = vmatprep.subr.bf16.mxu0 %v3991_v19 }
  0x1e   :  { %6437 = vst [vmem:[#allocation51_spill] sm:$0xff] %v3974_v36  ;;  %6438 = vst [vmem:[#allocation52_spill] sm:$0xff] %v3976_v0  ;;  %v193_v36 = vld [vmem:[%s5878_s1 + $0xa0] sm:$0xff]  ;;  %2937 = vmatpush1.bf16.msra.mxu1 %v3995_v20  ;;  %v4027_v3 = vpack.c.bf16 %v347_v60, %v343_v2  ;;  %v4029_v5 = vsub.f32 %v194_v35, %v343_v2  ;;  %v4031_v57 = vsub.f32 %v196_v49, %v347_v60  ;;  %v262_v35 = vld [vmem:[%s5878_s1 + $0x2c8] sm:$0xff] }
  0x1f   :  { %6439 = vst [vmem:[#allocation53_spill] sm:$0xff] %v3978_v37  ;;  %6440 = vst [vmem:[#allocation54_spill] sm:$0xff] %v3982_v32  ;;  %3321 = vmatpush1.bf16.msra.mxu0 %v4010_v14  ;;  %v1631_v26 = vand.u32 4294901760, %v260_v54  ;;  %v345_v42 = vand.u32 4294901760, %v193_v36  ;;  %v349_v24 = vand.u32 4294901760, %v195_v28  ;;  %v1629_v22 = vand.u32 4294901760, %v257_v47 }
  0x20   :  { %6441 = vst [vmem:[#allocation55_spill] sm:$0xff] %v3991_v19  ;;  %6442 = vst [vmem:[#allocation56_spill] sm:$0xff] %v3993_v55  ;;  %2939 = vmatprep.subr.bf16.mxu1 %v4027_v3  ;;  %v4035_v15 = vsub.f32 %v258_v53, %v1627_v9  ;;  %v1633_v19 = vand.u32 4294901760, %v259_v21  ;;  %v264_v60 = vld [vmem:[%s5878_s1 + $0x2d8] sm:$0xff]  ;;  %v197_v53 = vld [vmem:[%s5878_s1 + $0xc0] sm:$0xff]  ;;  %v6147_v0 = vand.u32 4294901760, %v3788_v25 }
  0x21   :  { %6443 = vst [vmem:[#allocation57_spill] sm:$0xff] %v3995_v20  ;;  %6444 = vst [vmem:[#allocation58_spill] sm:$0xff] %v3997_v30  ;;  %v355_v20 = vand.u32 4294901760, %v200_v45  ;;  %v4043_v49 = vpack.c.bf16 %v1631_v26, %v1627_v9  ;;  %v4045_v2 = vsub.f32 %v260_v54, %v1631_v26  ;;  %v4060_v9 = vsub.f32 %v195_v28, %v349_v24 }
  0x22   :  { %6445 = vst [vmem:[#allocation59_spill] sm:$0xff] %v4008_v8  ;;  %6446 = vst [vmem:[#allocation60_spill] sm:$0xff] %v4010_v14  ;;  %v4047_v14 = vpack.c.bf16 %v349_v24, %v345_v42  ;;  %v4062_v54 = vpack.c.bf16 %v1633_v19, %v1629_v22  ;;  %v4064_v26 = vsub.f32 %v257_v47, %v1629_v22  ;;  %v1635_v28 = vand.u32 4294901760, %v262_v35 }
  0x23   :  { %6447 = vst [vmem:[#allocation61_spill] sm:$0xff] %v4012_v1  ;;  %6448 = vst [vmem:[#allocation62_spill] sm:$0xff] %v4014_v11  ;;  %v351_v11 = vand.u32 4294901760, %v198_v38  ;;  %3323 = vmatprep.subr.bf16.mxu0 %v4043_v49  ;;  %v4083_v47 = vsub.f32 %v200_v45, %v355_v20  ;;  %v268_v45 = vld [vmem:[%s5878_s1 + $0x2f8] sm:$0xff]  ;;  %v2912_v1 = vld [vmem:[%s5879_s0 + $0xe8] sm:$0xff]  ;;  %v6106_v30 = vand.u32 4294901760, %v3771_v18 }
  0x24   :  { %6449 = vst [vmem:[#allocation63_spill] sm:$0xff] %v4027_v3  ;;  %6450 = vst [vmem:[#allocation64_spill] sm:$0xff] %v4029_v5  ;;  %v4049_v3 = vsub.f32 %v193_v36, %v345_v42  ;;  %v4066_v36 = vsub.f32 %v259_v21, %v1633_v19  ;;  %v263_v42 = vld [vmem:[%s5878_s1 + $0x2d0] sm:$0xff]  ;;  %2941 = vmatpush1.bf16.msra.mxu1 %v4047_v14  ;;  %3325 = vmatpush1.bf16.msra.mxu0 %v4062_v54  ;;  %v1639_v19 = vand.u32 4294901760, %v264_v60 }
  0x25   :  { %6451 = vst [vmem:[#allocation65_spill] sm:$0xff] %v4031_v57  ;;  %6452 = vst [vmem:[#allocation66_spill] sm:$0xff] %v4035_v15  ;;  %v199_v15 = vld [vmem:[%s5878_s1 + $0xd0] sm:$0xff]  ;;  %v261_v57 = vld [vmem:[%s5878_s1 + $0x2c0] sm:$0xff]  ;;  %v4079_v22 = vpack.c.bf16 %v355_v20, %v351_v11  ;;  %v4081_v24 = vsub.f32 %v198_v38, %v351_v11  ;;  %v353_v21 = vand.u32 4294901760, %v197_v53 }
  0x26   :  { %6453 = vst [vmem:[#allocation67_spill] sm:$0xff] %v4043_v49  ;;  %6454 = vst [vmem:[#allocation68_spill] sm:$0xff] %v4045_v2  ;;  %v204_v2 = vld [vmem:[%s5878_s1 + $0xf8] sm:$0xff]  ;;  %v1641_v49 = vand.u32 4294901760, %v263_v42  ;;  %v266_v38 = vld [vmem:[%s5878_s1 + $0x2e8] sm:$0xff]  ;;  %v4095_v20 = vpack.c.bf16 %v1639_v19, %v1635_v28  ;;  %v4097_v11 = vsub.f32 %v264_v60, %v1639_v19 }
  0x27   :  { %6455 = vst [vmem:[#allocation69_spill] sm:$0xff] %v4047_v14  ;;  %6456 = vst [vmem:[#allocation70_spill] sm:$0xff] %v4049_v3  ;;  %v202_v3 = vld [vmem:[%s5878_s1 + $0xe8] sm:$0xff]  ;;  %2943 = vmatprep.subr.bf16.mxu1 %v4079_v22  ;;  %v363_v14 = vand.u32 4294901760, %v204_v2 }
  0x28   :  { %6457 = vst [vmem:[#allocation71_spill] sm:$0xff] %v4060_v9  ;;  %6458 = vst [vmem:[#allocation72_spill] sm:$0xff] %v4062_v54  ;;  %v4087_v9 = vsub.f32 %v262_v35, %v1635_v28  ;;  %v359_v5 = vand.u32 4294901760, %v202_v3  ;;  %v201_v35 = vld [vmem:[%s5878_s1 + $0xe0] sm:$0xff]  ;;  %3327 = vmatprep.subr.bf16.mxu0 %v4095_v20 }
  0x29   :  { %6459 = vst [vmem:[#allocation73_spill] sm:$0xff] %v4064_v26  ;;  %6460 = vst [vmem:[#allocation74_spill] sm:$0xff] %v4066_v36  ;;  %v357_v36 = vand.u32 4294901760, %v199_v15  ;;  %v1637_v26 = vand.u32 4294901760, %v261_v57 }
  0x2a   :  { %6461 = vst [vmem:[#allocation75_spill] sm:$0xff] %v4079_v22  ;;  %6462 = vst [vmem:[#allocation76_spill] sm:$0xff] %v4081_v24  ;;  %v4101_v22 = vsub.f32 %v197_v53, %v353_v21  ;;  %v4118_v53 = vsub.f32 %v263_v42, %v1641_v49  ;;  %v361_v42 = vand.u32 4294901760, %v201_v35 }
  0x2b   :  { %6463 = vst [vmem:[#allocation77_spill] sm:$0xff] %v4083_v47  ;;  %6464 = vst [vmem:[#allocation78_spill] sm:$0xff] %v4087_v9  ;;  %v4099_v54 = vpack.c.bf16 %v357_v36, %v353_v21  ;;  %v203_v9 = vld [vmem:[%s5878_s1 + $0xf0] sm:$0xff]  ;;  %v265_v47 = vld [vmem:[%s5878_s1 + $0x2e0] sm:$0xff]  ;;  %v4112_v28 = vsub.f32 %v199_v15, %v357_v36  ;;  %v4114_v60 = vpack.c.bf16 %v1641_v49, %v1637_v26  ;;  %v1647_v36 = vand.u32 4294901760, %v268_v45 }
  0x2c   :  { %6465 = vst [vmem:[#allocation79_spill] sm:$0xff] %v4095_v20  ;;  %6466 = vst [vmem:[#allocation80_spill] sm:$0xff] %v4097_v11  ;;  %v4116_v19 = vsub.f32 %v261_v57, %v1637_v26  ;;  %v267_v21 = vld [vmem:[%s5878_s1 + $0x2f0] sm:$0xff]  ;;  %v208_v11 = vld [vmem:[%s5878_s1 + $0x118] sm:$0xff]  ;;  %v4131_v15 = vpack.c.bf16 %v363_v14, %v359_v5  ;;  %v4133_v57 = vsub.f32 %v202_v3, %v359_v5  ;;  %v1643_v26 = vand.u32 4294901760, %v266_v38 }
  0x2d   :  { %6467 = vst [vmem:[#allocation81_spill] sm:$0xff] %v4099_v54  ;;  %6468 = vst [vmem:[#allocation82_spill] sm:$0xff] %v4101_v22  ;;  %v206_v22 = vld [vmem:[%s5878_s1 + $0x108] sm:$0xff]  ;;  %2945 = vmatpush1.bf16.msra.mxu1 %v4099_v54  ;;  %v4135_v49 = vsub.f32 %v204_v2, %v363_v14  ;;  %3329 = vmatpush1.bf16.msra.mxu0 %v4114_v60  ;;  %v1649_v20 = vand.u32 4294901760, %v267_v21  ;;  %v371_v54 = vand.u32 4294901760, %v208_v11  ;;  %v272_v14 = vld [vmem:[%s5878_s1 + $0x318] sm:$0xff] }
  0x2e   :  { %6469 = vst [vmem:[#allocation83_spill] sm:$0xff] %v4112_v28  ;;  %6470 = vst [vmem:[#allocation84_spill] sm:$0xff] %v4114_v60  ;;  %2947 = vmatprep.subr.bf16.mxu1 %v4131_v15  ;;  %v4139_v28 = vsub.f32 %v266_v38, %v1643_v26  ;;  %v367_v24 = vand.u32 4294901760, %v206_v22  ;;  %v270_v3 = vld [vmem:[%s5878_s1 + $0x308] sm:$0xff]  ;;  %v4147_v5 = vpack.c.bf16 %v1647_v36, %v1643_v26  ;;  %v205_v38 = vld [vmem:[%s5878_s1 + $0x100] sm:$0xff] }
  0x2f   :  { %6471 = vst [vmem:[#allocation85_spill] sm:$0xff] %v4116_v19  ;;  %6472 = vst [vmem:[#allocation86_spill] sm:$0xff] %v4118_v53  ;;  %v365_v53 = vand.u32 4294901760, %v203_v9  ;;  %v1645_v19 = vand.u32 4294901760, %v265_v47  ;;  %v4149_v2 = vsub.f32 %v268_v45, %v1647_v36 }
  0x30   :  { %6473 = vst [vmem:[#allocation87_spill] sm:$0xff] %v4131_v15  ;;  %6474 = vst [vmem:[#allocation88_spill] sm:$0xff] %v4133_v57  ;;  %v4153_v15 = vsub.f32 %v201_v35, %v361_v42  ;;  %v4170_v35 = vsub.f32 %v267_v21, %v1649_v20  ;;  %3331 = vmatprep.subr.bf16.mxu0 %v4147_v5  ;;  %v369_v21 = vand.u32 4294901760, %v205_v38 }
  0x31   :  { %6475 = vst [vmem:[#allocation89_spill] sm:$0xff] %v4135_v49  ;;  %6476 = vst [vmem:[#allocation90_spill] sm:$0xff] %v4139_v28  ;;  %v4151_v60 = vpack.c.bf16 %v365_v53, %v361_v42  ;;  %v207_v28 = vld [vmem:[%s5878_s1 + $0x110] sm:$0xff]  ;;  %v269_v49 = vld [vmem:[%s5878_s1 + $0x300] sm:$0xff]  ;;  %v4164_v26 = vsub.f32 %v203_v9, %v365_v53  ;;  %v4166_v45 = vpack.c.bf16 %v1649_v20, %v1645_v19  ;;  %v1655_v53 = vand.u32 4294901760, %v272_v14 }
  0x32   :  { %6477 = vst [vmem:[#allocation91_spill] sm:$0xff] %v4147_v5  ;;  %6478 = vst [vmem:[#allocation92_spill] sm:$0xff] %v4149_v2  ;;  %v4168_v36 = vsub.f32 %v265_v47, %v1645_v19  ;;  %v271_v42 = vld [vmem:[%s5878_s1 + $0x310] sm:$0xff]  ;;  %v212_v2 = vld [vmem:[%s5878_s1 + $0x138] sm:$0xff]  ;;  %v4183_v9 = vpack.c.bf16 %v371_v54, %v367_v24  ;;  %v4185_v47 = vsub.f32 %v206_v22, %v367_v24  ;;  %v1651_v19 = vand.u32 4294901760, %v270_v3 }
  0x33   :  { %6479 = vst [vmem:[#allocation93_spill] sm:$0xff] %v4151_v60  ;;  %6480 = vst [vmem:[#allocation94_spill] sm:$0xff] %v4153_v15  ;;  %v210_v15 = vld [vmem:[%s5878_s1 + $0x128] sm:$0xff]  ;;  %2949 = vmatpush1.bf16.msra.mxu1 %v4151_v60  ;;  %v4187_v20 = vsub.f32 %v208_v11, %v371_v54  ;;  %3333 = vmatpush1.bf16.msra.mxu0 %v4166_v45  ;;  %v1657_v5 = vand.u32 4294901760, %v271_v42  ;;  %v379_v60 = vand.u32 4294901760, %v212_v2  ;;  %v276_v54 = vld [vmem:[%s5878_s1 + $0x338] sm:$0xff] }
  0x34   :  { %6481 = vst [vmem:[#allocation95_spill] sm:$0xff] %v4164_v26  ;;  %6482 = vst [vmem:[#allocation96_spill] sm:$0xff] %v4166_v45  ;;  %2951 = vmatprep.subr.bf16.mxu1 %v4183_v9  ;;  %v4191_v26 = vsub.f32 %v270_v3, %v1651_v19  ;;  %v375_v57 = vand.u32 4294901760, %v210_v15  ;;  %v274_v22 = vld [vmem:[%s5878_s1 + $0x328] sm:$0xff]  ;;  %v4199_v24 = vpack.c.bf16 %v1655_v53, %v1651_v19  ;;  %v209_v3 = vld [vmem:[%s5878_s1 + $0x120] sm:$0xff] }
  0x35   :  { %6483 = vst [vmem:[#allocation97_spill] sm:$0xff] %v4168_v36  ;;  %6484 = vst [vmem:[#allocation98_spill] sm:$0xff] %v4170_v35  ;;  %v373_v35 = vand.u32 4294901760, %v207_v28  ;;  %v1653_v36 = vand.u32 4294901760, %v269_v49  ;;  %v4201_v11 = vsub.f32 %v272_v14, %v1655_v53 }
  0x36   :  { %6485 = vst [vmem:[#allocation99_spill] sm:$0xff] %v4183_v9  ;;  %6486 = vst [vmem:[#allocation100_spill] sm:$0xff] %v4185_v47  ;;  %v4205_v9 = vsub.f32 %v205_v38, %v369_v21  ;;  %v4222_v38 = vsub.f32 %v271_v42, %v1657_v5  ;;  %3335 = vmatprep.subr.bf16.mxu0 %v4199_v24  ;;  %v377_v42 = vand.u32 4294901760, %v209_v3 }
  0x37   :  { %6487 = vst [vmem:[#allocation101_spill] sm:$0xff] %v4187_v20  ;;  %6488 = vst [vmem:[#allocation102_spill] sm:$0xff] %v4191_v26  ;;  %v4203_v45 = vpack.c.bf16 %v373_v35, %v369_v21  ;;  %v211_v26 = vld [vmem:[%s5878_s1 + $0x130] sm:$0xff]  ;;  %v273_v20 = vld [vmem:[%s5878_s1 + $0x320] sm:$0xff]  ;;  %v4216_v19 = vsub.f32 %v207_v28, %v373_v35  ;;  %v4218_v14 = vpack.c.bf16 %v1657_v5, %v1653_v36  ;;  %v1663_v35 = vand.u32 4294901760, %v276_v54 }
  0x38   :  { %6489 = vst [vmem:[#allocation103_spill] sm:$0xff] %v4199_v24  ;;  %6490 = vst [vmem:[#allocation104_spill] sm:$0xff] %v4201_v11  ;;  %v4220_v53 = vsub.f32 %v269_v49, %v1653_v36  ;;  %v275_v21 = vld [vmem:[%s5878_s1 + $0x330] sm:$0xff]  ;;  %v216_v11 = vld [vmem:[%s5878_s1 + $0x158] sm:$0xff]  ;;  %v4235_v28 = vpack.c.bf16 %v379_v60, %v375_v57  ;;  %v4237_v49 = vsub.f32 %v210_v15, %v375_v57  ;;  %v1659_v36 = vand.u32 4294901760, %v274_v22 }
  0x39   :  { %6491 = vst [vmem:[#allocation105_spill] sm:$0xff] %v4203_v45  ;;  %6492 = vst [vmem:[#allocation106_spill] sm:$0xff] %v4205_v9  ;;  %v214_v9 = vld [vmem:[%s5878_s1 + $0x148] sm:$0xff]  ;;  %2953 = vmatpush1.bf16.msra.mxu1 %v4203_v45  ;;  %v4239_v5 = vsub.f32 %v212_v2, %v379_v60  ;;  %3337 = vmatpush1.bf16.msra.mxu0 %v4218_v14  ;;  %v1665_v24 = vand.u32 4294901760, %v275_v21  ;;  %v387_v45 = vand.u32 4294901760, %v216_v11  ;;  %v280_v60 = vld [vmem:[%s5878_s1 + $0x358] sm:$0xff] }
  0x3a   :  { %6493 = vst [vmem:[#allocation107_spill] sm:$0xff] %v4216_v19  ;;  %6494 = vst [vmem:[#allocation108_spill] sm:$0xff] %v4218_v14  ;;  %2955 = vmatprep.subr.bf16.mxu1 %v4235_v28  ;;  %v4243_v19 = vsub.f32 %v274_v22, %v1659_v36  ;;  %v383_v47 = vand.u32 4294901760, %v214_v9  ;;  %v278_v15 = vld [vmem:[%s5878_s1 + $0x348] sm:$0xff]  ;;  %v4251_v57 = vpack.c.bf16 %v1663_v35, %v1659_v36  ;;  %v213_v22 = vld [vmem:[%s5878_s1 + $0x140] sm:$0xff] }
  0x3b   :  { %6495 = vst [vmem:[#allocation109_spill] sm:$0xff] %v4220_v53  ;;  %6496 = vst [vmem:[#allocation110_spill] sm:$0xff] %v4222_v38  ;;  %v381_v38 = vand.u32 4294901760, %v211_v26  ;;  %v1661_v53 = vand.u32 4294901760, %v273_v20  ;;  %v4253_v2 = vsub.f32 %v276_v54, %v1663_v35 }
  0x3c   :  { %6497 = vst [vmem:[#allocation111_spill] sm:$0xff] %v4235_v28  ;;  %6498 = vst [vmem:[#allocation112_spill] sm:$0xff] %v4237_v49  ;;  %v4257_v28 = vsub.f32 %v209_v3, %v377_v42  ;;  %v4274_v3 = vsub.f32 %v275_v21, %v1665_v24  ;;  %3339 = vmatprep.subr.bf16.mxu0 %v4251_v57  ;;  %v385_v21 = vand.u32 4294901760, %v213_v22 }
  0x3d   :  { %6499 = vst [vmem:[#allocation113_spill] sm:$0xff] %v4239_v5  ;;  %6500 = vst [vmem:[#allocation114_spill] sm:$0xff] %v4243_v19  ;;  %v4255_v14 = vpack.c.bf16 %v381_v38, %v377_v42  ;;  %v215_v19 = vld [vmem:[%s5878_s1 + $0x150] sm:$0xff]  ;;  %v277_v5 = vld [vmem:[%s5878_s1 + $0x340] sm:$0xff]  ;;  %v4268_v36 = vsub.f32 %v211_v26, %v381_v38  ;;  %v4270_v54 = vpack.c.bf16 %v1665_v24, %v1661_v53  ;;  %v1671_v38 = vand.u32 4294901760, %v280_v60 }
  0x3e   :  { %6501 = vst [vmem:[#allocation115_spill] sm:$0xff] %v4251_v57  ;;  %6502 = vst [vmem:[#allocation116_spill] sm:$0xff] %v4253_v2  ;;  %v4272_v35 = vsub.f32 %v273_v20, %v1661_v53  ;;  %v279_v42 = vld [vmem:[%s5878_s1 + $0x350] sm:$0xff]  ;;  %v220_v2 = vld [vmem:[%s5878_s1 + $0x178] sm:$0xff]  ;;  %v4287_v26 = vpack.c.bf16 %v387_v45, %v383_v47  ;;  %v4289_v20 = vsub.f32 %v214_v9, %v383_v47  ;;  %v1667_v53 = vand.u32 4294901760, %v278_v15 }
  0x3f   :  { %6503 = vst [vmem:[#allocation117_spill] sm:$0xff] %v4255_v14  ;;  %6504 = vst [vmem:[#allocation118_spill] sm:$0xff] %v4257_v28  ;;  %v218_v28 = vld [vmem:[%s5878_s1 + $0x168] sm:$0xff]  ;;  %2957 = vmatpush1.bf16.msra.mxu1 %v4255_v14  ;;  %v4291_v24 = vsub.f32 %v216_v11, %v387_v45  ;;  %3341 = vmatpush1.bf16.msra.mxu0 %v4270_v54  ;;  %v1673_v57 = vand.u32 4294901760, %v279_v42  ;;  %v395_v14 = vand.u32 4294901760, %v220_v2  ;;  %v284_v45 = vld [vmem:[%s5878_s1 + $0x378] sm:$0xff] }
  0x40   :  { %6505 = vst [vmem:[#allocation119_spill] sm:$0xff] %v4268_v36  ;;  %6506 = vst [vmem:[#allocation120_spill] sm:$0xff] %v4270_v54  ;;  %2959 = vmatprep.subr.bf16.mxu1 %v4287_v26  ;;  %v4295_v36 = vsub.f32 %v278_v15, %v1667_v53  ;;  %v391_v49 = vand.u32 4294901760, %v218_v28  ;;  %v282_v9 = vld [vmem:[%s5878_s1 + $0x368] sm:$0xff]  ;;  %v4303_v47 = vpack.c.bf16 %v1671_v38, %v1667_v53  ;;  %v217_v15 = vld [vmem:[%s5878_s1 + $0x160] sm:$0xff] }
  0x41   :  { %6507 = vst [vmem:[#allocation121_spill] sm:$0xff] %v4272_v35  ;;  %6508 = vst [vmem:[#allocation122_spill] sm:$0xff] %v4274_v3  ;;  %v389_v3 = vand.u32 4294901760, %v215_v19  ;;  %v1669_v35 = vand.u32 4294901760, %v277_v5  ;;  %v4305_v11 = vsub.f32 %v280_v60, %v1671_v38 }
  0x42   :  { %6509 = vst [vmem:[#allocation123_spill] sm:$0xff] %v4287_v26  ;;  %6510 = vst [vmem:[#allocation124_spill] sm:$0xff] %v4289_v20  ;;  %v4309_v26 = vsub.f32 %v213_v22, %v385_v21  ;;  %v4326_v22 = vsub.f32 %v279_v42, %v1673_v57  ;;  %3343 = vmatprep.subr.bf16.mxu0 %v4303_v47  ;;  %v393_v42 = vand.u32 4294901760, %v217_v15 }
  0x43   :  { %6511 = vst [vmem:[#allocation125_spill] sm:$0xff] %v4291_v24  ;;  %6512 = vst [vmem:[#allocation126_spill] sm:$0xff] %v4295_v36  ;;  %v4307_v54 = vpack.c.bf16 %v389_v3, %v385_v21  ;;  %v219_v36 = vld [vmem:[%s5878_s1 + $0x170] sm:$0xff]  ;;  %v281_v24 = vld [vmem:[%s5878_s1 + $0x360] sm:$0xff]  ;;  %v4320_v53 = vsub.f32 %v215_v19, %v389_v3  ;;  %v4322_v60 = vpack.c.bf16 %v1673_v57, %v1669_v35  ;;  %v1679_v3 = vand.u32 4294901760, %v284_v45 }
  0x44   :  { %6513 = vst [vmem:[#allocation127_spill] sm:$0xff] %v4303_v47  ;;  %6514 = vst [vmem:[#allocation128_spill] sm:$0xff] %v4305_v11  ;;  %v4324_v38 = vsub.f32 %v277_v5, %v1669_v35  ;;  %v283_v21 = vld [vmem:[%s5878_s1 + $0x370] sm:$0xff]  ;;  %v224_v11 = vld [vmem:[%s5878_s1 + $0x198] sm:$0xff]  ;;  %v4339_v19 = vpack.c.bf16 %v395_v14, %v391_v49  ;;  %v4341_v5 = vsub.f32 %v218_v28, %v391_v49  ;;  %v1675_v35 = vand.u32 4294901760, %v282_v9 }
  0x45   :  { %6515 = vst [vmem:[#allocation129_spill] sm:$0xff] %v4307_v54  ;;  %6516 = vst [vmem:[#allocation130_spill] sm:$0xff] %v4309_v26  ;;  %v222_v26 = vld [vmem:[%s5878_s1 + $0x188] sm:$0xff]  ;;  %2961 = vmatpush1.bf16.msra.mxu1 %v4307_v54  ;;  %v4343_v57 = vsub.f32 %v220_v2, %v395_v14  ;;  %3345 = vmatpush1.bf16.msra.mxu0 %v4322_v60  ;;  %v1681_v47 = vand.u32 4294901760, %v283_v21  ;;  %v403_v54 = vand.u32 4294901760, %v224_v11  ;;  %v288_v14 = vld [vmem:[%s5878_s1 + $0x398] sm:$0xff] }
  0x46   :  { %6517 = vst [vmem:[#allocation131_spill] sm:$0xff] %v4320_v53  ;;  %6518 = vst [vmem:[#allocation132_spill] sm:$0xff] %v4322_v60  ;;  %2963 = vmatprep.subr.bf16.mxu1 %v4339_v19  ;;  %v4347_v53 = vsub.f32 %v282_v9, %v1675_v35  ;;  %v399_v20 = vand.u32 4294901760, %v222_v26  ;;  %v286_v28 = vld [vmem:[%s5878_s1 + $0x388] sm:$0xff]  ;;  %v4355_v49 = vpack.c.bf16 %v1679_v3, %v1675_v35  ;;  %v221_v9 = vld [vmem:[%s5878_s1 + $0x180] sm:$0xff] }
  0x47   :  { %6519 = vst [vmem:[#allocation133_spill] sm:$0xff] %v4324_v38  ;;  %6520 = vst [vmem:[#allocation134_spill] sm:$0xff] %v4326_v22  ;;  %v397_v22 = vand.u32 4294901760, %v219_v36  ;;  %v1677_v38 = vand.u32 4294901760, %v281_v24  ;;  %v4357_v2 = vsub.f32 %v284_v45, %v1679_v3 }
  0x48   :  { %6521 = vst [vmem:[#allocation135_spill] sm:$0xff] %v4339_v19  ;;  %6522 = vst [vmem:[#allocation136_spill] sm:$0xff] %v4341_v5  ;;  %v4361_v19 = vsub.f32 %v217_v15, %v393_v42  ;;  %v4378_v15 = vsub.f32 %v283_v21, %v1681_v47  ;;  %3347 = vmatprep.subr.bf16.mxu0 %v4355_v49  ;;  %v401_v21 = vand.u32 4294901760, %v221_v9 }
  0x49   :  { %6523 = vst [vmem:[#allocation137_spill] sm:$0xff] %v4343_v57  ;;  %6524 = vst [vmem:[#allocation138_spill] sm:$0xff] %v4347_v53  ;;  %v4359_v60 = vpack.c.bf16 %v397_v22, %v393_v42  ;;  %v223_v53 = vld [vmem:[%s5878_s1 + $0x190] sm:$0xff]  ;;  %v285_v57 = vld [vmem:[%s5878_s1 + $0x380] sm:$0xff]  ;;  %v4372_v35 = vsub.f32 %v219_v36, %v397_v22  ;;  %v4374_v45 = vpack.c.bf16 %v1681_v47, %v1677_v38  ;;  %v1687_v22 = vand.u32 4294901760, %v288_v14 }
  0x4a   :  { %6525 = vst [vmem:[#allocation139_spill] sm:$0xff] %v4355_v49  ;;  %6526 = vst [vmem:[#allocation140_spill] sm:$0xff] %v4357_v2  ;;  %v4376_v3 = vsub.f32 %v281_v24, %v1677_v38  ;;  %v287_v42 = vld [vmem:[%s5878_s1 + $0x390] sm:$0xff]  ;;  %v228_v2 = vld [vmem:[%s5878_s1 + $0x1b8] sm:$0xff]  ;;  %v4391_v36 = vpack.c.bf16 %v403_v54, %v399_v20  ;;  %v4393_v24 = vsub.f32 %v222_v26, %v399_v20  ;;  %v1683_v38 = vand.u32 4294901760, %v286_v28 }
  0x4b   :  { %6527 = vst [vmem:[#allocation141_spill] sm:$0xff] %v4359_v60  ;;  %6528 = vst [vmem:[#allocation142_spill] sm:$0xff] %v4361_v19  ;;  %v226_v19 = vld [vmem:[%s5878_s1 + $0x1a8] sm:$0xff]  ;;  %2965 = vmatpush1.bf16.msra.mxu1 %v4359_v60  ;;  %v4395_v47 = vsub.f32 %v224_v11, %v403_v54  ;;  %3349 = vmatpush1.bf16.msra.mxu0 %v4374_v45  ;;  %v1689_v49 = vand.u32 4294901760, %v287_v42  ;;  %v411_v60 = vand.u32 4294901760, %v228_v2  ;;  %v292_v54 = vld [vmem:[%s5878_s1 + $0x3b8] sm:$0xff] }
  0x4c   :  { %6529 = vst [vmem:[#allocation143_spill] sm:$0xff] %v4372_v35  ;;  %6530 = vst [vmem:[#allocation144_spill] sm:$0xff] %v4374_v45  ;;  %2967 = vmatprep.subr.bf16.mxu1 %v4391_v36  ;;  %v4399_v35 = vsub.f32 %v286_v28, %v1683_v38  ;;  %v407_v5 = vand.u32 4294901760, %v226_v19  ;;  %v290_v26 = vld [vmem:[%s5878_s1 + $0x3a8] sm:$0xff]  ;;  %v4407_v20 = vpack.c.bf16 %v1687_v22, %v1683_v38  ;;  %v225_v28 = vld [vmem:[%s5878_s1 + $0x1a0] sm:$0xff] }
  0x4d   :  { %6531 = vst [vmem:[#allocation145_spill] sm:$0xff] %v4376_v3  ;;  %6532 = vst [vmem:[#allocation146_spill] sm:$0xff] %v4378_v15  ;;  %v405_v15 = vand.u32 4294901760, %v223_v53  ;;  %v1685_v3 = vand.u32 4294901760, %v285_v57  ;;  %v4409_v11 = vsub.f32 %v288_v14, %v1687_v22 }
  0x4e   :  { %6533 = vst [vmem:[#allocation147_spill] sm:$0xff] %v4391_v36  ;;  %6534 = vst [vmem:[#allocation148_spill] sm:$0xff] %v4393_v24  ;;  %v4413_v36 = vsub.f32 %v221_v9, %v401_v21  ;;  %v4430_v9 = vsub.f32 %v287_v42, %v1689_v49  ;;  %3351 = vmatprep.subr.bf16.mxu0 %v4407_v20  ;;  %v409_v42 = vand.u32 4294901760, %v225_v28 }
  0x4f   :  { %6535 = vst [vmem:[#allocation149_spill] sm:$0xff] %v4395_v47  ;;  %6536 = vst [vmem:[#allocation150_spill] sm:$0xff] %v4399_v35  ;;  %v4411_v45 = vpack.c.bf16 %v405_v15, %v401_v21  ;;  %v227_v35 = vld [vmem:[%s5878_s1 + $0x1b0] sm:$0xff]  ;;  %v289_v47 = vld [vmem:[%s5878_s1 + $0x3a0] sm:$0xff]  ;;  %v4424_v38 = vsub.f32 %v223_v53, %v405_v15  ;;  %v4426_v14 = vpack.c.bf16 %v1689_v49, %v1685_v3  ;;  %v1695_v15 = vand.u32 4294901760, %v292_v54 }
  0x50   :  { %6537 = vst [vmem:[#allocation151_spill] sm:$0xff] %v4407_v20  ;;  %6538 = vst [vmem:[#allocation152_spill] sm:$0xff] %v4409_v11  ;;  %v4428_v22 = vsub.f32 %v285_v57, %v1685_v3  ;;  %v291_v21 = vld [vmem:[%s5878_s1 + $0x3b0] sm:$0xff]  ;;  %v232_v11 = vld [vmem:[%s5878_s1 + $0x1d8] sm:$0xff]  ;;  %v4443_v53 = vpack.c.bf16 %v411_v60, %v407_v5  ;;  %v4445_v57 = vsub.f32 %v226_v19, %v407_v5  ;;  %v1691_v3 = vand.u32 4294901760, %v290_v26 }
  0x51   :  { %6539 = vst [vmem:[#allocation153_spill] sm:$0xff] %v4411_v45  ;;  %6540 = vst [vmem:[#allocation154_spill] sm:$0xff] %v4413_v36  ;;  %v230_v36 = vld [vmem:[%s5878_s1 + $0x1c8] sm:$0xff]  ;;  %2969 = vmatpush1.bf16.msra.mxu1 %v4411_v45  ;;  %v4447_v49 = vsub.f32 %v228_v2, %v411_v60  ;;  %3353 = vmatpush1.bf16.msra.mxu0 %v4426_v14  ;;  %v1697_v20 = vand.u32 4294901760, %v291_v21  ;;  %v419_v45 = vand.u32 4294901760, %v232_v11  ;;  %v296_v60 = vld [vmem:[%s5878_s1 + $0x3d8] sm:$0xff] }
  0x52   :  { %6541 = vst [vmem:[#allocation155_spill] sm:$0xff] %v4424_v38  ;;  %6542 = vst [vmem:[#allocation156_spill] sm:$0xff] %v4426_v14  ;;  %2971 = vmatprep.subr.bf16.mxu1 %v4443_v53  ;;  %v4451_v38 = vsub.f32 %v290_v26, %v1691_v3  ;;  %v415_v24 = vand.u32 4294901760, %v230_v36  ;;  %v294_v19 = vld [vmem:[%s5878_s1 + $0x3c8] sm:$0xff]  ;;  %v4459_v5 = vpack.c.bf16 %v1695_v15, %v1691_v3  ;;  %v229_v26 = vld [vmem:[%s5878_s1 + $0x1c0] sm:$0xff] }
  0x53   :  { %6543 = vst [vmem:[#allocation157_spill] sm:$0xff] %v4428_v22  ;;  %6544 = vst [vmem:[#allocation158_spill] sm:$0xff] %v4430_v9  ;;  %v413_v9 = vand.u32 4294901760, %v227_v35  ;;  %v1693_v22 = vand.u32 4294901760, %v289_v47  ;;  %v4461_v2 = vsub.f32 %v292_v54, %v1695_v15 }
  0x54   :  { %6545 = vst [vmem:[#allocation159_spill] sm:$0xff] %v4443_v53  ;;  %6546 = vst [vmem:[#allocation160_spill] sm:$0xff] %v4445_v57  ;;  %v4465_v53 = vsub.f32 %v225_v28, %v409_v42  ;;  %v4482_v28 = vsub.f32 %v291_v21, %v1697_v20  ;;  %3355 = vmatprep.subr.bf16.mxu0 %v4459_v5  ;;  %v417_v21 = vand.u32 4294901760, %v229_v26 }
  0x55   :  { %6547 = vst [vmem:[#allocation161_spill] sm:$0xff] %v4447_v49  ;;  %6548 = vst [vmem:[#allocation162_spill] sm:$0xff] %v4451_v38  ;;  %v4463_v14 = vpack.c.bf16 %v413_v9, %v409_v42  ;;  %v231_v38 = vld [vmem:[%s5878_s1 + $0x1d0] sm:$0xff]  ;;  %v293_v49 = vld [vmem:[%s5878_s1 + $0x3c0] sm:$0xff]  ;;  %v4476_v3 = vsub.f32 %v227_v35, %v413_v9  ;;  %v4478_v54 = vpack.c.bf16 %v1697_v20, %v1693_v22  ;;  %v1703_v9 = vand.u32 4294901760, %v296_v60 }
  0x56   :  { %6549 = vst [vmem:[#allocation163_spill] sm:$0xff] %v4459_v5  ;;  %6550 = vst [vmem:[#allocation164_spill] sm:$0xff] %v4461_v2  ;;  %v4480_v15 = vsub.f32 %v289_v47, %v1693_v22  ;;  %v295_v42 = vld [vmem:[%s5878_s1 + $0x3d0] sm:$0xff]  ;;  %v236_v2 = vld [vmem:[%s5878_s1 + $0x1f8] sm:$0xff]  ;;  %v4495_v35 = vpack.c.bf16 %v419_v45, %v415_v24  ;;  %v4497_v47 = vsub.f32 %v230_v36, %v415_v24  ;;  %v1699_v22 = vand.u32 4294901760, %v294_v19 }
  0x57   :  { %6551 = vst [vmem:[#allocation165_spill] sm:$0xff] %v4463_v14  ;;  %6552 = vst [vmem:[#allocation166_spill] sm:$0xff] %v4465_v53  ;;  %v234_v53 = vld [vmem:[%s5878_s1 + $0x1e8] sm:$0xff]  ;;  %2973 = vmatpush1.bf16.msra.mxu1 %v4463_v14  ;;  %v4499_v20 = vsub.f32 %v232_v11, %v419_v45  ;;  %3357 = vmatpush1.bf16.msra.mxu0 %v4478_v54  ;;  %v1705_v5 = vand.u32 4294901760, %v295_v42  ;;  %v427_v14 = vand.u32 4294901760, %v236_v2  ;;  %v300_v45 = vld [vmem:[%s5878_s1 + $0x3f8] sm:$0xff] }
  0x58   :  { %6553 = vst [vmem:[#allocation167_spill] sm:$0xff] %v4476_v3  ;;  %6554 = vst [vmem:[#allocation168_spill] sm:$0xff] %v4478_v54  ;;  %2975 = vmatprep.subr.bf16.mxu1 %v4495_v35  ;;  %v4503_v3 = vsub.f32 %v294_v19, %v1699_v22  ;;  %v423_v57 = vand.u32 4294901760, %v234_v53  ;;  %v298_v36 = vld [vmem:[%s5878_s1 + $0x3e8] sm:$0xff]  ;;  %v4511_v24 = vpack.c.bf16 %v1703_v9, %v1699_v22  ;;  %v233_v19 = vld [vmem:[%s5878_s1 + $0x1e0] sm:$0xff] }
  0x59   :  { %6555 = vst [vmem:[#allocation169_spill] sm:$0xff] %v4480_v15  ;;  %6556 = vst [vmem:[#allocation170_spill] sm:$0xff] %v4482_v28  ;;  %v421_v28 = vand.u32 4294901760, %v231_v38  ;;  %v1701_v15 = vand.u32 4294901760, %v293_v49  ;;  %v4513_v11 = vsub.f32 %v296_v60, %v1703_v9 }
  0x5a   :  { %6557 = vst [vmem:[#allocation171_spill] sm:$0xff] %v4495_v35  ;;  %6558 = vst [vmem:[#allocation172_spill] sm:$0xff] %v4497_v47  ;;  %v4517_v35 = vsub.f32 %v229_v26, %v417_v21  ;;  %v4534_v26 = vsub.f32 %v295_v42, %v1705_v5  ;;  %3359 = vmatprep.subr.bf16.mxu0 %v4511_v24  ;;  %v425_v42 = vand.u32 4294901760, %v233_v19  ;;  %v2900_v47 = vld [vmem:[%s5879_s0 + $0x88] sm:$0xff] }
  0x5b   :  { %6559 = vst [vmem:[#allocation173_spill] sm:$0xff] %v4499_v20  ;;  %6560 = vst [vmem:[#allocation174_spill] sm:$0xff] %v4503_v3  ;;  %v4515_v54 = vpack.c.bf16 %v421_v28, %v417_v21  ;;  %v235_v3 = vld [vmem:[%s5878_s1 + $0x1f0] sm:$0xff]  ;;  %v297_v20 = vld [vmem:[%s5878_s1 + $0x3e0] sm:$0xff]  ;;  %v4528_v22 = vsub.f32 %v231_v38, %v421_v28  ;;  %v4530_v60 = vpack.c.bf16 %v1705_v5, %v1701_v15  ;;  %v1707_v28 = vand.u32 4294901760, %v298_v36 }
  0x5c   :  { %6561 = vst [vmem:[#allocation175_spill] sm:$0xff] %v4511_v24  ;;  %6562 = vst [vmem:[#allocation176_spill] sm:$0xff] %v4513_v11  ;;  %v4532_v9 = vsub.f32 %v293_v49, %v1701_v15  ;;  %v299_v21 = vld [vmem:[%s5878_s1 + $0x3f0] sm:$0xff]  ;;  %v4543_v11 = vsub.f32 %v234_v53, %v423_v57  ;;  %v4545_v38 = vsub.f32 %v236_v2, %v427_v14  ;;  %v16_v49 = vld [vmem:[%s5879_s0 + $0x8] sm:$0xff]  ;;  %v1711_v15 = vand.u32 4294901760, %v300_v45 }
  0x5d   :  { %6563 = vst [vmem:[#allocation177_spill] sm:$0xff] %v4515_v54  ;;  %6564 = vst [vmem:[#allocation178_spill] sm:$0xff] %v4517_v35  ;;  %2977 = vmatpush1.bf16.msra.mxu1 %v4515_v54  ;;  %v4541_v35 = vpack.c.bf16 %v427_v14, %v423_v57  ;;  %v18_v5 = vld [vmem:[%s5879_s0 + $0x18] sm:$0xff]  ;;  %3361 = vmatpush1.bf16.msra.mxu0 %v4530_v60  ;;  %v429_v54 = vand.u32 4294901760, %v235_v3  ;;  %v1709_v24 = vand.u32 4294901760, %v297_v20  ;;  %v20_v14 = vld [vmem:[%s5879_s0 + $0x28] sm:$0xff] }
  0x5e   :  { %6565 = vst [vmem:[#allocation179_spill] sm:$0xff] %v4528_v22  ;;  %6566 = vst [vmem:[#allocation180_spill] sm:$0xff] %v4530_v60  ;;  %v22_v53 = vld [vmem:[%s5879_s0 + $0x38] sm:$0xff]  ;;  %v4561_v57 = vsub.f32 %v298_v36, %v1707_v28  ;;  %v1713_v2 = vand.u32 4294901760, %v299_v21  ;;  %v4563_v60 = vpack.c.bf16 %v1711_v15, %v1707_v28  ;;  %v4569_v22 = vsub.f32 %v233_v19, %v425_v42  ;;  %v24_v19 = vld [vmem:[%s5879_s0 + $0x48] sm:$0xff] }
  0x5f   :  { %6567 = vst [vmem:[#allocation181_spill] sm:$0xff] %v4532_v9  ;;  %6568 = vst [vmem:[#allocation182_spill] sm:$0xff] %v4534_v26  ;;  %2979 = vmatprep.subr.bf16.mxu1 %v4541_v35  ;;  %v4565_v26 = vsub.f32 %v300_v45, %v1711_v15  ;;  %v4567_v9 = vpack.c.bf16 %v429_v54, %v425_v42  ;;  %v2902_v36 = vld [vmem:[%s5879_s0 + $0x98] sm:$0xff]  ;;  %v4581_v28 = vsub.f32 %v297_v20, %v1709_v24 }
  0x60   :  { %6569 = vst [vmem:[#allocation183_spill] sm:$0xff] %v4541_v35  ;;  %6570 = vst [vmem:[#allocation184_spill] sm:$0xff] %v4543_v11  ;;  %v45_v11 = vmax.f32 %v18_v5, %v22_v53  ;;  %v4577_v35 = vsub.f32 %v235_v3, %v429_v54  ;;  %v4583_v45 = vsub.f32 %v299_v21, %v1713_v2  ;;  %v26_v15 = vld [vmem:[%s5879_s0 + $0x58] sm:$0xff]  ;;  %3363 = vmatprep.subr.bf16.mxu0 %v4563_v60 }
  0x61   :  { %6571 = vst [vmem:[#allocation185_spill] sm:$0xff] %v4545_v38  ;;  %6572 = vst [vmem:[#allocation186_spill] sm:$0xff] %v4561_v57  ;;  %v44_v38 = vmax.f32 %v16_v49, %v20_v14  ;;  %v4579_v57 = vpack.c.bf16 %v1713_v2, %v1709_v24  ;;  %v4594_v42 = vld [vmem:[%s5879_s0 + $0x78] sm:$0xff]  ;;  %2981 = vmatpush1.bf16.msra.mxu1 %v4567_v9  ;;  %v70_v20 = vadd.f32 %v18_v5, %v16_v49  ;;  %v2904_v24 = vld [vmem:[%s5879_s0 + $0xa8] sm:$0xff] }
  0x62   :  { %6573 = vst [vmem:[#allocation187_spill] sm:$0xff] %v4563_v60  ;;  %6574 = vst [vmem:[#allocation188_spill] sm:$0xff] %v4565_v26  ;;  %v47_v54 = vmax.f32 %v45_v11, %v26_v15  ;;  %v2906_v21 = vld [vmem:[%s5879_s0 + $0xb8] sm:$0xff]  ;;  %v28_v60 = vld [vmem:[%s5879_s0 + $0x68] sm:$0xff]  ;;  %v141_v11 = vadd.f32 %v2902_v36, %v2900_v47 }
  0x63   :  { %6575 = vst [vmem:[#allocation189_spill] sm:$0xff] %v4567_v9  ;;  %6576 = vst [vmem:[#allocation190_spill] sm:$0xff] %v4569_v22  ;;  %v46_v3 = vmax.f32 %v44_v38, %v24_v19  ;;  %3365 = vmatpush1.bf16.msra.mxu0 %v4579_v57  ;;  %v115_v9 = vmax.f32 %v2900_v47, %v2904_v24  ;;  %v116_v38 = vmax.f32 %v2902_v36, %v2906_v21  ;;  %v2910_v2 = vld [vmem:[%s5879_s0 + $0xd8] sm:$0xff] }
  0x64   :  { %6577 = vst [vmem:[#allocation191_spill] sm:$0xff] %v4577_v35  ;;  %6578 = vst [vmem:[#allocation192_spill] sm:$0xff] %v4579_v57  ;;  %v2908_v35 = vld [vmem:[%s5879_s0 + $0xc8] sm:$0xff]  ;;  %v2914_v57 = vld [vmem:[%s5879_s0 + $0xf8] sm:$0xff]  ;;  %v6581_v47 = vand.u32 4294901760, %v3767_v16 }
  0x65   :  { %6579 = vst [vmem:[#allocation193_spill] sm:$0xff] %v4581_v28  ;;  %6580 = vst [vmem:[#allocation194_spill] sm:$0xff] %v4583_v45  ;;  %v48_v5 = vmax.f32 %v46_v3, %v28_v60  ;;  %v49_v45 = vmax.f32 %v47_v54, %v4594_v42  ;;  %v71_v28 = vadd.f32 %v70_v20, %v20_v14  ;;  %v6582_v14 = vand.u32 4294901760, %v3769_v17 }
  0x66   :  { %v451_v36 = vsub.f32 %v3767_v16, %v6581_v47  ;;  %v117_v3 = vmax.f32 %v115_v9, %v2908_v35  ;;  %v118_v49 = vmax.f32 %v116_v38, %v2910_v2  ;;  %v142_v54 = vadd.f32 %v2904_v24, %v141_v11 }
  0x67   :  { %v463_v20 = vsub.f32 %v3769_v17, %v6582_v14  ;;  %v50_v22 = vmax.f32 %v48_v5, %v49_v45  ;;  %v72_v26 = vadd.f32 %v71_v28, %v22_v53  ;;  %v1735_v24 = vsub.f32 %v3771_v18, %v6106_v30  ;;  %v15_v53 = vld [vmem:[%s5879_s0] sm:$0xff]  ;;  %v21_v14 = vld [vmem:[%s5879_s0 + $0x30] sm:$0xff] }
  0x68   :  { %v452_v8 = vand.u32 4294901760, %v451_v36  ;;  %v119_v55 = vmax.f32 %v117_v3, %v2912_v1  ;;  %v120_v32 = vmax.f32 %v118_v49, %v2914_v57  ;;  %v143_v37 = vadd.f32 %v2906_v21, %v142_v54  ;;  %v19_v28 = vld [vmem:[%s5879_s0 + $0x20] sm:$0xff] }
  0x69   :  { %v464_v47 = vand.u32 4294901760, %v463_v20  ;;  %v51_v9 = vrot.slane %v50_v22, 4  ;;  %v73_v38 = vadd.f32 %v72_v26, %v24_v19  ;;  %v6105_v45 = vand.u32 4294901760, %v3784_v23  ;;  %v17_v26 = vld [vmem:[%s5879_s0 + $0x10] sm:$0xff]  ;;  %v2899_v30 = vld [vmem:[%s5879_s0 + $0x80] sm:$0xff] }
  0x6a   :  { %v121_v11 = vmax.f32 %v119_v55, %v120_v32  ;;  %v144_v49 = vadd.f32 %v2908_v35, %v143_v37  ;;  %v31_v19 = vmax.f32 %v15_v53, %v19_v28  ;;  %v1736_v3 = vand.u32 4294901760, %v1735_v24  ;;  %v23_v32 = vld [vmem:[%s5879_s0 + $0x40] sm:$0xff] }
  0x6b   :  { %v2982_v21 = vpack.c.bf16 %v464_v47, %v452_v8  ;;  %v52_v5 = vmax.f32 %v50_v22, %v51_v9  ;;  %v74_v36 = vadd.f32 %v73_v38, %v26_v15  ;;  %v1747_v54 = vsub.f32 %v3784_v23, %v6105_v45  ;;  %v4655_v47 = vld [vmem:[%s5879_s0 + $0x50] sm:$0xff]  ;;  %v4660_v9 = vld [vmem:[%s5879_s0 + $0x60] sm:$0xff] }
  0x6c   :  { %v122_v37 = vrot.slane %v121_v11, 4  ;;  %v145_v55 = vadd.f32 %v2910_v2, %v144_v49  ;;  %v32_v8 = vmax.f32 %v17_v26, %v21_v14  ;;  %v33_v35 = vmax.f32 %v31_v19, %v23_v32  ;;  %v4665_v38 = vld [vmem:[%s5879_s0 + $0x70] sm:$0xff] }
  0x6d   :  { %2983 = vmatprep.subr.bf16.mxu1 %v2982_v21  ;;  %v53_v22 = vrot.slane %v52_v5, 2  ;;  %v75_v15 = vadd.f32 %v74_v36, %v28_v60  ;;  %v1748_v20 = vand.u32 4294901760, %v1747_v54  ;;  %v57_v2 = vadd.f32 %v17_v26, %v15_v53  ;;  %v2903_v53 = vld [vmem:[%s5879_s0 + $0xa0] sm:$0xff] }
  0x6e   :  { %v123_v24 = vmax.f32 %v121_v11, %v122_v37  ;;  %v146_v49 = vadd.f32 %v2912_v1, %v145_v55  ;;  %v34_v60 = vmax.f32 %v32_v8, %v4655_v47  ;;  %v35_v21 = vmax.f32 %v33_v35, %v4660_v9  ;;  %v2907_v8 = vld [vmem:[%s5879_s0 + $0xc0] sm:$0xff] }
  0x6f   :  { %v54_v19 = vmax.f32 %v52_v5, %v53_v22  ;;  %v76_v36 = vadd.f32 %v75_v15, %v4594_v42  ;;  %v3366_v54 = vpack.c.bf16 %v1748_v20, %v1736_v3  ;;  %v58_v45 = vadd.f32 %v57_v2, %v19_v28  ;;  %v2901_v5 = vld [vmem:[%s5879_s0 + $0x90] sm:$0xff] }
  0x70   :  { %v124_v11 = vrot.slane %v123_v24, 2  ;;  %v147_v1 = vadd.f32 %v2914_v57, %v146_v49  ;;  %v36_v26 = vmax.f32 %v34_v60, %v4665_v38  ;;  %v2905_v42 = vld [vmem:[%s5879_s0 + $0xb0] sm:$0xff]  ;;  %v102_v28 = vmax.f32 %v2899_v30, %v2903_v53 }
  0x71   :  { %v55_v3 = vrot.slane %v54_v19, 1  ;;  %v77_v37 = vrot.slane %v76_v36, 4  ;;  %3367 = vmatprep.subr.bf16.mxu0 %v3366_v54  ;;  %v59_v55 = vadd.f32 %v58_v45, %v21_v14  ;;  %v103_v57 = vmax.f32 %v2901_v5, %v2905_v42  ;;  %v2909_v20 = vld [vmem:[%s5879_s0 + $0xd0] sm:$0xff]  ;;  %v2911_v14 = vld [vmem:[%s5879_s0 + $0xe0] sm:$0xff] }
  0x72   :  { %v125_v35 = vmax.f32 %v123_v24, %v124_v11  ;;  %v148_v22 = vrot.slane %v147_v1, 4  ;;  %v37_v15 = vmax.f32 %v35_v21, %v36_v26  ;;  %v2913_v2 = vld [vmem:[%s5879_s0 + $0xf0] sm:$0xff]  ;;  %v104_v49 = vmax.f32 %v102_v28, %v2907_v8 }
  0x73   :  { %v56_v60 = vmax.f32 %v54_v19, %v55_v3  ;;  %v78_v54 = vadd.f32 %v77_v37, %v76_v36  ;;  %v60_v45 = vadd.f32 %v59_v55, %v23_v32  ;;  %v105_v23 = vmax.f32 %v103_v57, %v2909_v20 }
  0x74   :  { %v126_v24 = vrot.slane %v125_v35, 1  ;;  %v149_v11 = vadd.f32 %v148_v22, %v147_v1  ;;  %v38_v21 = vrot.slane %v37_v15, 4  ;;  %v106_v26 = vmax.f32 %v104_v49, %v2911_v14 }
  0x75   :  { %v79_v18 = vrot.slane %v78_v54, 2  ;;  %v107_v17 = vmax.f32 %v105_v23, %v2913_v2  ;;  %v128_v16 = vadd.f32 %v2901_v5, %v2899_v30  ;;  %v6146_v19 = vand.u32 4294901760, %v3794_v27 }
  0x76   :  { %v127_v59 = vmax.f32 %v125_v35, %v126_v24  ;;  %v150_v31 = vrot.slane %v149_v11, 2  ;;  %v39_v28 = vmax.f32 %v37_v15, %v38_v21  ;;  %v457_v37 = vsub.f32 %v3788_v25, %v6147_v0  ;;  %v6598_v0 = vld [vmem:[#allocation59_spill] sm:$0xff] }
  0x77   :  { %v80_v32 = vadd.f32 %v79_v18, %v78_v54  ;;  %v108_v36 = vmax.f32 %v106_v26, %v107_v17  ;;  %v129_v3 = vadd.f32 %v2903_v53, %v128_v16  ;;  %v469_v23 = vsub.f32 %v3794_v27, %v6146_v19 }
  0x78   :  { %v161_v1 = vrot.slane %v127_v59, 7  ;;  %v151_v55 = vadd.f32 %v150_v31, %v149_v11  ;;  %v40_v57 = vrot.slane %v39_v28, 2  ;;  %v458_v22 = vand.u32 4294901760, %v457_v37 }
  0x79   :  { %v81_v30 = vrot.slane %v80_v32, 1  ;;  %v109_v5 = vrot.slane %v108_v36, 4  ;;  %v130_v35 = vadd.f32 %v2905_v42, %v129_v3  ;;  %v470_v16 = vand.u32 4294901760, %v469_v23 }
  0x7a   :  { %v170_v15 = vsel %vm168_vm0, %v56_v60, %v161_v1  ;;  %v152_v18 = vrot.slane %v151_v55, 1  ;;  %v41_v17 = vmax.f32 %v39_v28, %v40_v57  ;;  %v61_v21 = vadd.f32 %v60_v45, %v4655_v47 }
  0x7b   :  { %v4704_v53 = vand.u32 4294901760, %v170_v15  ;;  %v82_v49 = vadd.f32 %v81_v30, %v80_v32  ;;  %v110_v54 = vmax.f32 %v108_v36, %v109_v5  ;;  %v131_v59 = vadd.f32 %v2907_v8, %v130_v35 }
  0x7c   :  { %v153_v31 = vadd.f32 %v152_v18, %v151_v55  ;;  %v42_v24 = vrot.slane %v41_v17, 1  ;;  %v4706_v11 = vpack.c.bf16 %v470_v16, %v458_v22  ;;  %v62_v1 = vadd.f32 %v61_v21, %v4660_v9 }
  0x7d   :  { %6583 = vst [vmem:[#allocation195_spill] sm:$0xff] %v4704_v53  ;;  %v4710_v26 = vsub.f32 %v170_v15, %v4704_v53  ;;  %v84_v42 = vmul.f32 0.015625, %v82_v49  ;;  %v111_v3 = vrot.slane %v110_v54, 2  ;;  %v132_v60 = vadd.f32 %v2909_v20, %v131_v59 }
  0x7e   :  { %v155_v37 = vmul.f32 0.015625, %v153_v31  ;;  %v43_v28 = vmax.f32 %v41_v17, %v42_v24  ;;  %v6139_v32 = vand.u32 4294901760, %v3809_v39  ;;  %v6136_v57 = vand.u32 4294901760, %v3811_v40 }
  0x7f   :  { %6584 = vst [vmem:[#allocation196_spill] sm:$0xff] %v4710_v26  ;;  %v6153_v8 = vand.u32 4294901760, %v4710_v26  ;;  %v112_v36 = vmax.f32 %v110_v54, %v111_v3  ;;  %v133_v55 = vadd.f32 %v2911_v14, %v132_v60  ;;  %v63_v47 = vadd.f32 %v62_v1, %v4665_v38 }
  0x80   :  { %v163_v23 = vrot.slane %v155_v37, 7  ;;  %v1741_v45 = vsub.f32 %v3809_v39, %v6139_v32  ;;  %v6143_v20 = vand.u32 4294901760, %v3813_v41  ;;  %v1753_v14 = vsub.f32 %v3811_v40, %v6136_v57  ;;  %v6594_v32 = vld [vmem:[#allocation53_spill] sm:$0xff] }
  0x81   :  { %v434_v9 = vsub.f32 %v4710_v26, %v6153_v8  ;;  %v113_v30 = vrot.slane %v112_v36, 1  ;;  %v134_v5 = vadd.f32 %v2913_v2, %v133_v55  ;;  %v64_v22 = vrot.slane %v63_v47, 4  ;;  %v6602_v8 = vld [vmem:[#allocation65_spill] sm:$0xff] }
  0x82   :  { %v172_v35 = vsel %vm168_vm0, %v84_v42, %v163_v23  ;;  %v1742_v38 = vand.u32 4294901760, %v1741_v45  ;;  %v475_v15 = vsub.f32 %v3813_v41, %v6143_v20  ;;  %v1754_v59 = vand.u32 4294901760, %v1753_v14 }
  0x83   :  { %v435_v18 = vand.u32 4294901760, %v434_v9  ;;  %v4731_v17 = vand.u32 4294901760, %v172_v35  ;;  %v114_v16 = vmax.f32 %v112_v36, %v113_v30  ;;  %v135_v49 = vrot.slane %v134_v5, 4 }
  0x84   :  { %v65_v54 = vadd.f32 %v64_v22, %v63_v47  ;;  %v476_v2 = vand.u32 4294901760, %v475_v15  ;;  %v6142_v31 = vand.u32 4294901760, %v3826_v46  ;;  %v6122_v3 = vand.u32 4294901760, %v3830_v48 }
  0x85   :  { %6585 = vst [vmem:[#allocation197_spill] sm:$0xff] %v4731_v17  ;;  %436 = vmatprep.mubr.f32.mxu1 %v435_v18  ;;  %v4735_v24 = vsub.f32 %v172_v35, %v4731_v17  ;;  %v160_v21 = vrot.slane %v114_v16, 7  ;;  %v136_v42 = vadd.f32 %v135_v49, %v134_v5  ;;  %v4738_v37 = vpack.c.bf16 %v1754_v59, %v1742_v38 }
  0x86   :  { %v66_v60 = vrot.slane %v65_v54, 2  ;;  %v487_v1 = vsub.f32 %v3826_v46, %v6142_v31  ;;  %v6118_v36 = vand.u32 4294901760, %v3836_v50  ;;  %v1759_v45 = vsub.f32 %v3830_v48, %v6122_v3  ;;  %v6595_v31 = vld [vmem:[#allocation54_spill] sm:$0xff] }
  0x87   :  { %6586 = vst [vmem:[#allocation198_spill] sm:$0xff] %v4735_v24  ;;  %v6150_v55 = vand.u32 4294901760, %v4735_v24  ;;  %v169_v23 = vsel %vm168_vm0, %v43_v28, %v160_v21  ;;  %v137_v47 = vrot.slane %v136_v42, 2  ;;  %v6120_v28 = vand.u32 4294901760, %v3838_v52 }
  0x88   :  { %v4749_v9 = vand.u32 4294901760, %v169_v23  ;;  %v67_v30 = vadd.f32 %v66_v60, %v65_v54  ;;  %v488_v5 = vand.u32 4294901760, %v487_v1  ;;  %v1771_v14 = vsub.f32 %v3836_v50, %v6118_v36 }
  0x89   :  { %v1718_v35 = vsub.f32 %v4735_v24, %v6150_v55  ;;  %v138_v22 = vadd.f32 %v137_v47, %v136_v42  ;;  %v1760_v38 = vand.u32 4294901760, %v1759_v45  ;;  %v481_v21 = vsub.f32 %v3838_v52, %v6120_v28 }
  0x8a   :  { %6587 = vst [vmem:[#allocation199_spill] sm:$0xff] %v4749_v9  ;;  %v4759_v15 = vsub.f32 %v169_v23, %v4749_v9  ;;  %v68_v18 = vrot.slane %v67_v30, 1  ;;  %v2986_v16 = vpack.c.bf16 %v488_v5, %v476_v2  ;;  %v1772_v49 = vand.u32 4294901760, %v1771_v14 }
  0x8b   :  { %v1719_v54 = vand.u32 4294901760, %v1718_v35  ;;  %v139_v59 = vrot.slane %v138_v22, 1  ;;  %v6119_v60 = vand.u32 4294901760, %v3850_v61  ;;  %v6121_v45 = vand.u32 4294901760, %v3852_v62 }
  0x8c   :  { %6588 = vst [vmem:[#allocation200_spill] sm:$0xff] %v4759_v15  ;;  %v6132_v1 = vand.u32 4294901760, %v4759_v15  ;;  %v69_v42 = vadd.f32 %v68_v18, %v67_v30  ;;  %v4766_v47 = vpack.c.bf16 %v1772_v49, %v1760_v38  ;;  %v482_v36 = vand.u32 4294901760, %v481_v21 }
  0x8d   :  { %1720 = vmatprep.mubr.f32.mxu0 %v1719_v54  ;;  %v140_v23 = vadd.f32 %v139_v59, %v138_v22  ;;  %v493_v2 = vsub.f32 %v3850_v61, %v6119_v60  ;;  %v6123_v5 = vand.u32 4294901760, %v3865_v4  ;;  %v1765_v30 = vsub.f32 %v3852_v62, %v6121_v45 }
  0x8e   :  { %v440_v14 = vsub.f32 %v4759_v15, %v6132_v1  ;;  %v83_v35 = vmul.f32 0.015625, %v69_v42  ;;  %v6129_v38 = vand.u32 4294901760, %v3869_v6  ;;  %v6126_v54 = vand.u32 4294901760, %v3881_v10 }
  0x8f   :  { %v154_v18 = vmul.f32 0.015625, %v140_v23  ;;  %v494_v22 = vand.u32 4294901760, %v493_v2  ;;  %v1777_v49 = vsub.f32 %v3865_v4, %v6123_v5  ;;  %v1766_v21 = vand.u32 4294901760, %v1765_v30 }
  0x90   :  { %v441_v59 = vand.u32 4294901760, %v440_v14  ;;  %v499_v42 = vsub.f32 %v3869_v6, %v6129_v38  ;;  %v6124_v60 = vand.u32 4294901760, %v3885_v12  ;;  %v511_v23 = vsub.f32 %v3881_v10, %v6126_v54 }
  0x91   :  { %v162_v28 = vrot.slane %v154_v18, 7  ;;  %v2988_v45 = vpack.c.bf16 %v494_v22, %v482_v36  ;;  %v1778_v3 = vand.u32 4294901760, %v1777_v49  ;;  %v6125_v30 = vand.u32 4294901760, %v3887_v13 }
  0x92   :  { %442 = vmatmul.mubr.f32.vlgmr.msra.gmra.mrb[0].mxu1 %v441_v59  ;;  %v500_v2 = vand.u32 4294901760, %v499_v42  ;;  %v1783_v14 = vsub.f32 %v3885_v12, %v6124_v60  ;;  %v6128_v5 = vand.u32 4294901760, %v3897_v33  ;;  %v512_v22 = vand.u32 4294901760, %v511_v23 }
  0x93   :  { %2985 = vmatpush1.bf16.msra.mxu1 %v4706_v11  ;;  %v171_v18 = vsel %vm168_vm0, %v83_v35, %v162_v28  ;;  %v4798_v36 = vpack.c.bf16 %v1778_v3, %v1766_v21  ;;  %v6127_v49 = vand.u32 4294901760, %v3899_v34  ;;  %833 = vmatprep.mubr.f32.mxu1 %v4704_v53  ;;  %v1795_v60 = vsub.f32 %v3887_v13, %v6125_v30 }
  0x94   :  { %v4802_v59 = vand.u32 4294901760, %v171_v18  ;;  %2987 = vmatprep.subr.bf16.mxu1 %v2986_v16  ;;  %v1784_v42 = vand.u32 4294901760, %v1783_v14  ;;  %v505_v11 = vsub.f32 %v3897_v33, %v6128_v5  ;;  %v2990_v28 = vpack.c.bf16 %v512_v22, %v500_v2 }
  0x95   :  { %v517_v3 = vsub.f32 %v3899_v34, %v6127_v49  ;;  %v6130_v35 = vand.u32 4294901760, %v3912_v43  ;;  %v6131_v21 = vand.u32 4294901760, %v3914_v44  ;;  %v1796_v23 = vand.u32 4294901760, %v1795_v60 }
  0x96   :  { %6589 = vst [vmem:[#allocation201_spill] sm:$0xff] %v4802_v59  ;;  %v4816_v16 = vsub.f32 %v171_v18, %v4802_v59  ;;  %v506_v14 = vand.u32 4294901760, %v505_v11  ;;  %v6134_v30 = vand.u32 4294901760, %v3918_v51  ;;  %v6133_v49 = vand.u32 4294901760, %v3931_v56 }
  0x97   :  { %2989 = vmatpush1.bf16.msra.mxu1 %v2988_v45  ;;  %v518_v54 = vand.u32 4294901760, %v517_v3  ;;  %v1789_v2 = vsub.f32 %v3912_v43, %v6130_v35  ;;  %v1801_v22 = vsub.f32 %v3914_v44, %v6131_v21  ;;  %v3374_v18 = vpack.c.bf16 %v1796_v23, %v1784_v42 }
  0x98   :  { %6590 = vst [vmem:[#allocation202_spill] sm:$0xff] %v4816_v16  ;;  %v6135_v5 = vand.u32 4294901760, %v4816_v16  ;;  %2991 = vmatprep.subr.bf16.mxu1 %v2990_v28  ;;  %v523_v60 = vsub.f32 %v3918_v51, %v6134_v30  ;;  %v6137_v45 = vand.u32 4294901760, %v3935_v58  ;;  %v535_v35 = vsub.f32 %v3931_v56, %v6133_v49 }
  0x99   :  { %v2992_v11 = vpack.c.bf16 %v518_v54, %v506_v14  ;;  %v1790_v3 = vand.u32 4294901760, %v1789_v2  ;;  %v1802_v38 = vand.u32 4294901760, %v1801_v22  ;;  %v6138_v28 = vand.u32 4294901760, %v3938_v63 }
  0x9a   :  { %v1724_v21 = vsub.f32 %v4816_v16, %v6135_v5  ;;  %v524_v1 = vand.u32 4294901760, %v523_v60  ;;  %v1807_v42 = vsub.f32 %v3935_v58, %v6137_v45  ;;  %v536_v54 = vand.u32 4294901760, %v535_v35  ;;  %v6591_v60 = vld [vmem:[#allocation49_spill] sm:$0xff]  ;;  %v6592_v35 = vld [vmem:[#allocation50_spill] sm:$0xff] }
  0x9b   :  { %2993 = vmatpush1.bf16.msra.mxu1 %v2992_v11  ;;  %v3376_v23 = vpack.c.bf16 %v1802_v38, %v1790_v3  ;;  %v6140_v14 = vand.u32 4294901760, %v3944_v7  ;;  %v6141_v2 = vand.u32 4294901760, %v3957_v29  ;;  %v1819_v30 = vsub.f32 %v3938_v63, %v6138_v28 }
  0x9c   :  { %v1725_v22 = vand.u32 4294901760, %v1724_v21  ;;  %v1808_v49 = vand.u32 4294901760, %v1807_v42  ;;  %v6144_v5 = vand.u32 4294901760, %v6591_v60  ;;  %v2994_v57 = vpack.c.bf16 %v536_v54, %v524_v1  ;;  %v6593_v42 = vld [vmem:[#allocation52_spill] sm:$0xff] }
  0x9d   :  { %v529_v45 = vsub.f32 %v3944_v7, %v6140_v14  ;;  %v541_v38 = vsub.f32 %v3957_v29, %v6141_v2  ;;  %v6145_v11 = vand.u32 4294901760, %v6592_v35  ;;  %v1820_v21 = vand.u32 4294901760, %v1819_v30 }
  0x9e   :  { %1726 = vmatmul.mubr.f32.vlgmr.msra.gmra.mrb[0].mxu0 %v1725_v22  ;;  %v1813_v3 = vsub.f32 %v6591_v60, %v6144_v5  ;;  %v6148_v28 = vand.u32 4294901760, %v6593_v42  ;;  %v6149_v1 = vand.u32 4294901760, %v6594_v32  ;;  %2995 = vmatprep.subr.bf16.mxu1 %v2994_v57  ;;  %v6151_v22 = vand.u32 4294901760, %v6595_v31 }
  0x9f   :  { %3369 = vmatpush1.bf16.msra.mxu0 %v4738_v37  ;;  %v530_v54 = vand.u32 4294901760, %v529_v45  ;;  %v542_v14 = vand.u32 4294901760, %v541_v38  ;;  %v1825_v2 = vsub.f32 %v6592_v35, %v6145_v11  ;;  %v3378_v30 = vpack.c.bf16 %v1820_v21, %v1808_v49  ;;  %2117 = vmatprep.mubr.f32.mxu0 %v4731_v17  ;;  %v6596_v11 = vld [vmem:[#allocation56_spill] sm:$0xff]  ;;  %v6603_v17 = vld [vmem:[#allocation66_spill] sm:$0xff] }
  0xa0   :  { %3371 = vmatprep.subr.bf16.mxu0 %v4766_v47  ;;  %v1814_v20 = vand.u32 4294901760, %v1813_v3  ;;  %v547_v5 = vsub.f32 %v6593_v42, %v6148_v28  ;;  %v559_v57 = vsub.f32 %v6594_v32, %v6149_v1  ;;  %v1831_v38 = vsub.f32 %v6595_v31, %v6151_v22  ;;  %v6597_v3 = vld [vmem:[#allocation58_spill] sm:$0xff] }
  0xa1   :  { %v2996_v37 = vpack.c.bf16 %v542_v14, %v530_v54  ;;  %v1826_v45 = vand.u32 4294901760, %v1825_v2  ;;  %v6152_v47 = vand.u32 4294901760, %v6596_v11  ;;  %v6154_v19 = vand.u32 4294901760, %v6597_v3  ;;  %v6599_v2 = vld [vmem:[#allocation61_spill] sm:$0xff] }
  0xa2   :  { %v548_v49 = vand.u32 4294901760, %v547_v5  ;;  %v560_v21 = vand.u32 4294901760, %v559_v57  ;;  %v6157_v28 = vand.u32 4294901760, %v6598_v0  ;;  %v1832_v55 = vand.u32 4294901760, %v1831_v38  ;;  %v6601_v38 = vld [vmem:[#allocation64_spill] sm:$0xff] }
  0xa3   :  { %3373 = vmatpush1.bf16.msra.mxu0 %v4798_v36  ;;  %2997 = vmatpush1.bf16.msra.mxu1 %v2996_v37  ;;  %v3380_v1 = vpack.c.bf16 %v1826_v45, %v1814_v20  ;;  %v1843_v14 = vsub.f32 %v6596_v11, %v6152_v47  ;;  %v6160_v54 = vand.u32 4294901760, %v6599_v2  ;;  %v553_v5 = vsub.f32 %v6597_v3, %v6154_v19  ;;  %v6600_v36 = vld [vmem:[#allocation62_spill] sm:$0xff] }
  0xa4   :  { %3375 = vmatprep.subr.bf16.mxu0 %v3374_v18  ;;  %v2998_v22 = vpack.c.bf16 %v560_v21, %v548_v49  ;;  %v565_v57 = vsub.f32 %v6598_v0, %v6157_v28  ;;  %v6163_v37 = vand.u32 4294901760, %v6600_v36  ;;  %v6168_v47 = vand.u32 4294901760, %v6601_v38  ;;  %v6638_v0 = vld [vmem:[#allocation119_spill] sm:$0xff] }
  0xa5   :  { %v1844_v20 = vand.u32 4294901760, %v1843_v14  ;;  %v1837_v45 = vsub.f32 %v6599_v2, %v6160_v54  ;;  %v6172_v18 = vand.u32 4294901760, %v6602_v8  ;;  %v554_v49 = vand.u32 4294901760, %v553_v5 }
  0xa6   :  { %2999 = vmatprep.subr.bf16.mxu1 %v2998_v22  ;;  %v566_v21 = vand.u32 4294901760, %v565_v57  ;;  %v1849_v19 = vsub.f32 %v6600_v36, %v6163_v37  ;;  %v6170_v28 = vand.u32 4294901760, %v6603_v17  ;;  %v571_v54 = vsub.f32 %v6601_v38, %v6168_v47  ;;  %v6604_v37 = vld [vmem:[#allocation68_spill] sm:$0xff]  ;;  %v6606_v36 = vld [vmem:[#allocation71_spill] sm:$0xff] }
  0xa7   :  { %3377 = vmatpush1.bf16.msra.mxu0 %v3376_v23  ;;  %v3382_v53 = vpack.c.bf16 %v1844_v20, %v1832_v55  ;;  %v1838_v14 = vand.u32 4294901760, %v1837_v45  ;;  %v583_v16 = vsub.f32 %v6602_v8, %v6172_v18  ;;  %v6171_v15 = vand.u32 4294901760, %v6604_v37  ;;  %v6605_v20 = vld [vmem:[#allocation70_spill] sm:$0xff] }
  0xa8   :  { %3379 = vmatprep.subr.bf16.mxu0 %v3378_v30  ;;  %v3000_v22 = vpack.c.bf16 %v566_v21, %v554_v49  ;;  %v1850_v5 = vand.u32 4294901760, %v1849_v19  ;;  %v1855_v57 = vsub.f32 %v6603_v17, %v6170_v28  ;;  %v572_v23 = vand.u32 4294901760, %v571_v54  ;;  %v6607_v19 = vld [vmem:[#allocation73_spill] sm:$0xff]  ;;  %v6608_v28 = vld [vmem:[#allocation74_spill] sm:$0xff] }
  0xa9   :  { %v584_v55 = vand.u32 4294901760, %v583_v16  ;;  %v6173_v45 = vand.u32 4294901760, %v6605_v20  ;;  %v6174_v2 = vand.u32 4294901760, %v6606_v36  ;;  %v1867_v30 = vsub.f32 %v6604_v37, %v6171_v15  ;;  %v6614_v37 = vld [vmem:[#allocation83_spill] sm:$0xff] }
  0xaa   :  { %3001 = vmatpush1.bf16.msra.mxu1 %v3000_v22  ;;  %v3384_v47 = vpack.c.bf16 %v1850_v5, %v1838_v14  ;;  %v1856_v38 = vand.u32 4294901760, %v1855_v57  ;;  %v6177_v49 = vand.u32 4294901760, %v6607_v19  ;;  %v6178_v22 = vand.u32 4294901760, %v6608_v28  ;;  %v6609_v57 = vld [vmem:[#allocation76_spill] sm:$0xff] }
  0xab   :  { %3381 = vmatpush1.bf16.msra.mxu0 %v3380_v1  ;;  %v3002_v21 = vpack.c.bf16 %v584_v55, %v572_v23  ;;  %v577_v54 = vsub.f32 %v6605_v20, %v6173_v45  ;;  %v589_v16 = vsub.f32 %v6606_v36, %v6174_v2  ;;  %v1868_v14 = vand.u32 4294901760, %v1867_v30  ;;  %v6610_v1 = vld [vmem:[#allocation77_spill] sm:$0xff]  ;;  %v6611_v2 = vld [vmem:[#allocation78_spill] sm:$0xff] }
  0xac   :  { %3383 = vmatprep.subr.bf16.mxu0 %v3382_v53  ;;  %v1861_v5 = vsub.f32 %v6607_v19, %v6177_v49  ;;  %v6182_v15 = vand.u32 4294901760, %v6609_v57  ;;  %v6187_v23 = vand.u32 4294901760, %v6610_v1  ;;  %v1873_v45 = vsub.f32 %v6608_v28, %v6178_v22  ;;  %v6612_v22 = vld [vmem:[#allocation80_spill] sm:$0xff] }
  0xad   :  { %3003 = vmatprep.subr.bf16.mxu1 %v3002_v21  ;;  %v578_v55 = vand.u32 4294901760, %v577_v54  ;;  %v590_v18 = vand.u32 4294901760, %v589_v16  ;;  %v6185_v36 = vand.u32 4294901760, %v6611_v2  ;;  %v3386_v20 = vpack.c.bf16 %v1868_v14, %v1856_v38 }
  0xae   :  { %v1862_v53 = vand.u32 4294901760, %v1861_v5  ;;  %v595_v30 = vsub.f32 %v6609_v57, %v6182_v15  ;;  %v607_v49 = vsub.f32 %v6610_v1, %v6187_v23  ;;  %v1874_v54 = vand.u32 4294901760, %v1873_v45  ;;  %v6613_v5 = vld [vmem:[#allocation82_spill] sm:$0xff] }
  0xaf   :  { %3385 = vmatpush1.bf16.msra.mxu0 %v3384_v47  ;;  %v3004_v21 = vpack.c.bf16 %v590_v18, %v578_v55  ;;  %v1879_v16 = vsub.f32 %v6611_v2, %v6185_v36  ;;  %v6186_v28 = vand.u32 4294901760, %v6612_v22  ;;  %v6188_v19 = vand.u32 4294901760, %v6613_v5  ;;  %v6615_v18 = vld [vmem:[#allocation85_spill] sm:$0xff] }
  0xb0   :  { %3387 = vmatprep.subr.bf16.mxu0 %v3386_v20  ;;  %v596_v38 = vand.u32 4294901760, %v595_v30  ;;  %v608_v14 = vand.u32 4294901760, %v607_v49  ;;  %v6189_v15 = vand.u32 4294901760, %v6614_v37  ;;  %v3388_v57 = vpack.c.bf16 %v1874_v54, %v1862_v53  ;;  %v6616_v30 = vld [vmem:[#allocation86_spill] sm:$0xff]  ;;  %v6617_v54 = vld [vmem:[#allocation88_spill] sm:$0xff] }
  0xb1   :  { %3005 = vmatpush1.bf16.msra.mxu1 %v3004_v21  ;;  %v1880_v17 = vand.u32 4294901760, %v1879_v16  ;;  %v1891_v47 = vsub.f32 %v6612_v22, %v6186_v28  ;;  %v6192_v45 = vand.u32 4294901760, %v6615_v18  ;;  %v601_v20 = vsub.f32 %v6613_v5, %v6188_v19  ;;  %v6618_v28 = vld [vmem:[#allocation89_spill] sm:$0xff]  ;;  %v6622_v22 = vld [vmem:[#allocation95_spill] sm:$0xff] }
  0xb2   :  { %v3006_v55 = vpack.c.bf16 %v608_v14, %v596_v38  ;;  %v613_v49 = vsub.f32 %v6614_v37, %v6189_v15  ;;  %v6194_v36 = vand.u32 4294901760, %v6616_v30  ;;  %v6198_v16 = vand.u32 4294901760, %v6617_v54  ;;  %v6619_v15 = vld [vmem:[#allocation90_spill] sm:$0xff] }
  0xb3   :  { %3389 = vmatpush1.bf16.msra.mxu0 %v3388_v57  ;;  %v1892_v53 = vand.u32 4294901760, %v1891_v47  ;;  %v1885_v21 = vsub.f32 %v6615_v18, %v6192_v45  ;;  %v6200_v38 = vand.u32 4294901760, %v6618_v28  ;;  %v602_v14 = vand.u32 4294901760, %v601_v20 }
  0xb4   :  { %3007 = vmatprep.subr.bf16.mxu1 %v3006_v55  ;;  %v614_v23 = vand.u32 4294901760, %v613_v49  ;;  %v1897_v19 = vsub.f32 %v6616_v30, %v6194_v36  ;;  %v6201_v37 = vand.u32 4294901760, %v6619_v15  ;;  %v619_v47 = vsub.f32 %v6617_v54, %v6198_v16  ;;  %v6620_v49 = vld [vmem:[#allocation92_spill] sm:$0xff] }
  0xb5   :  { %v3390_v5 = vpack.c.bf16 %v1892_v53, %v1880_v17  ;;  %v1886_v57 = vand.u32 4294901760, %v1885_v21  ;;  %v631_v45 = vsub.f32 %v6618_v28, %v6200_v38  ;;  %v6202_v36 = vand.u32 4294901760, %v6620_v49  ;;  %v6621_v53 = vld [vmem:[#allocation94_spill] sm:$0xff] }
  0xb6   :  { %v3008_v18 = vpack.c.bf16 %v614_v23, %v602_v14  ;;  %v1898_v55 = vand.u32 4294901760, %v1897_v19  ;;  %v1903_v20 = vsub.f32 %v6619_v15, %v6201_v37  ;;  %v620_v30 = vand.u32 4294901760, %v619_v47  ;;  %v6623_v23 = vld [vmem:[#allocation97_spill] sm:$0xff]  ;;  %v6624_v47 = vld [vmem:[#allocation98_spill] sm:$0xff]  ;;  %v6630_v15 = vld [vmem:[#allocation107_spill] sm:$0xff] }
  0xb7   :  { %3391 = vmatprep.subr.bf16.mxu0 %v3390_v5  ;;  %v632_v17 = vand.u32 4294901760, %v631_v45  ;;  %v6204_v21 = vand.u32 4294901760, %v6621_v53  ;;  %v6205_v2 = vand.u32 4294901760, %v6622_v22  ;;  %v1915_v19 = vsub.f32 %v6620_v49, %v6202_v36  ;;  %v6626_v36 = vld [vmem:[#allocation101_spill] sm:$0xff] }
  0xb8   :  { %3009 = vmatpush1.bf16.msra.mxu1 %v3008_v18  ;;  %v3392_v16 = vpack.c.bf16 %v1898_v55, %v1886_v57  ;;  %v1904_v54 = vand.u32 4294901760, %v1903_v20  ;;  %v6208_v14 = vand.u32 4294901760, %v6623_v23  ;;  %v6210_v37 = vand.u32 4294901760, %v6624_v47  ;;  %v6625_v55 = vld [vmem:[#allocation100_spill] sm:$0xff] }
  0xb9   :  { %v3010_v38 = vpack.c.bf16 %v632_v17, %v620_v30  ;;  %v625_v5 = vsub.f32 %v6621_v53, %v6204_v21  ;;  %v637_v45 = vsub.f32 %v6622_v22, %v6205_v2  ;;  %v1916_v18 = vand.u32 4294901760, %v1915_v19  ;;  %v6627_v2 = vld [vmem:[#allocation102_spill] sm:$0xff] }
  0xba   :  { %3393 = vmatpush1.bf16.msra.mxu0 %v3392_v16  ;;  %v1909_v57 = vsub.f32 %v6623_v23, %v6208_v14  ;;  %v6214_v20 = vand.u32 4294901760, %v6625_v55  ;;  %v6216_v30 = vand.u32 4294901760, %v6626_v36  ;;  %v1921_v21 = vsub.f32 %v6624_v47, %v6210_v37 }
  0xbb   :  { %3011 = vmatprep.subr.bf16.mxu1 %v3010_v38  ;;  %v626_v17 = vand.u32 4294901760, %v625_v5  ;;  %v638_v49 = vand.u32 4294901760, %v637_v45  ;;  %v6217_v22 = vand.u32 4294901760, %v6627_v2  ;;  %v3394_v53 = vpack.c.bf16 %v1916_v18, %v1904_v54  ;;  %v6628_v45 = vld [vmem:[#allocation104_spill] sm:$0xff]  ;;  %v6629_v18 = vld [vmem:[#allocation106_spill] sm:$0xff] }
  0xbc   :  { %v1910_v16 = vand.u32 4294901760, %v1909_v57  ;;  %v643_v19 = vsub.f32 %v6625_v55, %v6214_v20  ;;  %v655_v14 = vsub.f32 %v6626_v36, %v6216_v30  ;;  %v1922_v38 = vand.u32 4294901760, %v1921_v21  ;;  %v6631_v21 = vld [vmem:[#allocation109_spill] sm:$0xff] }
  0xbd   :  { %v3012_v23 = vpack.c.bf16 %v638_v49, %v626_v17  ;;  %v1927_v5 = vsub.f32 %v6627_v2, %v6217_v22  ;;  %v6218_v37 = vand.u32 4294901760, %v6628_v45  ;;  %3395 = vmatprep.subr.bf16.mxu0 %v3394_v53  ;;  %v6220_v57 = vand.u32 4294901760, %v6629_v18 }
  0xbe   :  { %v644_v47 = vand.u32 4294901760, %v643_v19  ;;  %v656_v54 = vand.u32 4294901760, %v655_v14  ;;  %v6221_v28 = vand.u32 4294901760, %v6630_v15  ;;  %v3396_v20 = vpack.c.bf16 %v1922_v38, %v1910_v16  ;;  %v6632_v19 = vld [vmem:[#allocation110_spill] sm:$0xff]  ;;  %v6633_v38 = vld [vmem:[#allocation112_spill] sm:$0xff] }
  0xbf   :  { %3013 = vmatpush1.bf16.msra.mxu1 %v3012_v23  ;;  %v1928_v55 = vand.u32 4294901760, %v1927_v5  ;;  %v1939_v49 = vsub.f32 %v6628_v45, %v6218_v37  ;;  %v6224_v17 = vand.u32 4294901760, %v6631_v21  ;;  %v649_v53 = vsub.f32 %v6629_v18, %v6220_v57  ;;  %v6634_v37 = vld [vmem:[#allocation113_spill] sm:$0xff] }
  0xc0   :  { %v3014_v30 = vpack.c.bf16 %v656_v54, %v644_v47  ;;  %v661_v14 = vsub.f32 %v6630_v15, %v6221_v28  ;;  %v6226_v22 = vand.u32 4294901760, %v6632_v19  ;;  %3397 = vmatpush1.bf16.msra.mxu0 %v3396_v20  ;;  %v6230_v5 = vand.u32 4294901760, %v6633_v38  ;;  %v6635_v28 = vld [vmem:[#allocation114_spill] sm:$0xff] }
  0xc1   :  { %v1940_v23 = vand.u32 4294901760, %v1939_v49  ;;  %v1933_v16 = vsub.f32 %v6631_v21, %v6224_v17  ;;  %v6233_v47 = vand.u32 4294901760, %v6634_v37  ;;  %v650_v54 = vand.u32 4294901760, %v649_v53 }
  0xc2   :  { %3015 = vmatprep.subr.bf16.mxu1 %v3014_v30  ;;  %v662_v45 = vand.u32 4294901760, %v661_v14  ;;  %v1945_v57 = vsub.f32 %v6632_v19, %v6226_v22  ;;  %v6234_v2 = vand.u32 4294901760, %v6635_v28  ;;  %v667_v49 = vsub.f32 %v6633_v38, %v6230_v5  ;;  %v6636_v14 = vld [vmem:[#allocation116_spill] sm:$0xff] }
  0xc3   :  { %v3398_v36 = vpack.c.bf16 %v1940_v23, %v1928_v55  ;;  %v1934_v20 = vand.u32 4294901760, %v1933_v16  ;;  %v679_v17 = vsub.f32 %v6634_v37, %v6233_v47  ;;  %v6235_v22 = vand.u32 4294901760, %v6636_v14  ;;  %v6637_v23 = vld [vmem:[#allocation118_spill] sm:$0xff] }
  0xc4   :  { %v3016_v1 = vpack.c.bf16 %v662_v45, %v650_v54  ;;  %v1946_v30 = vand.u32 4294901760, %v1945_v57  ;;  %v1951_v53 = vsub.f32 %v6635_v28, %v6234_v2  ;;  %v668_v8 = vand.u32 4294901760, %v667_v49  ;;  %v6639_v57 = vld [vmem:[#allocation121_spill] sm:$0xff]  ;;  %v6640_v49 = vld [vmem:[#allocation122_spill] sm:$0xff] }
  0xc5   :  { %3399 = vmatprep.subr.bf16.mxu0 %v3398_v36  ;;  %v680_v55 = vand.u32 4294901760, %v679_v17  ;;  %v6237_v16 = vand.u32 4294901760, %v6637_v23  ;;  %v6238_v3 = vand.u32 4294901760, %v6638_v0  ;;  %v1963_v45 = vsub.f32 %v6636_v14, %v6235_v22  ;;  %v6642_v22 = vld [vmem:[#allocation125_spill] sm:$0xff] }
  0xc6   :  { %3017 = vmatpush1.bf16.msra.mxu1 %v3016_v1  ;;  %v3400_v5 = vpack.c.bf16 %v1946_v30, %v1934_v20  ;;  %v1952_v24 = vand.u32 4294901760, %v1951_v53  ;;  %v6242_v54 = vand.u32 4294901760, %v6639_v57  ;;  %v6244_v2 = vand.u32 4294901760, %v6640_v49  ;;  %v6641_v30 = vld [vmem:[#allocation124_spill] sm:$0xff] }
  0xc7   :  { %v3018_v47 = vpack.c.bf16 %v680_v55, %v668_v8  ;;  %v673_v36 = vsub.f32 %v6637_v23, %v6237_v16  ;;  %v685_v17 = vsub.f32 %v6638_v0, %v6238_v3  ;;  %v1964_v1 = vand.u32 4294901760, %v1963_v45  ;;  %v6643_v3 = vld [vmem:[#allocation126_spill] sm:$0xff] }
  0xc8   :  { %3401 = vmatpush1.bf16.msra.mxu0 %v3400_v5  ;;  %v1957_v20 = vsub.f32 %v6639_v57, %v6242_v54  ;;  %v6248_v53 = vand.u32 4294901760, %v6641_v30  ;;  %v6250_v8 = vand.u32 4294901760, %v6642_v22  ;;  %v1969_v16 = vsub.f32 %v6640_v49, %v6244_v2  ;;  %v6646_v49 = vld [vmem:[#allocation131_spill] sm:$0xff] }
  0xc9   :  { %3019 = vmatprep.subr.bf16.mxu1 %v3018_v47  ;;  %v674_v55 = vand.u32 4294901760, %v673_v36  ;;  %v686_v11 = vand.u32 4294901760, %v685_v17  ;;  %v6251_v31 = vand.u32 4294901760, %v6643_v3  ;;  %v3402_v26 = vpack.c.bf16 %v1964_v1, %v1952_v24  ;;  %v6644_v17 = vld [vmem:[#allocation128_spill] sm:$0xff]  ;;  %v6645_v1 = vld [vmem:[#allocation130_spill] sm:$0xff] }
  0xca   :  { %v1958_v5 = vand.u32 4294901760, %v1957_v20  ;;  %v691_v45 = vsub.f32 %v6641_v30, %v6248_v53  ;;  %v703_v54 = vsub.f32 %v6642_v22, %v6250_v8  ;;  %v1970_v47 = vand.u32 4294901760, %v1969_v16  ;;  %v6647_v16 = vld [vmem:[#allocation133_spill] sm:$0xff] }
  0xcb   :  { %v3020_v35 = vpack.c.bf16 %v686_v11, %v674_v55  ;;  %v1975_v36 = vsub.f32 %v6643_v3, %v6251_v31  ;;  %v6252_v2 = vand.u32 4294901760, %v6644_v17  ;;  %3403 = vmatprep.subr.bf16.mxu0 %v3402_v26  ;;  %v6254_v20 = vand.u32 4294901760, %v6645_v1  ;;  %v6654_v3 = vld [vmem:[#allocation143_spill] sm:$0xff] }
  0xcc   :  { %v692_v60 = vand.u32 4294901760, %v691_v45  ;;  %v704_v24 = vand.u32 4294901760, %v703_v54  ;;  %v6255_v57 = vand.u32 4294901760, %v6646_v49  ;;  %v3404_v53 = vpack.c.bf16 %v1970_v47, %v1958_v5  ;;  %v6648_v45 = vld [vmem:[#allocation134_spill] sm:$0xff]  ;;  %v6649_v47 = vld [vmem:[#allocation136_spill] sm:$0xff] }
  0xcd   :  { %3021 = vmatpush1.bf16.msra.mxu1 %v3020_v35  ;;  %v1976_v30 = vand.u32 4294901760, %v1975_v36  ;;  %v1987_v11 = vsub.f32 %v6644_v17, %v6252_v2  ;;  %v6258_v55 = vand.u32 4294901760, %v6647_v16  ;;  %v697_v26 = vsub.f32 %v6645_v1, %v6254_v20  ;;  %v6650_v2 = vld [vmem:[#allocation137_spill] sm:$0xff] }
  0xce   :  { %v3022_v8 = vpack.c.bf16 %v704_v24, %v692_v60  ;;  %v709_v54 = vsub.f32 %v6646_v49, %v6255_v57  ;;  %v6260_v31 = vand.u32 4294901760, %v6648_v45  ;;  %3405 = vmatpush1.bf16.msra.mxu0 %v3404_v53  ;;  %v6264_v36 = vand.u32 4294901760, %v6649_v47  ;;  %v6651_v57 = vld [vmem:[#allocation138_spill] sm:$0xff] }
  0xcf   :  { %v1988_v35 = vand.u32 4294901760, %v1987_v11  ;;  %v1981_v5 = vsub.f32 %v6647_v16, %v6258_v55  ;;  %v6266_v60 = vand.u32 4294901760, %v6650_v2  ;;  %v698_v24 = vand.u32 4294901760, %v697_v26 }
  0xd0   :  { %3023 = vmatprep.subr.bf16.mxu1 %v3022_v8  ;;  %v710_v17 = vand.u32 4294901760, %v709_v54  ;;  %v1993_v20 = vsub.f32 %v6648_v45, %v6260_v31  ;;  %v6267_v49 = vand.u32 4294901760, %v6651_v57  ;;  %v715_v11 = vsub.f32 %v6649_v47, %v6264_v36  ;;  %v6652_v54 = vld [vmem:[#allocation140_spill] sm:$0xff] }
  0xd1   :  { %v3406_v1 = vpack.c.bf16 %v1988_v35, %v1976_v30  ;;  %v1982_v53 = vand.u32 4294901760, %v1981_v5  ;;  %v727_v55 = vsub.f32 %v6650_v2, %v6266_v60  ;;  %v6268_v31 = vand.u32 4294901760, %v6652_v54  ;;  %v6653_v35 = vld [vmem:[#allocation142_spill] sm:$0xff] }
  0xd2   :  { %v3024_v16 = vpack.c.bf16 %v710_v17, %v698_v24  ;;  %v1994_v8 = vand.u32 4294901760, %v1993_v20  ;;  %v1999_v26 = vsub.f32 %v6651_v57, %v6267_v49  ;;  %v716_v45 = vand.u32 4294901760, %v715_v11  ;;  %v6655_v20 = vld [vmem:[#allocation145_spill] sm:$0xff]  ;;  %v6656_v11 = vld [vmem:[#allocation146_spill] sm:$0xff]  ;;  %v6662_v57 = vld [vmem:[#allocation155_spill] sm:$0xff] }
  0xd3   :  { %3407 = vmatprep.subr.bf16.mxu0 %v3406_v1  ;;  %v728_v30 = vand.u32 4294901760, %v727_v55  ;;  %v6270_v5 = vand.u32 4294901760, %v6653_v35  ;;  %v6271_v22 = vand.u32 4294901760, %v6654_v3  ;;  %v2011_v17 = vsub.f32 %v6652_v54, %v6268_v31  ;;  %v6658_v31 = vld [vmem:[#allocation149_spill] sm:$0xff] }
  0xd4   :  { %3025 = vmatpush1.bf16.msra.mxu1 %v3024_v16  ;;  %v3408_v36 = vpack.c.bf16 %v1994_v8, %v1982_v53  ;;  %v2000_v47 = vand.u32 4294901760, %v1999_v26  ;;  %v6274_v24 = vand.u32 4294901760, %v6655_v20  ;;  %v6276_v49 = vand.u32 4294901760, %v6656_v11  ;;  %v6657_v8 = vld [vmem:[#allocation148_spill] sm:$0xff] }
  0xd5   :  { %v3026_v60 = vpack.c.bf16 %v728_v30, %v716_v45  ;;  %v721_v1 = vsub.f32 %v6653_v35, %v6270_v5  ;;  %v733_v55 = vsub.f32 %v6654_v3, %v6271_v22  ;;  %v2012_v16 = vand.u32 4294901760, %v2011_v17  ;;  %v6659_v22 = vld [vmem:[#allocation150_spill] sm:$0xff] }
  0xd6   :  { %3409 = vmatpush1.bf16.msra.mxu0 %v3408_v36  ;;  %v2005_v53 = vsub.f32 %v6655_v20, %v6274_v24  ;;  %v6280_v26 = vand.u32 4294901760, %v6657_v8  ;;  %v6282_v45 = vand.u32 4294901760, %v6658_v31  ;;  %v2017_v5 = vsub.f32 %v6656_v11, %v6276_v49 }
  0xd7   :  { %3027 = vmatprep.subr.bf16.mxu1 %v3026_v60  ;;  %v722_v30 = vand.u32 4294901760, %v721_v1  ;;  %v734_v54 = vand.u32 4294901760, %v733_v55  ;;  %v6283_v3 = vand.u32 4294901760, %v6659_v22  ;;  %v3410_v35 = vpack.c.bf16 %v2012_v16, %v2000_v47  ;;  %v6660_v55 = vld [vmem:[#allocation152_spill] sm:$0xff]  ;;  %v6661_v16 = vld [vmem:[#allocation154_spill] sm:$0xff] }
  0xd8   :  { %v2006_v36 = vand.u32 4294901760, %v2005_v53  ;;  %v739_v17 = vsub.f32 %v6657_v8, %v6280_v26  ;;  %v751_v24 = vsub.f32 %v6658_v31, %v6282_v45  ;;  %v2018_v60 = vand.u32 4294901760, %v2017_v5  ;;  %v6663_v5 = vld [vmem:[#allocation157_spill] sm:$0xff] }
  0xd9   :  { %v3028_v20 = vpack.c.bf16 %v734_v54, %v722_v30  ;;  %v2023_v1 = vsub.f32 %v6659_v22, %v6283_v3  ;;  %v6284_v49 = vand.u32 4294901760, %v6660_v55  ;;  %3411 = vmatprep.subr.bf16.mxu0 %v3410_v35  ;;  %v6286_v53 = vand.u32 4294901760, %v6661_v16  ;;  %v6670_v22 = vld [vmem:[#allocation167_spill] sm:$0xff] }
  0xda   :  { %v740_v11 = vand.u32 4294901760, %v739_v17  ;;  %v752_v47 = vand.u32 4294901760, %v751_v24  ;;  %v6287_v2 = vand.u32 4294901760, %v6662_v57  ;;  %v3412_v26 = vpack.c.bf16 %v2018_v60, %v2006_v36  ;;  %v6664_v17 = vld [vmem:[#allocation158_spill] sm:$0xff]  ;;  %v6665_v60 = vld [vmem:[#allocation160_spill] sm:$0xff] }
  0xdb   :  { %3029 = vmatpush1.bf16.msra.mxu1 %v3028_v20  ;;  %v2024_v8 = vand.u32 4294901760, %v2023_v1  ;;  %v2035_v54 = vsub.f32 %v6660_v55, %v6284_v49  ;;  %v6290_v30 = vand.u32 4294901760, %v6663_v5  ;;  %v745_v35 = vsub.f32 %v6661_v16, %v6286_v53  ;;  %v6666_v49 = vld [vmem:[#allocation161_spill] sm:$0xff] }
  0xdc   :  { %v3030_v45 = vpack.c.bf16 %v752_v47, %v740_v11  ;;  %v757_v24 = vsub.f32 %v6662_v57, %v6287_v2  ;;  %v6292_v3 = vand.u32 4294901760, %v6664_v17  ;;  %3413 = vmatpush1.bf16.msra.mxu0 %v3412_v26  ;;  %v6296_v1 = vand.u32 4294901760, %v6665_v60  ;;  %v6667_v2 = vld [vmem:[#allocation162_spill] sm:$0xff] }
  0xdd   :  { %v2036_v20 = vand.u32 4294901760, %v2035_v54  ;;  %v2029_v36 = vsub.f32 %v6663_v5, %v6290_v30  ;;  %v6298_v11 = vand.u32 4294901760, %v6666_v49  ;;  %v746_v47 = vand.u32 4294901760, %v745_v35 }
  0xde   :  { %3031 = vmatprep.subr.bf16.mxu1 %v3030_v45  ;;  %v758_v55 = vand.u32 4294901760, %v757_v24  ;;  %v2041_v53 = vsub.f32 %v6664_v17, %v6292_v3  ;;  %v6299_v57 = vand.u32 4294901760, %v6667_v2  ;;  %v763_v54 = vsub.f32 %v6665_v60, %v6296_v1  ;;  %v6668_v24 = vld [vmem:[#allocation164_spill] sm:$0xff] }
  0xdf   :  { %v3414_v16 = vpack.c.bf16 %v2036_v20, %v2024_v8  ;;  %v2030_v26 = vand.u32 4294901760, %v2029_v36  ;;  %v775_v30 = vsub.f32 %v6666_v49, %v6298_v11  ;;  %v6300_v3 = vand.u32 4294901760, %v6668_v24  ;;  %v6669_v20 = vld [vmem:[#allocation166_spill] sm:$0xff] }
  0xe0   :  { %v3032_v5 = vpack.c.bf16 %v758_v55, %v746_v47  ;;  %v2042_v45 = vand.u32 4294901760, %v2041_v53  ;;  %v2047_v35 = vsub.f32 %v6667_v2, %v6299_v57  ;;  %v764_v17 = vand.u32 4294901760, %v763_v54  ;;  %v6671_v53 = vld [vmem:[#allocation169_spill] sm:$0xff]  ;;  %v6672_v54 = vld [vmem:[#allocation170_spill] sm:$0xff]  ;;  %v6678_v2 = vld [vmem:[#allocation179_spill] sm:$0xff] }
  0xe1   :  { %3415 = vmatprep.subr.bf16.mxu0 %v3414_v16  ;;  %v776_v8 = vand.u32 4294901760, %v775_v30  ;;  %v6302_v36 = vand.u32 4294901760, %v6669_v20  ;;  %v6303_v31 = vand.u32 4294901760, %v6670_v22  ;;  %v2059_v55 = vsub.f32 %v6668_v24, %v6300_v3  ;;  %v6674_v3 = vld [vmem:[#allocation173_spill] sm:$0xff] }
  0xe2   :  { %3033 = vmatpush1.bf16.msra.mxu1 %v3032_v5  ;;  %v3416_v1 = vpack.c.bf16 %v2042_v45, %v2030_v26  ;;  %v2048_v60 = vand.u32 4294901760, %v2047_v35  ;;  %v6306_v47 = vand.u32 4294901760, %v6671_v53  ;;  %v6308_v57 = vand.u32 4294901760, %v6672_v54  ;;  %v6673_v45 = vld [vmem:[#allocation172_spill] sm:$0xff] }
  0xe3   :  { %v3034_v11 = vpack.c.bf16 %v776_v8, %v764_v17  ;;  %v769_v16 = vsub.f32 %v6669_v20, %v6302_v36  ;;  %v781_v30 = vsub.f32 %v6670_v22, %v6303_v31  ;;  %v2060_v5 = vand.u32 4294901760, %v2059_v55  ;;  %v6675_v31 = vld [vmem:[#allocation174_spill] sm:$0xff] }
  0xe4   :  { %3417 = vmatpush1.bf16.msra.mxu0 %v3416_v1  ;;  %v2053_v26 = vsub.f32 %v6671_v53, %v6306_v47  ;;  %v6312_v35 = vand.u32 4294901760, %v6673_v45  ;;  %v6314_v17 = vand.u32 4294901760, %v6674_v3  ;;  %v2065_v36 = vsub.f32 %v6672_v54, %v6308_v57 }
  0xe5   :  { %3035 = vmatprep.subr.bf16.mxu1 %v3034_v11  ;;  %v770_v8 = vand.u32 4294901760, %v769_v16  ;;  %v782_v24 = vand.u32 4294901760, %v781_v30  ;;  %v6315_v22 = vand.u32 4294901760, %v6675_v31  ;;  %v3418_v20 = vpack.c.bf16 %v2060_v5, %v2048_v60  ;;  %v6676_v30 = vld [vmem:[#allocation176_spill] sm:$0xff]  ;;  %v6677_v5 = vld [vmem:[#allocation178_spill] sm:$0xff] }
  0xe6   :  { %v2054_v1 = vand.u32 4294901760, %v2053_v26  ;;  %v787_v55 = vsub.f32 %v6673_v45, %v6312_v35  ;;  %v799_v47 = vsub.f32 %v6674_v3, %v6314_v17  ;;  %v2066_v11 = vand.u32 4294901760, %v2065_v36  ;;  %v6679_v36 = vld [vmem:[#allocation181_spill] sm:$0xff] }
  0xe7   :  { %v3036_v53 = vpack.c.bf16 %v782_v24, %v770_v8  ;;  %v2071_v16 = vsub.f32 %v6675_v31, %v6315_v22  ;;  %v6316_v57 = vand.u32 4294901760, %v6676_v30  ;;  %3419 = vmatprep.subr.bf16.mxu0 %v3418_v20  ;;  %v6318_v26 = vand.u32 4294901760, %v6677_v5  ;;  %v6686_v31 = vld [vmem:[#allocation191_spill] sm:$0xff] }
  0xe8   :  { %v788_v54 = vand.u32 4294901760, %v787_v55  ;;  %v800_v60 = vand.u32 4294901760, %v799_v47  ;;  %v6319_v49 = vand.u32 4294901760, %v6678_v2  ;;  %v3420_v35 = vpack.c.bf16 %v2066_v11, %v2054_v1  ;;  %v6680_v55 = vld [vmem:[#allocation182_spill] sm:$0xff]  ;;  %v6681_v11 = vld [vmem:[#allocation184_spill] sm:$0xff] }
  0xe9   :  { %3037 = vmatpush1.bf16.msra.mxu1 %v3036_v53  ;;  %v2072_v45 = vand.u32 4294901760, %v2071_v16  ;;  %v2083_v24 = vsub.f32 %v6676_v30, %v6316_v57  ;;  %v6322_v8 = vand.u32 4294901760, %v6679_v36  ;;  %v793_v20 = vsub.f32 %v6677_v5, %v6318_v26  ;;  %v6682_v57 = vld [vmem:[#allocation185_spill] sm:$0xff] }
  0xea   :  { %v3038_v17 = vpack.c.bf16 %v800_v60, %v788_v54  ;;  %v805_v47 = vsub.f32 %v6678_v2, %v6319_v49  ;;  %v6324_v22 = vand.u32 4294901760, %v6680_v55  ;;  %3421 = vmatpush1.bf16.msra.mxu0 %v3420_v35  ;;  %v6328_v16 = vand.u32 4294901760, %v6681_v11  ;;  %v6683_v49 = vld [vmem:[#allocation186_spill] sm:$0xff] }
  0xeb   :  { %v2084_v53 = vand.u32 4294901760, %v2083_v24  ;;  %v2077_v1 = vsub.f32 %v6679_v36, %v6322_v8  ;;  %v6330_v54 = vand.u32 4294901760, %v6682_v57  ;;  %v794_v60 = vand.u32 4294901760, %v793_v20 }
  0xec   :  { %3039 = vmatprep.subr.bf16.mxu1 %v3038_v17  ;;  %v806_v30 = vand.u32 4294901760, %v805_v47  ;;  %v2089_v26 = vsub.f32 %v6680_v55, %v6324_v22  ;;  %v6331_v2 = vand.u32 4294901760, %v6683_v49  ;;  %v811_v24 = vsub.f32 %v6681_v11, %v6328_v16  ;;  %v6684_v47 = vld [vmem:[#allocation188_spill] sm:$0xff] }
  0xed   :  { %v3422_v5 = vpack.c.bf16 %v2084_v53, %v2072_v45  ;;  %v2078_v35 = vand.u32 4294901760, %v2077_v1  ;;  %v823_v8 = vsub.f32 %v6682_v57, %v6330_v54  ;;  %v6333_v22 = vand.u32 4294901760, %v6684_v47  ;;  %v6685_v53 = vld [vmem:[#allocation190_spill] sm:$0xff] }
  0xee   :  { %v3040_v36 = vpack.c.bf16 %v806_v30, %v794_v60  ;;  %v2090_v17 = vand.u32 4294901760, %v2089_v26  ;;  %v2095_v20 = vsub.f32 %v6683_v49, %v6331_v2  ;;  %v812_v55 = vand.u32 4294901760, %v811_v24  ;;  %v6687_v26 = vld [vmem:[#allocation193_spill] sm:$0xff]  ;;  %v6688_v24 = vld [vmem:[#allocation194_spill] sm:$0xff] }
  0xef   :  { %3423 = vmatprep.subr.bf16.mxu0 %v3422_v5  ;;  %v824_v45 = vand.u32 4294901760, %v823_v8  ;;  %v6332_v1 = vand.u32 4294901760, %v6685_v53  ;;  %v6335_v3 = vand.u32 4294901760, %v6686_v31  ;;  %v2107_v30 = vsub.f32 %v6684_v47, %v6333_v22  ;;  %v6689_v22 = vld [vmem:[#allocation4_spill] sm:$0xff] }
  0xf0   :  { %3041 = vmatpush1.bf16.msra.mxu1 %v3040_v36  ;;  %v3424_v16 = vpack.c.bf16 %v2090_v17, %v2078_v35  ;;  %v2096_v11 = vand.u32 4294901760, %v2095_v20  ;;  %v6339_v60 = vand.u32 4294901760, %v6687_v26  ;;  %v6340_v2 = vand.u32 4294901760, %v6688_v24 }
  0xf1   :  { %v3042_v54 = vpack.c.bf16 %v824_v45, %v812_v55  ;;  %v817_v5 = vsub.f32 %v6685_v53, %v6332_v1  ;;  %v829_v8 = vsub.f32 %v6686_v31, %v6335_v3  ;;  %v2108_v36 = vand.u32 4294901760, %v2107_v30  ;;  %v6690_v53 = vld [vmem:[#allocation5_spill] sm:$0xff]  ;;  %v6692_v30 = vld [vmem:[#allocation8_spill] sm:$0xff] }
  0xf2   :  { %3425 = vmatpush1.bf16.msra.mxu0 %v3424_v16  ;;  %v2101_v35 = vsub.f32 %v6687_v26, %v6339_v60  ;;  %v2113_v55 = vsub.f32 %v6688_v24, %v6340_v2  ;;  %v3046_v3 = vpack.c.bf16 %v6690_v53, %v6689_v22  ;;  %v6691_v16 = vld [vmem:[#allocation6_spill] sm:$0xff]  ;;  %v6693_v2 = vld [vmem:[#allocation121_spill] sm:$0xff]  ;;  %v6730_v22 = vld [vmem:[#allocation176_spill] sm:$0xff] }
  0xf3   :  { %3043 = vmatprep.subr.bf16.mxu1 %v3042_v54  ;;  %v818_v17 = vand.u32 4294901760, %v817_v5  ;;  %v830_v20 = vand.u32 4294901760, %v829_v8  ;;  %v3426_v45 = vpack.c.bf16 %v2108_v36, %v2096_v11  ;;  %v3430_v49 = vpack.c.bf16 %v6692_v30, %v6691_v16  ;;  %v6728_v16 = vld [vmem:[#allocation173_spill] sm:$0xff]  ;;  %v6741_v53 = vld [vmem:[#allocation50_spill] sm:$0xff] }
  0xf4   :  { %v2102_v1 = vand.u32 4294901760, %v2101_v35  ;;  %v2114_v47 = vand.u32 4294901760, %v2113_v55  ;;  %v3048_v54 = vpack.c.bf16 %v3794_v27, %v3788_v25  ;;  %v3050_v5 = vpack.c.bf16 %v3826_v46, %v3813_v41  ;;  %v6709_v55 = vld [vmem:[#allocation145_spill] sm:$0xff]  ;;  %v6722_v46 = vld [vmem:[#allocation164_spill] sm:$0xff]  ;;  %v6745_v27 = vld [vmem:[#allocation198_spill] sm:$0xff] }
  0xf5   :  { %v3044_v31 = vpack.c.bf16 %v830_v20, %v818_v17  ;;  %3427 = vmatprep.subr.bf16.mxu0 %v3426_v45  ;;  %v3432_v11 = vpack.c.bf16 %v3811_v40, %v3809_v39  ;;  %v3434_v8 = vpack.c.bf16 %v3836_v50, %v3830_v48  ;;  %v3058_v36 = vpack.c.bf16 %v3931_v56, %v3918_v51  ;;  %v6704_v56 = vld [vmem:[#allocation137_spill] sm:$0xff]  ;;  %v6705_v51 = vld [vmem:[#allocation138_spill] sm:$0xff]  ;;  %v6711_v45 = vld [vmem:[#allocation148_spill] sm:$0xff] }
  0xf6   :  { %v3428_v60 = vpack.c.bf16 %v2114_v47, %v2102_v1  ;;  %v3054_v47 = vpack.c.bf16 %v3881_v10, %v3869_v6  ;;  %v3438_v1 = vpack.c.bf16 %v3887_v13, %v3885_v12  ;;  %v3442_v35 = vpack.c.bf16 %v3938_v63, %v3935_v58  ;;  %v6700_v63 = vld [vmem:[#allocation131_spill] sm:$0xff]  ;;  %v6710_v12 = vld [vmem:[#allocation146_spill] sm:$0xff]  ;;  %v6714_v6 = vld [vmem:[#allocation152_spill] sm:$0xff] }
  0xf7   :  { %3045 = vmatpush1.bf16.msra.mxu1 %v3044_v31  ;;  %v3052_v31 = vpack.c.bf16 %v3850_v61, %v3838_v52  ;;  %v3060_v17 = vpack.c.bf16 %v3957_v29, %v3944_v7  ;;  %v3062_v20 = vpack.c.bf16 %v6594_v32, %v6593_v42  ;;  %v6695_v32 = vld [vmem:[#allocation124_spill] sm:$0xff]  ;;  %v6696_v42 = vld [vmem:[#allocation125_spill] sm:$0xff]  ;;  %v6697_v29 = vld [vmem:[#allocation126_spill] sm:$0xff] }
  0xf8   :  { %3047 = vmatprep.subr.bf16.mxu1 %v3046_v3  ;;  %3429 = vmatpush1.bf16.msra.mxu0 %v3428_v60  ;;  %v3436_v3 = vpack.c.bf16 %v3865_v4, %v3852_v62  ;;  %v3440_v60 = vpack.c.bf16 %v3914_v44, %v3912_v43  ;;  %v6698_v7 = vld [vmem:[#allocation128_spill] sm:$0xff]  ;;  %v6702_v44 = vld [vmem:[#allocation134_spill] sm:$0xff]  ;;  %v6712_v62 = vld [vmem:[#allocation149_spill] sm:$0xff] }
  0xf9   :  { %3431 = vmatprep.subr.bf16.mxu0 %v3430_v49  ;;  %v3056_v49 = vpack.c.bf16 %v3899_v34, %v3897_v33  ;;  %v6706_v34 = vld [vmem:[#allocation140_spill] sm:$0xff]  ;;  %v6708_v33 = vld [vmem:[#allocation143_spill] sm:$0xff]  ;;  %v6713_v10 = vld [vmem:[#allocation150_spill] sm:$0xff] }
  0xfa   :  { %835 = vmatmul.mubr.f32.vlgmr.msra.gmra.mrb[0].mxu1 %v4749_v9  ;;  %v6716_v61 = vld [vmem:[#allocation155_spill] sm:$0xff]  ;;  %v6721_v39 = vld [vmem:[#allocation162_spill] sm:$0xff]  ;;  %v6727_v43 = vld [vmem:[#allocation172_spill] sm:$0xff] }
  0xfb   :  { %3049 = vmatpush1.bf16.msra.mxu1 %v3048_v54  ;;  %2119 = vmatmul.mubr.f32.vlgmr.msra.gmra.mrb[0].mxu0 %v4802_v59  ;;  %v6694_v59 = vld [vmem:[#allocation122_spill] sm:$0xff]  ;;  %v6701_v54 = vld [vmem:[#allocation133_spill] sm:$0xff]  ;;  %v6735_v4 = vld [vmem:[#allocation184_spill] sm:$0xff] }
  0xfc   :  { %3051 = vmatprep.subr.bf16.mxu1 %v3050_v5  ;;  %3433 = vmatpush1.bf16.msra.mxu0 %v3432_v11  ;;  %v6703_v5 = vld [vmem:[#allocation136_spill] sm:$0xff]  ;;  %v6732_v11 = vld [vmem:[#allocation179_spill] sm:$0xff]  ;;  %v6734_v9 = vld [vmem:[#allocation182_spill] sm:$0xff] }
  0xfd   :  { %3435 = vmatprep.subr.bf16.mxu0 %v3434_v8  ;;  %v6699_v8 = vld [vmem:[#allocation130_spill] sm:$0xff]  ;;  %v6739_v58 = vld [vmem:[#allocation191_spill] sm:$0xff]  ;;  %v6740_v48 = vld [vmem:[#allocation49_spill] sm:$0xff]  ;;  %2319 = vmatprep.mubr.f32.mxu0 %v6745_v27 }
  0xfe   :  { %v3444_v50 = vpack.c.bf16 %v6741_v53, %v6740_v48  ;;  %v6744_v40 = vld [vmem:[#allocation56_spill] sm:$0xff]  ;;  %v6746_v30 = vld [vmem:[#allocation58_spill] sm:$0xff]  ;;  %v6757_v24 = vld [vmem:[#allocation77_spill] sm:$0xff] }
  0xff   :  { %3053 = vmatpush1.bf16.msra.mxu1 %v3052_v31  ;;  %v6707_v31 = vld [vmem:[#allocation142_spill] sm:$0xff]  ;;  %v6748_v25 = vld [vmem:[#allocation64_spill] sm:$0xff] }
 0x100   :  { %3055 = vmatprep.subr.bf16.mxu1 %v3054_v47  ;;  %3437 = vmatpush1.bf16.msra.mxu0 %v3436_v3  ;;  %v6715_v47 = vld [vmem:[#allocation154_spill] sm:$0xff]  ;;  %v6747_v3 = vld [vmem:[#allocation59_spill] sm:$0xff] }
 0x101   :  { %3439 = vmatprep.subr.bf16.mxu0 %v3438_v1  ;;  %v6742_v1 = vld [vmem:[#allocation196_spill] sm:$0xff]  ;;  %v3064_v41 = vpack.c.bf16 %v6747_v3, %v6746_v30  ;;  %v6751_v26 = vld [vmem:[#allocation62_spill] sm:$0xff] }
 0x102   :  { %1035 = vmatprep.mubr.f32.mxu1 %v6742_v1  ;;  %v6752_v48 = vld [vmem:[#allocation66_spill] sm:$0xff] }
 0x103   :  { %3057 = vmatpush1.bf16.msra.mxu1 %v3056_v49  ;;  %v6749_v49 = vld [vmem:[#allocation65_spill] sm:$0xff]  ;;  %v6759_v30 = vld [vmem:[#allocation74_spill] sm:$0xff] }
 0x104   :  { %3059 = vmatprep.subr.bf16.mxu1 %v3058_v36  ;;  %3441 = vmatpush1.bf16.msra.mxu0 %v3440_v60  ;;  %v6743_v36 = vld [vmem:[#allocation54_spill] sm:$0xff]  ;;  %v3066_v52 = vpack.c.bf16 %v6749_v49, %v6748_v25  ;;  %v6750_v60 = vld [vmem:[#allocation61_spill] sm:$0xff]  ;;  %v6761_v25 = vld [vmem:[#allocation80_spill] sm:$0xff] }
 0x105   :  { %3443 = vmatprep.subr.bf16.mxu0 %v3442_v35  ;;  %v3446_v13 = vpack.c.bf16 %v6744_v40, %v6743_v36  ;;  %v3448_v53 = vpack.c.bf16 %v6751_v26, %v6750_v60  ;;  %v6753_v35 = vld [vmem:[#allocation68_spill] sm:$0xff]  ;;  %v6754_v40 = vld [vmem:[#allocation70_spill] sm:$0xff]  ;;  %v6755_v36 = vld [vmem:[#allocation71_spill] sm:$0xff] }
 0x106   :  { %v3450_v1 = vpack.c.bf16 %v6753_v35, %v6752_v48  ;;  %v3068_v27 = vpack.c.bf16 %v6755_v36, %v6754_v40  ;;  %v6763_v60 = vld [vmem:[#allocation83_spill] sm:$0xff]  ;;  %v6765_v48 = vld [vmem:[#allocation89_spill] sm:$0xff]  ;;  %v6767_v40 = vld [vmem:[#allocation86_spill] sm:$0xff] }
 0x107   :  { %3061 = vmatpush1.bf16.msra.mxu1 %v3060_v17  ;;  %v6756_v17 = vld [vmem:[#allocation76_spill] sm:$0xff] }
 0x108   :  { %3063 = vmatprep.subr.bf16.mxu1 %v3062_v20  ;;  %3445 = vmatpush1.bf16.msra.mxu0 %v3444_v50  ;;  %v3070_v3 = vpack.c.bf16 %v6757_v24, %v6756_v17  ;;  %v6758_v20 = vld [vmem:[#allocation73_spill] sm:$0xff]  ;;  %v6760_v50 = vld [vmem:[#allocation78_spill] sm:$0xff]  ;;  %v6769_v17 = vld [vmem:[#allocation92_spill] sm:$0xff] }
 0x109   :  { %3447 = vmatprep.subr.bf16.mxu0 %v3446_v13  ;;  %v3452_v49 = vpack.c.bf16 %v6759_v30, %v6758_v20  ;;  %v3454_v26 = vpack.c.bf16 %v6761_v25, %v6760_v50  ;;  %v6762_v13 = vld [vmem:[#allocation82_spill] sm:$0xff]  ;;  %v6771_v20 = vld [vmem:[#allocation95_spill] sm:$0xff]  ;;  %v6773_v50 = vld [vmem:[#allocation101_spill] sm:$0xff] }
 0x10a   :  { %v3072_v35 = vpack.c.bf16 %v6763_v60, %v6762_v13  ;;  %v6775_v13 = vld [vmem:[#allocation98_spill] sm:$0xff] }
 0x10b   :  { %3065 = vmatpush1.bf16.msra.mxu1 %v3064_v41  ;;  %v6764_v41 = vld [vmem:[#allocation88_spill] sm:$0xff] }
 0x10c   :  { %3067 = vmatprep.subr.bf16.mxu1 %v3066_v52  ;;  %3449 = vmatpush1.bf16.msra.mxu0 %v3448_v53  ;;  %v3074_v36 = vpack.c.bf16 %v6765_v48, %v6764_v41  ;;  %v6766_v52 = vld [vmem:[#allocation85_spill] sm:$0xff]  ;;  %v6768_v53 = vld [vmem:[#allocation90_spill] sm:$0xff]  ;;  %v6777_v41 = vld [vmem:[#allocation104_spill] sm:$0xff] }
 0x10d   :  { %3451 = vmatprep.subr.bf16.mxu0 %v3450_v1  ;;  %v3456_v24 = vpack.c.bf16 %v6767_v40, %v6766_v52  ;;  %v3458_v30 = vpack.c.bf16 %v6769_v17, %v6768_v53  ;;  %v6770_v1 = vld [vmem:[#allocation94_spill] sm:$0xff] }
 0x10e   :  { %v3076_v25 = vpack.c.bf16 %v6771_v20, %v6770_v1 }
 0x10f   :  { %3069 = vmatpush1.bf16.msra.mxu1 %v3068_v27  ;;  %v6772_v27 = vld [vmem:[#allocation100_spill] sm:$0xff] }
 0x110   :  { %3071 = vmatprep.subr.bf16.mxu1 %v3070_v3  ;;  %3453 = vmatpush1.bf16.msra.mxu0 %v3452_v49  ;;  %v3078_v60 = vpack.c.bf16 %v6773_v50, %v6772_v27  ;;  %v6774_v3 = vld [vmem:[#allocation97_spill] sm:$0xff]  ;;  %v6776_v49 = vld [vmem:[#allocation102_spill] sm:$0xff] }
 0x111   :  { %3455 = vmatprep.subr.bf16.mxu0 %v3454_v26  ;;  %v3460_v48 = vpack.c.bf16 %v6775_v13, %v6774_v3  ;;  %v3462_v40 = vpack.c.bf16 %v6777_v41, %v6776_v49  ;;  %v6778_v26 = vpack.c.bf16 %v6630_v15, %v6629_v18 }
 0x113   :  { %3073 = vmatpush1.bf16.msra.mxu1 %v3072_v35  ;;  %v6786_v35 = vpack.c.bf16 %v6700_v63, %v6699_v8 }
 0x114   :  { %3075 = vmatprep.subr.bf16.mxu1 %v3074_v36  ;;  %3457 = vmatpush1.bf16.msra.mxu0 %v3456_v24  ;;  %v6779_v36 = vpack.c.bf16 %v6634_v37, %v6633_v38  ;;  %v6780_v24 = vpack.c.bf16 %v6632_v19, %v6631_v21 }
 0x115   :  { %3459 = vmatprep.subr.bf16.mxu0 %v3458_v30  ;;  %v6781_v30 = vpack.c.bf16 %v6636_v14, %v6635_v28 }
 0x117   :  { %3077 = vmatpush1.bf16.msra.mxu1 %v3076_v25  ;;  %v6782_v25 = vpack.c.bf16 %v6638_v0, %v6637_v23 }
 0x118   :  { %3079 = vmatprep.subr.bf16.mxu1 %v3078_v60  ;;  %3461 = vmatpush1.bf16.msra.mxu0 %v3460_v48  ;;  %v6784_v48 = vpack.c.bf16 %v6694_v59, %v6693_v2  ;;  %v6785_v60 = vpack.c.bf16 %v6698_v7, %v6697_v29 }
 0x119   :  { %3463 = vmatprep.subr.bf16.mxu0 %v3462_v40  ;;  %v6783_v40 = vpack.c.bf16 %v6696_v42, %v6695_v32 }
 0x11b   :  { %3081 = vmatpush1.bf16.msra.mxu1 %v6778_v26  ;;  %v6787_v26 = vpack.c.bf16 %v6704_v56, %v6703_v5 }
 0x11c   :  { %3083 = vmatprep.subr.bf16.mxu1 %v6779_v36  ;;  %3465 = vmatpush1.bf16.msra.mxu0 %v6780_v24  ;;  %v6788_v36 = vpack.c.bf16 %v6702_v44, %v6701_v54  ;;  %v6789_v24 = vpack.c.bf16 %v6706_v34, %v6705_v51 }
 0x11d   :  { %3467 = vmatprep.subr.bf16.mxu0 %v6781_v30  ;;  %v6790_v30 = vpack.c.bf16 %v6708_v33, %v6707_v31 }
 0x11f   :  { %3085 = vmatpush1.bf16.msra.mxu1 %v6782_v25  ;;  %v6791_v25 = vpack.c.bf16 %v6712_v62, %v6711_v45 }
 0x120   :  { %3087 = vmatprep.subr.bf16.mxu1 %v6783_v40  ;;  %3469 = vmatpush1.bf16.msra.mxu0 %v6784_v48  ;;  %v6792_v40 = vpack.c.bf16 %v6710_v12, %v6709_v55  ;;  %v6793_v48 = vpack.c.bf16 %v6714_v6, %v6713_v10  ;;  %v6803_v12 = vld [vmem:[#allocation166_spill] sm:$0xff] }
 0x121   :  { %3471 = vmatprep.subr.bf16.mxu0 %v6785_v60  ;;  %v6794_v60 = vpack.c.bf16 %v6716_v61, %v6715_v47  ;;  %v6807_v61 = vld [vmem:[#allocation169_spill] sm:$0xff] }
 0x123   :  { %3089 = vmatpush1.bf16.msra.mxu1 %v6786_v35  ;;  %v6795_v35 = vld [vmem:[#allocation161_spill] sm:$0xff] }
 0x124   :  { %3091 = vmatprep.subr.bf16.mxu1 %v6787_v26  ;;  %3473 = vmatpush1.bf16.msra.mxu0 %v6788_v36  ;;  %v6796_v26 = vld [vmem:[#allocation160_spill] sm:$0xff] }
 0x125   :  { %3475 = vmatprep.subr.bf16.mxu0 %v6789_v24  ;;  %v6797_v36 = vpack.c.bf16 %v6795_v35, %v6796_v26  ;;  %v6798_v24 = vld [vmem:[#allocation158_spill] sm:$0xff] }
 0x127   :  { %3093 = vmatpush1.bf16.msra.mxu1 %v6790_v30  ;;  %v6799_v30 = vld [vmem:[#allocation157_spill] sm:$0xff] }
 0x128   :  { %3095 = vmatprep.subr.bf16.mxu1 %v6791_v25  ;;  %3477 = vmatpush1.bf16.msra.mxu0 %v6792_v40  ;;  %v6800_v62 = vpack.c.bf16 %v6798_v24, %v6799_v30  ;;  %v6801_v25 = vpack.c.bf16 %v6722_v46, %v6721_v39  ;;  %v6802_v40 = vld [vmem:[#allocation167_spill] sm:$0xff]  ;;  %v6909_v39 = vld [vmem:[#allocation192_spill] sm:$0xff]  ;;  %v6912_v30 = vld [vmem:[#allocation14_spill] sm:$0xff] }
 0x129   :  { %3479 = vmatprep.subr.bf16.mxu0 %v6793_v48  ;;  %v6804_v6 = vpack.c.bf16 %v6802_v40, %v6803_v12  ;;  %v6805_v48 = vpack.c.bf16 %v6728_v16, %v6727_v43  ;;  %v6817_v43 = vld [vmem:[#allocation186_spill] sm:$0xff]  ;;  %v6903_v40 = vld [vmem:[#allocation11_spill] sm:$0xff] }
 0x12b   :  { %3097 = vmatpush1.bf16.msra.mxu1 %v6794_v60  ;;  %v6806_v60 = vld [vmem:[#allocation170_spill] sm:$0xff] }
 0x12c   :  { %3099 = vmatprep.subr.bf16.mxu1 %v6797_v36  ;;  %3481 = vmatpush1.bf16.msra.mxu0 %v6800_v62  ;;  %v6808_v35 = vpack.c.bf16 %v6806_v60, %v6807_v61  ;;  %v6809_v36 = vld [vmem:[#allocation174_spill] sm:$0xff]  ;;  %v6900_v61 = vld [vmem:[#allocation189_spill] sm:$0xff] }
 0x12d   :  { %3483 = vmatprep.subr.bf16.mxu0 %v6801_v25  ;;  %v6810_v24 = vpack.c.bf16 %v6730_v22, %v6809_v36  ;;  %v6811_v62 = vld [vmem:[#allocation178_spill] sm:$0xff]  ;;  %v6813_v25 = vpack.c.bf16 %v6682_v57, %v6735_v4  ;;  %v6825_v57 = vld [vmem:[#allocation7_spill] sm:$0xff] }
 0x12e   :  { %v6812_v46 = vpack.c.bf16 %v6732_v11, %v6811_v62  ;;  %v6822_v11 = vld [vmem:[#allocation194_spill] sm:$0xff] }
 0x12f   :  { %3101 = vmatpush1.bf16.msra.mxu1 %v6804_v6  ;;  %v6814_v6 = vld [vmem:[#allocation181_spill] sm:$0xff] }
 0x130   :  { %3103 = vmatprep.subr.bf16.mxu1 %v6805_v48  ;;  %3485 = vmatpush1.bf16.msra.mxu0 %v6808_v35  ;;  %v6815_v16 = vpack.c.bf16 %v6734_v9, %v6814_v6  ;;  %v6816_v48 = vld [vmem:[#allocation188_spill] sm:$0xff]  ;;  %v6819_v35 = vld [vmem:[#allocation190_spill] sm:$0xff]  ;;  %v6827_v9 = vld [vmem:[#allocation9_spill] sm:$0xff] }
 0x131   :  { %3487 = vmatprep.subr.bf16.mxu0 %v6810_v24  ;;  %v6818_v60 = vpack.c.bf16 %v6816_v48, %v6817_v43  ;;  %v6820_v22 = vpack.c.bf16 %v6739_v58, %v6819_v35  ;;  %v6821_v24 = vld [vmem:[#allocation3_spill] sm:$0xff]  ;;  %v6831_v48 = vld [vmem:[#allocation16_spill] sm:$0xff]  ;;  %v6892_v35 = vld [vmem:[#allocation5_spill] sm:$0xff] }
 0x133   :  { %3105 = vmatpush1.bf16.msra.mxu1 %v6812_v46  ;;  %v6823_v46 = vld [vmem:[#allocation193_spill] sm:$0xff] }
 0x134   :  { %3107 = vmatprep.subr.bf16.mxu1 %v6813_v25  ;;  %3489 = vmatpush1.bf16.msra.mxu0 %v6815_v16  ;;  %v6824_v62 = vpack.c.bf16 %v6822_v11, %v6823_v46  ;;  %v6826_v25 = vld [vmem:[#allocation200_spill] sm:$0xff]  ;;  %v6835_v11 = vld [vmem:[#allocation18_spill] sm:$0xff]  ;;  %v6838_v46 = vld [vmem:[#allocation25_spill] sm:$0xff] }
 0x135   :  { %3491 = vmatprep.subr.bf16.mxu0 %v6818_v60  ;;  %v6828_v16 = vld [vmem:[#allocation196_spill] sm:$0xff]  ;;  %v6830_v60 = vld [vmem:[#allocation202_spill] sm:$0xff] }
 0x136   :  { %v6829_v6 = vand.u32 4294901760, %v6828_v16  ;;  %v6841_v16 = vld [vmem:[#allocation39_spill] sm:$0xff] }
 0x137   :  { %3109 = vmatpush1.bf16.msra.mxu1 %v6820_v22  ;;  %v6832_v22 = vld [vmem:[#allocation12_spill] sm:$0xff] }
 0x138   :  { %3111 = vmatprep.subr.bf16.mxu1 %v6821_v24  ;;  %3493 = vmatpush1.bf16.msra.mxu0 %v6824_v62  ;;  %v6833_v24 = vld [vmem:[#allocation198_spill] sm:$0xff] }
 0x139   :  { %3495 = vmatprep.subr.bf16.mxu0 %v6825_v57  ;;  %v6834_v58 = vand.u32 4294901760, %v6833_v24  ;;  %v6836_v62 = vld [vmem:[#allocation22_spill] sm:$0xff]  ;;  %v6837_v57 = vld [vmem:[#allocation27_spill] sm:$0xff] }
 0x13a   :  { %1038 = vmatmul.mubr.f32.vlgmr.msra.gmra.mrb[0].mxu1 %v6826_v25  ;;  %v6844_v24 = vld [vmem:[#allocation46_spill] sm:$0xff] }
 0x13b   :  { %3113 = vmatpush1.bf16.msra.mxu1 %v6827_v9  ;;  %1175 = vmatprep.mubr.f32.mxu1 %v6829_v6  ;;  %v6839_v9 = vld [vmem:[#allocation30_spill] sm:$0xff]  ;;  %v6840_v6 = vld [vmem:[#allocation33_spill] sm:$0xff] }
 0x13c   :  { %2322 = vmatmul.mubr.f32.vlgmr.msra.gmra.mrb[0].mxu0 %v6830_v60  ;;  %3115 = vmatprep.subr.bf16.mxu1 %v6831_v48  ;;  %v6842_v48 = vld [vmem:[#allocation36_spill] sm:$0xff] }
 0x13d   :  { %3497 = vmatpush1.bf16.msra.mxu0 %v6832_v22  ;;  %2459 = vmatprep.mubr.f32.mxu0 %v6834_v58  ;;  %v6843_v22 = vld [vmem:[#allocation42_spill] sm:$0xff]  ;;  %v6845_v58 = vld [vmem:[#allocation51_spill] sm:$0xff] }
 0x13e   :  { %3499 = vmatprep.subr.bf16.mxu0 %v6835_v11  ;;  %v6846_v11 = vld [vmem:[#allocation48_spill] sm:$0xff] }
 0x13f   :  { %3117 = vmatpush1.bf16.msra.mxu1 %v6836_v62  ;;  %v6847_v62 = vld [vmem:[#allocation55_spill] sm:$0xff] }
 0x140   :  { %3119 = vmatprep.subr.bf16.mxu1 %v6837_v57  ;;  %v6848_v57 = vld [vmem:[#allocation57_spill] sm:$0xff] }
 0x141   :  { %3501 = vmatpush1.bf16.msra.mxu0 %v6838_v46  ;;  %v6849_v46 = vld [vmem:[#allocation63_spill] sm:$0xff] }
 0x142   :  { %3503 = vmatprep.subr.bf16.mxu0 %v6839_v9  ;;  %v6850_v9 = vld [vmem:[#allocation60_spill] sm:$0xff] }
 0x143   :  { %3121 = vmatpush1.bf16.msra.mxu1 %v6840_v6  ;;  %v6851_v6 = vld [vmem:[#allocation67_spill] sm:$0xff] }
 0x144   :  { %3123 = vmatprep.subr.bf16.mxu1 %v6841_v16  ;;  %v6852_v16 = vld [vmem:[#allocation69_spill] sm:$0xff] }
 0x145   :  { %3505 = vmatpush1.bf16.msra.mxu0 %v6842_v48  ;;  %v6853_v48 = vld [vmem:[#allocation75_spill] sm:$0xff] }
 0x146   :  { %3507 = vmatprep.subr.bf16.mxu0 %v6843_v22  ;;  %v6854_v22 = vld [vmem:[#allocation72_spill] sm:$0xff] }
 0x147   :  { %3125 = vmatpush1.bf16.msra.mxu1 %v6844_v24  ;;  %v6855_v24 = vld [vmem:[#allocation79_spill] sm:$0xff] }
 0x148   :  { %3127 = vmatprep.subr.bf16.mxu1 %v6845_v58  ;;  %v6856_v58 = vld [vmem:[#allocation81_spill] sm:$0xff] }
 0x149   :  { %3509 = vmatpush1.bf16.msra.mxu0 %v6846_v11  ;;  %v6857_v11 = vld [vmem:[#allocation87_spill] sm:$0xff] }
 0x14a   :  { %3511 = vmatprep.subr.bf16.mxu0 %v6847_v62  ;;  %v6858_v62 = vld [vmem:[#allocation84_spill] sm:$0xff] }
 0x14b   :  { %3129 = vmatpush1.bf16.msra.mxu1 %v6848_v57  ;;  %v6859_v57 = vld [vmem:[#allocation91_spill] sm:$0xff] }
 0x14c   :  { %3131 = vmatprep.subr.bf16.mxu1 %v6849_v46  ;;  %v6860_v46 = vld [vmem:[#allocation93_spill] sm:$0xff] }
 0x14d   :  { %3513 = vmatpush1.bf16.msra.mxu0 %v6850_v9  ;;  %v6861_v9 = vld [vmem:[#allocation99_spill] sm:$0xff] }
 0x14e   :  { %3515 = vmatprep.subr.bf16.mxu0 %v6851_v6  ;;  %v6862_v6 = vld [vmem:[#allocation96_spill] sm:$0xff] }
 0x14f   :  { %3133 = vmatpush1.bf16.msra.mxu1 %v6852_v16  ;;  %v6863_v16 = vld [vmem:[#allocation103_spill] sm:$0xff] }
 0x150   :  { %3135 = vmatprep.subr.bf16.mxu1 %v6853_v48  ;;  %v6864_v48 = vld [vmem:[#allocation105_spill] sm:$0xff] }
 0x151   :  { %3517 = vmatpush1.bf16.msra.mxu0 %v6854_v22  ;;  %v6865_v22 = vld [vmem:[#allocation111_spill] sm:$0xff] }
 0x152   :  { %3519 = vmatprep.subr.bf16.mxu0 %v6855_v24  ;;  %v6866_v24 = vld [vmem:[#allocation108_spill] sm:$0xff] }
 0x153   :  { %3137 = vmatpush1.bf16.msra.mxu1 %v6856_v58  ;;  %v6867_v58 = vld [vmem:[#allocation115_spill] sm:$0xff] }
 0x154   :  { %3139 = vmatprep.subr.bf16.mxu1 %v6857_v11  ;;  %v6868_v11 = vld [vmem:[#allocation117_spill] sm:$0xff] }
 0x155   :  { %3521 = vmatpush1.bf16.msra.mxu0 %v6858_v62  ;;  %v6869_v62 = vld [vmem:[#allocation123_spill] sm:$0xff] }
 0x156   :  { %3523 = vmatprep.subr.bf16.mxu0 %v6859_v57  ;;  %v6870_v57 = vld [vmem:[#allocation120_spill] sm:$0xff] }
 0x157   :  { %3141 = vmatpush1.bf16.msra.mxu1 %v6860_v46  ;;  %v6871_v46 = vld [vmem:[#allocation127_spill] sm:$0xff] }
 0x158   :  { %3143 = vmatprep.subr.bf16.mxu1 %v6861_v9  ;;  %v6872_v9 = vld [vmem:[#allocation129_spill] sm:$0xff] }
 0x159   :  { %3525 = vmatpush1.bf16.msra.mxu0 %v6862_v6  ;;  %v6873_v6 = vld [vmem:[#allocation135_spill] sm:$0xff] }
 0x15a   :  { %3527 = vmatprep.subr.bf16.mxu0 %v6863_v16  ;;  %v6874_v16 = vld [vmem:[#allocation132_spill] sm:$0xff] }
 0x15b   :  { %3145 = vmatpush1.bf16.msra.mxu1 %v6864_v48  ;;  %v6875_v48 = vld [vmem:[#allocation139_spill] sm:$0xff] }
 0x15c   :  { %3147 = vmatprep.subr.bf16.mxu1 %v6865_v22  ;;  %v6876_v22 = vld [vmem:[#allocation141_spill] sm:$0xff] }
 0x15d   :  { %3529 = vmatpush1.bf16.msra.mxu0 %v6866_v24  ;;  %v6877_v24 = vld [vmem:[#allocation147_spill] sm:$0xff] }
 0x15e   :  { %3531 = vmatprep.subr.bf16.mxu0 %v6867_v58  ;;  %v6878_v58 = vld [vmem:[#allocation144_spill] sm:$0xff] }
 0x15f   :  { %3149 = vmatpush1.bf16.msra.mxu1 %v6868_v11  ;;  %v6879_v11 = vld [vmem:[#allocation151_spill] sm:$0xff] }
 0x160   :  { %3151 = vmatprep.subr.bf16.mxu1 %v6869_v62  ;;  %v6880_v62 = vld [vmem:[#allocation153_spill] sm:$0xff] }
 0x161   :  { %3533 = vmatpush1.bf16.msra.mxu0 %v6870_v57  ;;  %v6881_v57 = vld [vmem:[#allocation159_spill] sm:$0xff] }
 0x162   :  { %3535 = vmatprep.subr.bf16.mxu0 %v6871_v46  ;;  %v6882_v46 = vld [vmem:[#allocation156_spill] sm:$0xff] }
 0x163   :  { %3153 = vmatpush1.bf16.msra.mxu1 %v6872_v9  ;;  %v6883_v9 = vld [vmem:[#allocation163_spill] sm:$0xff] }
 0x164   :  { %3155 = vmatprep.subr.bf16.mxu1 %v6873_v6  ;;  %v6884_v6 = vld [vmem:[#allocation165_spill] sm:$0xff] }
 0x165   :  { %3537 = vmatpush1.bf16.msra.mxu0 %v6874_v16  ;;  %v6885_v16 = vld [vmem:[#allocation171_spill] sm:$0xff] }
 0x166   :  { %3539 = vmatprep.subr.bf16.mxu0 %v6875_v48  ;;  %v6886_v48 = vld [vmem:[#allocation168_spill] sm:$0xff] }
 0x167   :  { %3157 = vmatpush1.bf16.msra.mxu1 %v6876_v22  ;;  %v6887_v22 = vld [vmem:[#allocation175_spill] sm:$0xff] }
 0x168   :  { %3159 = vmatprep.subr.bf16.mxu1 %v6877_v24  ;;  %v6888_v24 = vld [vmem:[#allocation177_spill] sm:$0xff] }
 0x169   :  { %3541 = vmatpush1.bf16.msra.mxu0 %v6878_v58  ;;  %v6889_v58 = vld [vmem:[#allocation183_spill] sm:$0xff] }
 0x16a   :  { %3543 = vmatprep.subr.bf16.mxu0 %v6879_v11  ;;  %v6890_v11 = vld [vmem:[#allocation4_spill] sm:$0xff] }
 0x16b   :  { %3161 = vmatpush1.bf16.msra.mxu1 %v6880_v62  ;;  %v6891_v62 = vand.u32 4294901760, %v6890_v11  ;;  %v6905_v11 = vld [vmem:[#allocation15_spill] sm:$0xff] }
 0x16c   :  { %3163 = vmatprep.subr.bf16.mxu1 %v6881_v57  ;;  %v6893_v57 = vand.u32 4294901760, %v6892_v35  ;;  %v6906_v35 = vand.u32 4294901760, %v6905_v11  ;;  %v6919_v11 = vld [vmem:[#allocation21_spill] sm:$0xff] }
 0x16d   :  { %3545 = vmatpush1.bf16.msra.mxu0 %v6882_v46  ;;  %v6894_v46 = vld [vmem:[#allocation180_spill] sm:$0xff] }
 0x16e   :  { %3547 = vmatprep.subr.bf16.mxu0 %v6883_v9  ;;  %v3174_v43 = vpack.c.bf16 %v6893_v57, %v6891_v62  ;;  %v6895_v9 = vld [vmem:[#allocation187_spill] sm:$0xff]  ;;  %v6907_v57 = vld [vmem:[#allocation17_spill] sm:$0xff] }
 0x16f   :  { %3165 = vmatpush1.bf16.msra.mxu1 %v6884_v6  ;;  %v6896_v6 = vld [vmem:[#allocation6_spill] sm:$0xff]  ;;  %v6908_v62 = vand.u32 4294901760, %v6907_v57  ;;  %v6920_v57 = vand.u32 4294901760, %v6919_v11  ;;  %v6934_v11 = vld [vmem:[#allocation31_spill] sm:$0xff] }
 0x170   :  { %3167 = vmatprep.subr.bf16.mxu1 %v6885_v16  ;;  %v6897_v4 = vand.u32 4294901760, %v6896_v6  ;;  %v6898_v16 = vld [vmem:[#allocation8_spill] sm:$0xff] }
 0x171   :  { %3549 = vmatpush1.bf16.msra.mxu0 %v6886_v48  ;;  %v6899_v36 = vand.u32 4294901760, %v6898_v16  ;;  %v6913_v16 = vand.u32 4294901760, %v6912_v30  ;;  %v6925_v30 = vld [vmem:[#allocation28_spill] sm:$0xff] }
 0x172   :  { %3551 = vmatprep.subr.bf16.mxu0 %v6887_v22  ;;  %v6901_v22 = vld [vmem:[#allocation10_spill] sm:$0xff] }
 0x173   :  { %3169 = vmatpush1.bf16.msra.mxu1 %v6888_v24  ;;  %v3558_v48 = vpack.c.bf16 %v6899_v36, %v6897_v4  ;;  %v6902_v24 = vand.u32 4294901760, %v6901_v22  ;;  %v6914_v36 = vand.u32 4294901760, %v6826_v25  ;;  %v6915_v22 = vld [vmem:[#allocation19_spill] sm:$0xff]  ;;  %v6927_v25 = vld [vmem:[#allocation29_spill] sm:$0xff] }
 0x174   :  { %3171 = vmatprep.subr.bf16.mxu1 %v6889_v58  ;;  %v6904_v58 = vand.u32 4294901760, %v6903_v40  ;;  %v6916_v40 = vand.u32 4294901760, %v6915_v22 }
 0x175   :  { %3553 = vmatpush1.bf16.msra.mxu0 %v6894_v46  ;;  %v3178_v46 = vpack.c.bf16 %v6908_v62, %v6906_v35  ;;  %v6921_v35 = vld [vmem:[#allocation23_spill] sm:$0xff] }
 0x176   :  { %3555 = vmatprep.subr.bf16.mxu0 %v6895_v9  ;;  %v3176_v12 = vpack.c.bf16 %v6904_v58, %v6902_v24  ;;  %v6910_v9 = vld [vmem:[#allocation13_spill] sm:$0xff]  ;;  %v6917_v24 = vld [vmem:[#allocation20_spill] sm:$0xff]  ;;  %v6922_v62 = vand.u32 4294901760, %v6921_v35 }
 0x177   :  { %3173 = vmatpush1.bf16.msra.mxu1 %v6900_v61  ;;  %v6911_v6 = vand.u32 4294901760, %v6910_v9  ;;  %v6923_v61 = vld [vmem:[#allocation195_spill] sm:$0xff]  ;;  %v6924_v9 = vand.u32 4294901760, %v6830_v60  ;;  %v6936_v35 = vld [vmem:[#allocation32_spill] sm:$0xff] }
 0x178   :  { %3175 = vmatprep.subr.bf16.mxu1 %v3174_v43  ;;  %v6918_v43 = vand.u32 4294901760, %v6917_v24  ;;  %v6937_v60 = vand.u32 4294901760, %v6936_v35  ;;  %v6952_v35 = vld [vmem:[#allocation44_spill] sm:$0xff] }
 0x179   :  { %3557 = vmatpush1.bf16.msra.mxu0 %v6909_v39  ;;  %v3560_v4 = vpack.c.bf16 %v6913_v16, %v6911_v6  ;;  %v3180_v39 = vpack.c.bf16 %v6922_v62, %v6920_v57  ;;  %v6928_v6 = vand.u32 4294901760, %v6927_v25  ;;  %v6935_v57 = vand.u32 4294901760, %v6934_v11 }
 0x17a   :  { %3559 = vmatprep.subr.bf16.mxu0 %v3558_v48  ;;  %1179 = vmatmul.mubr.f32.vlgmr.msra.gmra.mrb[0].mxu1 %v6914_v36  ;;  %v3562_v58 = vpack.c.bf16 %v6918_v43, %v6916_v40  ;;  %v6926_v48 = vand.u32 4294901760, %v6925_v30  ;;  %v6929_v36 = vld [vmem:[#allocation24_spill] sm:$0xff]  ;;  %v6933_v43 = vld [vmem:[#allocation197_spill] sm:$0xff]  ;;  %v6940_v30 = vld [vmem:[#allocation35_spill] sm:$0xff] }
 0x17b   :  { %3177 = vmatpush1.bf16.msra.mxu1 %v3176_v12  ;;  %1442 = vmatprep.mubr.f32.mxu1 %v6923_v61  ;;  %v6930_v22 = vand.u32 4294901760, %v6929_v36  ;;  %v6931_v12 = vld [vmem:[#allocation26_spill] sm:$0xff]  ;;  %v3566_v62 = vpack.c.bf16 %v6937_v60, %v6935_v57  ;;  %v6941_v25 = vand.u32 4294901760, %v6940_v30  ;;  %v6944_v36 = vld [vmem:[#allocation41_spill] sm:$0xff]  ;;  %v6950_v57 = vld [vmem:[#allocation43_spill] sm:$0xff]  ;;  %v6953_v60 = vand.u32 4294901760, %v6952_v35 }
 0x17c   :  { %2463 = vmatmul.mubr.f32.vlgmr.msra.gmra.mrb[0].mxu0 %v6924_v9  ;;  %3179 = vmatprep.subr.bf16.mxu1 %v3178_v46  ;;  %v3182_v16 = vpack.c.bf16 %v6928_v6, %v6926_v48  ;;  %v6932_v40 = vand.u32 4294901760, %v6931_v12  ;;  %v6938_v46 = vld [vmem:[#allocation34_spill] sm:$0xff]  ;;  %v6945_v12 = vand.u32 4294901760, %v6944_v36  ;;  %v6956_v30 = vld [vmem:[#allocation47_spill] sm:$0xff]  ;;  %v6960_v36 = vld [vmem:[#allocation53_spill] sm:$0xff] }
 0x17d   :  { %3561 = vmatpush1.bf16.msra.mxu0 %v3560_v4  ;;  %2726 = vmatprep.mubr.f32.mxu0 %v6933_v43  ;;  %v6939_v9 = vand.u32 4294901760, %v6938_v46  ;;  %v6942_v4 = vld [vmem:[#allocation40_spill] sm:$0xff]  ;;  %v6948_v43 = vld [vmem:[#allocation38_spill] sm:$0xff] }
 0x17e   :  { %v3564_v24 = vpack.c.bf16 %v6932_v40, %v6930_v22  ;;  %3563 = vmatprep.subr.bf16.mxu0 %v3562_v58  ;;  %v6943_v6 = vand.u32 4294901760, %v6942_v4  ;;  %v6946_v40 = vld [vmem:[#allocation37_spill] sm:$0xff]  ;;  %v6949_v11 = vand.u32 4294901760, %v6948_v43  ;;  %v6968_v35 = vld [vmem:[#allocation56_spill] sm:$0xff] }
 0x17f   :  { %3181 = vmatpush1.bf16.msra.mxu1 %v3180_v39  ;;  %v3184_v48 = vpack.c.bf16 %v6941_v25, %v6939_v9  ;;  %v6947_v58 = vand.u32 4294901760, %v6946_v40  ;;  %v6951_v39 = vand.u32 4294901760, %v6950_v57  ;;  %v6954_v9 = vld [vmem:[#allocation45_spill] sm:$0xff]  ;;  %v6957_v25 = vand.u32 4294901760, %v6956_v30  ;;  %v6972_v30 = vld [vmem:[#allocation59_spill] sm:$0xff] }
 0x180   :  { %3183 = vmatprep.subr.bf16.mxu1 %v3182_v16  ;;  %v3186_v22 = vpack.c.bf16 %v6945_v12, %v6943_v6  ;;  %v6955_v16 = vand.u32 4294901760, %v6954_v9  ;;  %v6958_v6 = vld [vmem:[#allocation52_spill] sm:$0xff]  ;;  %v6961_v12 = vand.u32 4294901760, %v6960_v36  ;;  %v6962_v43 = vld [vmem:[#allocation49_spill] sm:$0xff] }
 0x181   :  { %3565 = vmatpush1.bf16.msra.mxu0 %v3564_v24  ;;  %v3568_v61 = vpack.c.bf16 %v6949_v11, %v6947_v58  ;;  %v3570_v46 = vpack.c.bf16 %v6953_v60, %v6951_v39  ;;  %v6959_v24 = vand.u32 4294901760, %v6958_v6  ;;  %v6964_v58 = vld [vmem:[#allocation50_spill] sm:$0xff]  ;;  %v6969_v60 = vand.u32 4294901760, %v6968_v35  ;;  %v6976_v36 = vld [vmem:[#allocation65_spill] sm:$0xff]  ;;  %v6984_v35 = vld [vmem:[#allocation68_spill] sm:$0xff] }
 0x182   :  { %3567 = vmatprep.subr.bf16.mxu0 %v3566_v62  ;;  %v3188_v4 = vpack.c.bf16 %v6957_v25, %v6955_v16  ;;  %v6963_v62 = vand.u32 4294901760, %v6962_v43  ;;  %v6965_v11 = vand.u32 4294901760, %v6964_v58  ;;  %v6966_v39 = vld [vmem:[#allocation54_spill] sm:$0xff]  ;;  %v6973_v25 = vand.u32 4294901760, %v6972_v30  ;;  %v6988_v30 = vld [vmem:[#allocation71_spill] sm:$0xff] }
 0x183   :  { %3185 = vmatpush1.bf16.msra.mxu1 %v3184_v48  ;;  %v3190_v40 = vpack.c.bf16 %v6961_v12, %v6959_v24  ;;  %v6967_v48 = vand.u32 4294901760, %v6966_v39  ;;  %v6970_v16 = vld [vmem:[#allocation58_spill] sm:$0xff]  ;;  %v6974_v24 = vld [vmem:[#allocation64_spill] sm:$0xff]  ;;  %v6977_v12 = vand.u32 4294901760, %v6976_v36  ;;  %v6992_v36 = vld [vmem:[#allocation77_spill] sm:$0xff] }
 0x184   :  { %3187 = vmatprep.subr.bf16.mxu1 %v3186_v22  ;;  %v3572_v57 = vpack.c.bf16 %v6965_v11, %v6963_v62  ;;  %v6971_v22 = vand.u32 4294901760, %v6970_v16  ;;  %v6978_v62 = vld [vmem:[#allocation61_spill] sm:$0xff]  ;;  %v6980_v58 = vld [vmem:[#allocation62_spill] sm:$0xff] }
 0x185   :  { %3569 = vmatpush1.bf16.msra.mxu0 %v3568_v61  ;;  %v3574_v9 = vpack.c.bf16 %v6969_v60, %v6967_v48  ;;  %v6975_v61 = vand.u32 4294901760, %v6974_v24  ;;  %v6981_v11 = vand.u32 4294901760, %v6980_v58  ;;  %v6982_v48 = vld [vmem:[#allocation66_spill] sm:$0xff]  ;;  %v6985_v60 = vand.u32 4294901760, %v6984_v35  ;;  %v7000_v35 = vld [vmem:[#allocation80_spill] sm:$0xff] }
 0x186   :  { %3571 = vmatprep.subr.bf16.mxu0 %v3570_v46  ;;  %v3192_v6 = vpack.c.bf16 %v6973_v25, %v6971_v22  ;;  %v6979_v46 = vand.u32 4294901760, %v6978_v62  ;;  %v6986_v22 = vld [vmem:[#allocation70_spill] sm:$0xff]  ;;  %v6989_v25 = vand.u32 4294901760, %v6988_v30  ;;  %v7004_v30 = vld [vmem:[#allocation83_spill] sm:$0xff] }
 0x187   :  { %3189 = vmatpush1.bf16.msra.mxu1 %v3188_v4  ;;  %v3194_v43 = vpack.c.bf16 %v6977_v12, %v6975_v61  ;;  %v6983_v4 = vand.u32 4294901760, %v6982_v48  ;;  %v6990_v61 = vld [vmem:[#allocation76_spill] sm:$0xff]  ;;  %v6993_v12 = vand.u32 4294901760, %v6992_v36  ;;  %v6996_v58 = vld [vmem:[#allocation74_spill] sm:$0xff]  ;;  %v7008_v36 = vld [vmem:[#allocation89_spill] sm:$0xff] }
 0x188   :  { %3191 = vmatprep.subr.bf16.mxu1 %v3190_v40  ;;  %v3576_v39 = vpack.c.bf16 %v6981_v11, %v6979_v46  ;;  %v6987_v40 = vand.u32 4294901760, %v6986_v22  ;;  %v6994_v46 = vld [vmem:[#allocation73_spill] sm:$0xff]  ;;  %v6997_v11 = vand.u32 4294901760, %v6996_v58 }
 0x189   :  { %3573 = vmatpush1.bf16.msra.mxu0 %v3572_v57  ;;  %v3578_v16 = vpack.c.bf16 %v6985_v60, %v6983_v4  ;;  %v6991_v57 = vand.u32 4294901760, %v6990_v61  ;;  %v6998_v4 = vld [vmem:[#allocation78_spill] sm:$0xff]  ;;  %v7001_v60 = vand.u32 4294901760, %v7000_v35  ;;  %v7016_v35 = vand.u32 4294901760, %v6771_v20 }
 0x18a   :  { %3575 = vmatprep.subr.bf16.mxu0 %v3574_v9  ;;  %v3196_v24 = vpack.c.bf16 %v6989_v25, %v6987_v40  ;;  %v6995_v9 = vand.u32 4294901760, %v6994_v46  ;;  %v7002_v40 = vld [vmem:[#allocation82_spill] sm:$0xff]  ;;  %v7005_v25 = vand.u32 4294901760, %v7004_v30  ;;  %v7023_v20 = vand.u32 4294901760, %v6629_v18 }
 0x18b   :  { %3193 = vmatpush1.bf16.msra.mxu1 %v3192_v6  ;;  %v3198_v62 = vpack.c.bf16 %v6993_v12, %v6991_v57  ;;  %v6999_v6 = vand.u32 4294901760, %v6998_v4  ;;  %v7006_v57 = vld [vmem:[#allocation88_spill] sm:$0xff]  ;;  %v7009_v12 = vand.u32 4294901760, %v7008_v36  ;;  %v7014_v4 = vand.u32 4294901760, %v6769_v17 }
 0x18c   :  { %3195 = vmatprep.subr.bf16.mxu1 %v3194_v43  ;;  %v3580_v48 = vpack.c.bf16 %v6997_v11, %v6995_v9  ;;  %v7003_v43 = vand.u32 4294901760, %v7002_v40  ;;  %v7011_v9 = vld [vmem:[#allocation86_spill] sm:$0xff]  ;;  %v7021_v17 = vand.u32 4294901760, %v6776_v49  ;;  %v7028_v49 = vand.u32 4294901760, %v6632_v19 }
 0x18d   :  { %3577 = vmatpush1.bf16.msra.mxu0 %v3576_v39  ;;  %v3582_v22 = vpack.c.bf16 %v7001_v60, %v6999_v6  ;;  %v7007_v39 = vand.u32 4294901760, %v7006_v57  ;;  %v7012_v58 = vand.u32 4294901760, %v7011_v9  ;;  %v7030_v18 = vand.u32 4294901760, %v6636_v14 }
 0x18e   :  { %3579 = vmatprep.subr.bf16.mxu0 %v3578_v16  ;;  %v3200_v61 = vpack.c.bf16 %v7005_v25, %v7003_v43  ;;  %v7010_v16 = vand.u32 4294901760, %v6766_v52  ;;  %v7018_v52 = vand.u32 4294901760, %v6773_v50  ;;  %v7025_v50 = vand.u32 4294901760, %v6633_v38 }
 0x18f   :  { %3197 = vmatpush1.bf16.msra.mxu1 %v3196_v24  ;;  %v3202_v46 = vpack.c.bf16 %v7009_v12, %v7007_v39  ;;  %v7013_v24 = vand.u32 4294901760, %v6768_v53  ;;  %v7020_v53 = vand.u32 4294901760, %v6775_v13  ;;  %v7027_v13 = vand.u32 4294901760, %v6631_v21 }
 0x190   :  { %3199 = vmatprep.subr.bf16.mxu1 %v3198_v62  ;;  %v3584_v11 = vpack.c.bf16 %v7012_v58, %v7010_v16  ;;  %v7015_v62 = vand.u32 4294901760, %v6770_v1  ;;  %v7022_v1 = vand.u32 4294901760, %v6777_v41  ;;  %v7029_v41 = vand.u32 4294901760, %v6635_v28 }
 0x191   :  { %3581 = vmatpush1.bf16.msra.mxu0 %v3580_v48  ;;  %v3586_v6 = vpack.c.bf16 %v7014_v4, %v7013_v24  ;;  %v7017_v48 = vand.u32 4294901760, %v6772_v27  ;;  %v7024_v27 = vand.u32 4294901760, %v6630_v15  ;;  %v3592_v57 = vpack.c.bf16 %v7028_v49, %v7027_v13  ;;  %v7072_v13 = vld [vmem:[#allocation166_spill] sm:$0xff] }
 0x192   :  { %3583 = vmatprep.subr.bf16.mxu0 %v3582_v22  ;;  %v3204_v60 = vpack.c.bf16 %v7016_v35, %v7015_v62  ;;  %v7019_v22 = vand.u32 4294901760, %v6774_v3  ;;  %v3590_v30 = vpack.c.bf16 %v7022_v1, %v7021_v17  ;;  %v7026_v3 = vand.u32 4294901760, %v6634_v37  ;;  %v7053_v35 = vld [vmem:[#allocation146_spill] sm:$0xff]  ;;  %v7064_v1 = vld [vmem:[#allocation157_spill] sm:$0xff] }
 0x193   :  { %3201 = vmatpush1.bf16.msra.mxu1 %v3200_v61  ;;  %v3206_v40 = vpack.c.bf16 %v7018_v52, %v7017_v48  ;;  %v3208_v25 = vpack.c.bf16 %v7024_v27, %v7023_v20  ;;  %v3594_v39 = vpack.c.bf16 %v7030_v18, %v7029_v41  ;;  %v7031_v15 = vand.u32 4294901760, %v6637_v23  ;;  %v7056_v48 = vld [vmem:[#allocation152_spill] sm:$0xff]  ;;  %v7066_v20 = vld [vmem:[#allocation158_spill] sm:$0xff] }
 0x194   :  { %3203 = vmatprep.subr.bf16.mxu1 %v3202_v46  ;;  %v3588_v43 = vpack.c.bf16 %v7020_v53, %v7019_v22  ;;  %v3210_v61 = vpack.c.bf16 %v7026_v3, %v7025_v50  ;;  %v7032_v38 = vand.u32 4294901760, %v6638_v0  ;;  %v7033_v37 = vand.u32 4294901760, %v6695_v32  ;;  %v7070_v3 = vld [vmem:[#allocation164_spill] sm:$0xff] }
 0x195   :  { %3585 = vmatpush1.bf16.msra.mxu0 %v3584_v11  ;;  %v7034_v21 = vand.u32 4294901760, %v6696_v42  ;;  %v7035_v19 = vand.u32 4294901760, %v6693_v2  ;;  %v7036_v28 = vand.u32 4294901760, %v6694_v59  ;;  %v7037_v14 = vand.u32 4294901760, %v6697_v29  ;;  %v7076_v18 = vld [vmem:[#allocation172_spill] sm:$0xff] }
 0x196   :  { %3587 = vmatprep.subr.bf16.mxu0 %v3586_v6  ;;  %v3212_v36 = vpack.c.bf16 %v7032_v38, %v7031_v15  ;;  %v7038_v23 = vand.u32 4294901760, %v6698_v7  ;;  %v7039_v0 = vand.u32 4294901760, %v6699_v8  ;;  %v7040_v32 = vand.u32 4294901760, %v6700_v63  ;;  %v7050_v6 = vld [vmem:[#allocation149_spill] sm:$0xff] }
 0x197   :  { %3205 = vmatpush1.bf16.msra.mxu1 %v3204_v60  ;;  %v3214_v12 = vpack.c.bf16 %v7034_v21, %v7033_v37  ;;  %v3596_v46 = vpack.c.bf16 %v7036_v28, %v7035_v19  ;;  %v7041_v42 = vand.u32 4294901760, %v6703_v5  ;;  %v7042_v2 = vand.u32 4294901760, %v6704_v56  ;;  %v7078_v15 = vld [vmem:[#allocation173_spill] sm:$0xff] }
 0x198   :  { %3207 = vmatprep.subr.bf16.mxu1 %v3206_v40  ;;  %v3598_v16 = vpack.c.bf16 %v7038_v23, %v7037_v14  ;;  %v3216_v9 = vpack.c.bf16 %v7040_v32, %v7039_v0  ;;  %v7043_v59 = vand.u32 4294901760, %v6701_v54  ;;  %v7044_v29 = vand.u32 4294901760, %v6702_v44  ;;  %v7059_v40 = vld [vmem:[#allocation155_spill] sm:$0xff]  ;;  %v7080_v37 = vld [vmem:[#allocation169_spill] sm:$0xff]  ;;  %v7086_v23 = vld [vmem:[#allocation176_spill] sm:$0xff] }
 0x199   :  { %3589 = vmatpush1.bf16.msra.mxu0 %v3588_v43  ;;  %v3218_v58 = vpack.c.bf16 %v7042_v2, %v7041_v42  ;;  %v7045_v7 = vand.u32 4294901760, %v6705_v51  ;;  %v7046_v8 = vand.u32 4294901760, %v6706_v34  ;;  %v7047_v63 = vand.u32 4294901760, %v6707_v31  ;;  %v7062_v43 = vld [vmem:[#allocation161_spill] sm:$0xff]  ;;  %v7088_v32 = vld [vmem:[#allocation178_spill] sm:$0xff]  ;;  %v7090_v42 = vld [vmem:[#allocation179_spill] sm:$0xff] }
 0x19a   :  { %3591 = vmatprep.subr.bf16.mxu0 %v3590_v30  ;;  %v3600_v11 = vpack.c.bf16 %v7044_v29, %v7043_v59  ;;  %v7048_v5 = vand.u32 4294901760, %v6708_v33  ;;  %v7049_v56 = vand.u32 4294901760, %v6711_v45  ;;  %v7051_v54 = vand.u32 4294901760, %v7050_v6  ;;  %v7092_v59 = vld [vmem:[#allocation184_spill] sm:$0xff]  ;;  %v7100_v6 = vld [vmem:[#allocation186_spill] sm:$0xff] }
 0x19b   :  { %3209 = vmatpush1.bf16.msra.mxu1 %v3208_v25  ;;  %v3602_v24 = vpack.c.bf16 %v7046_v8, %v7045_v7  ;;  %v7052_v44 = vand.u32 4294901760, %v6709_v55  ;;  %v7054_v51 = vand.u32 4294901760, %v7053_v35  ;;  %v7055_v34 = vand.u32 4294901760, %v6713_v10  ;;  %v7068_v25 = vld [vmem:[#allocation162_spill] sm:$0xff] }
 0x19c   :  { %3211 = vmatprep.subr.bf16.mxu1 %v3210_v61  ;;  %v3220_v4 = vpack.c.bf16 %v7048_v5, %v7047_v63  ;;  %v3222_v62 = vpack.c.bf16 %v7051_v54, %v7049_v56  ;;  %v7057_v31 = vand.u32 4294901760, %v7056_v48  ;;  %v7058_v33 = vand.u32 4294901760, %v6715_v47  ;;  %v7098_v5 = vld [vmem:[#allocation182_spill] sm:$0xff] }
 0x19d   :  { %3593 = vmatpush1.bf16.msra.mxu0 %v3592_v57  ;;  %v3604_v60 = vpack.c.bf16 %v7054_v51, %v7052_v44  ;;  %v7060_v45 = vand.u32 4294901760, %v7059_v40  ;;  %v7061_v53 = vand.u32 4294901760, %v6796_v26  ;;  %v7063_v55 = vand.u32 4294901760, %v7062_v43  ;;  %v7074_v57 = vld [vmem:[#allocation167_spill] sm:$0xff]  ;;  %v7104_v51 = vld [vmem:[#allocation190_spill] sm:$0xff] }
 0x19e   :  { %3595 = vmatprep.subr.bf16.mxu0 %v3594_v39  ;;  %v3606_v52 = vpack.c.bf16 %v7057_v31, %v7055_v34  ;;  %v7065_v30 = vand.u32 4294901760, %v7064_v1  ;;  %v7067_v10 = vand.u32 4294901760, %v7066_v20  ;;  %v7069_v50 = vand.u32 4294901760, %v7068_v25  ;;  %v7106_v34 = vld [vmem:[#allocation191_spill] sm:$0xff]  ;;  %v7110_v40 = vld [vmem:[#allocation194_spill] sm:$0xff]  ;;  %v7118_v20 = vld [vmem:[#allocation16_spill] sm:$0xff] }
 0x19f   :  { %3213 = vmatpush1.bf16.msra.mxu1 %v3212_v36  ;;  %v3224_v22 = vpack.c.bf16 %v7060_v45, %v7058_v33  ;;  %v3226_v17 = vpack.c.bf16 %v7063_v55, %v7061_v53  ;;  %v7071_v47 = vand.u32 4294901760, %v7070_v3  ;;  %v7073_v49 = vand.u32 4294901760, %v7072_v13  ;;  %v7112_v53 = vld [vmem:[#allocation3_spill] sm:$0xff]  ;;  %v7121_v25 = vld [vmem:[#allocation18_spill] sm:$0xff]  ;;  %v7126_v13 = vld [vmem:[#allocation33_spill] sm:$0xff] }
 0x1a0   :  { %3215 = vmatprep.subr.bf16.mxu1 %v3214_v12  ;;  %v3608_v27 = vpack.c.bf16 %v7067_v10, %v7065_v30  ;;  %v7075_v26 = vand.u32 4294901760, %v7074_v57  ;;  %v7077_v39 = vand.u32 4294901760, %v7076_v18  ;;  %v7079_v38 = vand.u32 4294901760, %v7078_v15  ;;  %v7082_v12 = vld [vmem:[#allocation170_spill] sm:$0xff]  ;;  %v7113_v43 = vld [vmem:[#allocation7_spill] sm:$0xff]  ;;  %v7117_v30 = vld [vmem:[#allocation201_spill] sm:$0xff] }
 0x1a1   :  { %3597 = vmatpush1.bf16.msra.mxu0 %v3596_v46  ;;  %v3610_v61 = vpack.c.bf16 %v7071_v47, %v7069_v50  ;;  %v7081_v21 = vand.u32 4294901760, %v7080_v37  ;;  %v7083_v19 = vand.u32 4294901760, %v7082_v12  ;;  %v7084_v46 = vld [vmem:[#allocation174_spill] sm:$0xff]  ;;  %v7091_v2 = vand.u32 4294901760, %v7090_v42  ;;  %v7114_v55 = vld [vmem:[#allocation199_spill] sm:$0xff]  ;;  %v7119_v10 = vld [vmem:[#allocation12_spill] sm:$0xff] }
 0x1a2   :  { %3599 = vmatprep.subr.bf16.mxu0 %v3598_v16  ;;  %v3228_v41 = vpack.c.bf16 %v7075_v26, %v7073_v49  ;;  %v3230_v36 = vpack.c.bf16 %v7079_v38, %v7077_v39  ;;  %v7085_v14 = vand.u32 4294901760, %v7084_v46  ;;  %v7087_v16 = vand.u32 4294901760, %v7086_v23  ;;  %v7116_v1 = vld [vmem:[#allocation195_spill] sm:$0xff]  ;;  %v7122_v50 = vld [vmem:[#allocation22_spill] sm:$0xff]  ;;  %v7124_v47 = vld [vmem:[#allocation25_spill] sm:$0xff] }
 0x1a3   :  { %3217 = vmatpush1.bf16.msra.mxu1 %v3216_v9  ;;  %v3612_v28 = vpack.c.bf16 %v7083_v19, %v7081_v21  ;;  %v7089_v9 = vand.u32 4294901760, %v7088_v32  ;;  %v7093_v29 = vand.u32 4294901760, %v7092_v59  ;;  %v7101_v54 = vand.u32 4294901760, %v7100_v6  ;;  %v7123_v3 = vld [vmem:[#allocation27_spill] sm:$0xff]  ;;  %v7128_v57 = vld [vmem:[#allocation36_spill] sm:$0xff]  ;;  %v7129_v26 = vld [vmem:[#allocation42_spill] sm:$0xff] }
 0x1a4   :  { %3219 = vmatprep.subr.bf16.mxu1 %v3218_v58  ;;  %v3614_v0 = vpack.c.bf16 %v7087_v16, %v7085_v14  ;;  %v7107_v48 = vand.u32 4294901760, %v7106_v34  ;;  %v7111_v45 = vand.u32 4294901760, %v7110_v40  ;;  %v7127_v49 = vld [vmem:[#allocation39_spill] sm:$0xff]  ;;  %v7132_v39 = vld [vmem:[#allocation48_spill] sm:$0xff]  ;;  %v7134_v38 = vld [vmem:[#allocation57_spill] sm:$0xff] }
 0x1a5   :  { %3601 = vmatpush1.bf16.msra.mxu0 %v3600_v11  ;;  %v3232_v58 = vpack.c.bf16 %v7091_v2, %v7089_v9  ;;  %v7094_v11 = vld [vmem:[#allocation185_spill] sm:$0xff]  ;;  %v7131_v18 = vld [vmem:[#allocation51_spill] sm:$0xff]  ;;  %v7136_v37 = vld [vmem:[#allocation60_spill] sm:$0xff] }
 0x1a6   :  { %3603 = vmatprep.subr.bf16.mxu0 %v3602_v24  ;;  %v7095_v7 = vand.u32 4294901760, %v7094_v11  ;;  %v7096_v24 = vld [vmem:[#allocation181_spill] sm:$0xff]  ;;  %v7133_v15 = vld [vmem:[#allocation55_spill] sm:$0xff]  ;;  %v7144_v16 = vld [vmem:[#allocation84_spill] sm:$0xff] }
 0x1a7   :  { %3221 = vmatpush1.bf16.msra.mxu1 %v3220_v4  ;;  %v7097_v63 = vand.u32 4294901760, %v7096_v24  ;;  %v7099_v4 = vand.u32 4294901760, %v7098_v5  ;;  %v7137_v21 = vld [vmem:[#allocation67_spill] sm:$0xff]  ;;  %v7138_v12 = vld [vmem:[#allocation69_spill] sm:$0xff]  ;;  %v7148_v42 = vld [vmem:[#allocation96_spill] sm:$0xff] }
 0x1a8   :  { %3223 = vmatprep.subr.bf16.mxu1 %v3222_v62  ;;  %v3234_v8 = vpack.c.bf16 %v7095_v7, %v7093_v29  ;;  %v7102_v62 = vld [vmem:[#allocation188_spill] sm:$0xff]  ;;  %v7139_v19 = vld [vmem:[#allocation75_spill] sm:$0xff]  ;;  %v7142_v14 = vld [vmem:[#allocation81_spill] sm:$0xff] }
 0x1a9   :  { %3605 = vmatpush1.bf16.msra.mxu0 %v3604_v60  ;;  %v3616_v56 = vpack.c.bf16 %v7099_v4, %v7097_v63  ;;  %v7103_v44 = vand.u32 4294901760, %v7102_v62  ;;  %v7105_v60 = vand.u32 4294901760, %v7104_v51  ;;  %v7141_v46 = vld [vmem:[#allocation79_spill] sm:$0xff]  ;;  %v7146_v32 = vld [vmem:[#allocation93_spill] sm:$0xff]  ;;  %v7152_v29 = vld [vmem:[#allocation108_spill] sm:$0xff] }
 0x1aa   :  { %3607 = vmatprep.subr.bf16.mxu0 %v3606_v52  ;;  %v7108_v52 = vld [vmem:[#allocation193_spill] sm:$0xff]  ;;  %v7143_v23 = vld [vmem:[#allocation87_spill] sm:$0xff]  ;;  %v7156_v24 = vld [vmem:[#allocation120_spill] sm:$0xff] }
 0x1ab   :  { %3225 = vmatpush1.bf16.msra.mxu1 %v3224_v22  ;;  %v3618_v35 = vpack.c.bf16 %v7103_v44, %v7101_v54  ;;  %v3236_v31 = vpack.c.bf16 %v7107_v48, %v7105_v60  ;;  %v7109_v33 = vand.u32 4294901760, %v7108_v52  ;;  %v7147_v9 = vld [vmem:[#allocation99_spill] sm:$0xff]  ;;  %v7154_v7 = vld [vmem:[#allocation117_spill] sm:$0xff]  ;;  %v7164_v44 = vld [vmem:[#allocation144_spill] sm:$0xff] }
 0x1ac   :  { %3227 = vmatprep.subr.bf16.mxu1 %v3226_v17  ;;  %v7115_v17 = vld [vmem:[#allocation9_spill] sm:$0xff]  ;;  %v7149_v2 = vld [vmem:[#allocation103_spill] sm:$0xff]  ;;  %v7168_v34 = vld [vmem:[#allocation156_spill] sm:$0xff] }
 0x1ad   :  { %3609 = vmatpush1.bf16.msra.mxu0 %v3608_v27  ;;  %v3620_v22 = vpack.c.bf16 %v7111_v45, %v7109_v33  ;;  %v7120_v27 = vld [vmem:[#allocation197_spill] sm:$0xff]  ;;  %v7151_v59 = vld [vmem:[#allocation111_spill] sm:$0xff]  ;;  %v7172_v33 = vld [vmem:[#allocation168_spill] sm:$0xff] }
 0x1ae   :  { %3611 = vmatprep.subr.bf16.mxu0 %v3610_v61  ;;  %v7125_v61 = vld [vmem:[#allocation30_spill] sm:$0xff]  ;;  %v7153_v11 = vld [vmem:[#allocation115_spill] sm:$0xff]  ;;  %v7158_v5 = vld [vmem:[#allocation129_spill] sm:$0xff] }
 0x1af   :  { %3229 = vmatpush1.bf16.msra.mxu1 %v3228_v41  ;;  %v7130_v41 = vld [vmem:[#allocation46_spill] sm:$0xff]  ;;  %v7157_v63 = vld [vmem:[#allocation127_spill] sm:$0xff]  ;;  %v7162_v54 = vld [vmem:[#allocation141_spill] sm:$0xff] }
 0x1b0   :  { %3231 = vmatprep.subr.bf16.mxu1 %v3230_v36  ;;  %v7135_v36 = vld [vmem:[#allocation63_spill] sm:$0xff]  ;;  %v7166_v51 = vld [vmem:[#allocation153_spill] sm:$0xff] }
 0x1b1   :  { %3613 = vmatpush1.bf16.msra.mxu0 %v3612_v28  ;;  %v7140_v28 = vld [vmem:[#allocation72_spill] sm:$0xff]  ;;  %v7159_v4 = vld [vmem:[#allocation135_spill] sm:$0xff]  ;;  %v7174_v45 = vld [vmem:[#allocation177_spill] sm:$0xff] }
 0x1b2   :  { %3615 = vmatprep.subr.bf16.mxu0 %v3614_v0  ;;  %v7145_v0 = vld [vmem:[#allocation91_spill] sm:$0xff] }
 0x1b3   :  { %3233 = vmatpush1.bf16.msra.mxu1 %v3232_v58  ;;  %v7150_v58 = vld [vmem:[#allocation105_spill] sm:$0xff]  ;;  %v7161_v6 = vld [vmem:[#allocation139_spill] sm:$0xff] }
 0x1b4   :  { %3235 = vmatprep.subr.bf16.mxu1 %v3234_v8  ;;  %v7155_v8 = vld [vmem:[#allocation123_spill] sm:$0xff] }
 0x1b5   :  { %3617 = vmatpush1.bf16.msra.mxu0 %v3616_v56  ;;  %v7160_v56 = vld [vmem:[#allocation132_spill] sm:$0xff]  ;;  %v7163_v62 = vld [vmem:[#allocation147_spill] sm:$0xff] }
 0x1b6   :  { %3619 = vmatprep.subr.bf16.mxu0 %v3618_v35  ;;  %v7165_v35 = vld [vmem:[#allocation151_spill] sm:$0xff] }
 0x1b7   :  { %3237 = vmatpush1.bf16.msra.mxu1 %v3236_v31  ;;  %v7167_v60 = vld [vmem:[#allocation159_spill] sm:$0xff]  ;;  %v7170_v31 = vld [vmem:[#allocation165_spill] sm:$0xff] }
 0x1b8   :  { %3239 = vmatprep.subr.bf16.mxu1 %v7112_v53  ;;  %v7169_v48 = vld [vmem:[#allocation163_spill] sm:$0xff]  ;;  %v7176_v53 = vld [vmem:[#allocation180_spill] sm:$0xff] }
 0x1b9   :  { %3621 = vmatpush1.bf16.msra.mxu0 %v3620_v22  ;;  %v7171_v52 = vld [vmem:[#allocation171_spill] sm:$0xff] }
 0x1ba   :  { %3623 = vmatprep.subr.bf16.mxu0 %v7113_v43  ;;  %1444 = vmatmul.mubr.f32.vlgmr.msra.gmra.mrb[0].mxu1 %v7114_v55  ;;  %v7173_v40 = vld [vmem:[#allocation175_spill] sm:$0xff] }
 0x1bb   :  { %3241 = vmatpush1.bf16.msra.mxu1 %v7115_v17  ;;  %1579 = vmatprep.mubr.f32.mxu1 %v7116_v1  ;;  %v7175_v22 = vld [vmem:[#allocation183_spill] sm:$0xff]  ;;  %v7178_v17 = vld [vmem:[#allocation189_spill] sm:$0xff]  ;;  %v7179_v1 = vld [vmem:[#allocation192_spill] sm:$0xff] }
 0x1bc   :  { %2728 = vmatmul.mubr.f32.vlgmr.msra.gmra.mrb[0].mxu0 %v7117_v30  ;;  %3243 = vmatprep.subr.bf16.mxu1 %v7118_v20  ;;  %v7177_v43 = vld [vmem:[#allocation187_spill] sm:$0xff]  ;;  %v302_v20 = vstv %s5880_s2 }
 0x1bd   :  { %3625 = vmatpush1.bf16.msra.mxu0 %v7119_v10  ;;  %2863 = vmatprep.mubr.f32.mxu0 %v7120_v27 }
 0x1be   :  { %3627 = vmatprep.subr.bf16.mxu0 %v7121_v25 }
 0x1bf   :  { %3245 = vmatpush1.bf16.msra.mxu1 %v7122_v50 }
 0x1c0   :  { %3247 = vmatprep.subr.bf16.mxu1 %v7123_v3 }
 0x1c1   :  { %3629 = vmatpush1.bf16.msra.mxu0 %v7124_v47 }
 0x1c2   :  { %3631 = vmatprep.subr.bf16.mxu0 %v7125_v61 }
 0x1c3   :  { %3249 = vmatpush1.bf16.msra.mxu1 %v7126_v13 }
 0x1c4   :  { %3251 = vmatprep.subr.bf16.mxu1 %v7127_v49 }
 0x1c5   :  { %3633 = vmatpush1.bf16.msra.mxu0 %v7128_v57 }
 0x1c6   :  { %3635 = vmatprep.subr.bf16.mxu0 %v7129_v26 }
 0x1c7   :  { %3253 = vmatpush1.bf16.msra.mxu1 %v7130_v41 }
 0x1c8   :  { %3255 = vmatprep.subr.bf16.mxu1 %v7131_v18 }
 0x1c9   :  { %3637 = vmatpush1.bf16.msra.mxu0 %v7132_v39 }
 0x1ca   :  { %3639 = vmatprep.subr.bf16.mxu0 %v7133_v15 }
 0x1cb   :  { %3257 = vmatpush1.bf16.msra.mxu1 %v7134_v38 }
 0x1cc   :  { %3259 = vmatprep.subr.bf16.mxu1 %v7135_v36 }
 0x1cd   :  { %3641 = vmatpush1.bf16.msra.mxu0 %v7136_v37 }
 0x1ce   :  { %3643 = vmatprep.subr.bf16.mxu0 %v7137_v21 }
 0x1cf   :  { %3261 = vmatpush1.bf16.msra.mxu1 %v7138_v12 }
 0x1d0   :  { %3263 = vmatprep.subr.bf16.mxu1 %v7139_v19 }
 0x1d1   :  { %3645 = vmatpush1.bf16.msra.mxu0 %v7140_v28 }
 0x1d2   :  { %3647 = vmatprep.subr.bf16.mxu0 %v7141_v46 }
 0x1d3   :  { %3265 = vmatpush1.bf16.msra.mxu1 %v7142_v14 }
 0x1d4   :  { %3267 = vmatprep.subr.bf16.mxu1 %v7143_v23 }
 0x1d5   :  { %3649 = vmatpush1.bf16.msra.mxu0 %v7144_v16 }
 0x1d6   :  { %3651 = vmatprep.subr.bf16.mxu0 %v7145_v0 }
 0x1d7   :  { %3269 = vmatpush1.bf16.msra.mxu1 %v7146_v32 }
 0x1d8   :  { %3271 = vmatprep.subr.bf16.mxu1 %v7147_v9 }
 0x1d9   :  { %3653 = vmatpush1.bf16.msra.mxu0 %v7148_v42 }
 0x1da   :  { %3655 = vmatprep.subr.bf16.mxu0 %v7149_v2 }
 0x1db   :  { %3273 = vmatpush1.bf16.msra.mxu1 %v7150_v58 }
 0x1dc   :  { %3275 = vmatprep.subr.bf16.mxu1 %v7151_v59 }
 0x1dd   :  { %3657 = vmatpush1.bf16.msra.mxu0 %v7152_v29 }
 0x1de   :  { %3659 = vmatprep.subr.bf16.mxu0 %v7153_v11 }
 0x1df   :  { %3277 = vmatpush1.bf16.msra.mxu1 %v7154_v7 }
 0x1e0   :  { %3279 = vmatprep.subr.bf16.mxu1 %v7155_v8 }
 0x1e1   :  { %3661 = vmatpush1.bf16.msra.mxu0 %v7156_v24 }
 0x1e2   :  { %3663 = vmatprep.subr.bf16.mxu0 %v7157_v63 }
 0x1e3   :  { %3281 = vmatpush1.bf16.msra.mxu1 %v7158_v5 }
 0x1e4   :  { %3283 = vmatprep.subr.bf16.mxu1 %v7159_v4 }
 0x1e5   :  { %3665 = vmatpush1.bf16.msra.mxu0 %v7160_v56 }
 0x1e6   :  { %3667 = vmatprep.subr.bf16.mxu0 %v7161_v6 }
 0x1e7   :  { %3285 = vmatpush1.bf16.msra.mxu1 %v7162_v54 }
 0x1e8   :  { %3287 = vmatprep.subr.bf16.mxu1 %v7163_v62 }
 0x1e9   :  { %3669 = vmatpush1.bf16.msra.mxu0 %v7164_v44 }
 0x1ea   :  { %3671 = vmatprep.subr.bf16.mxu0 %v7165_v35 }
 0x1eb   :  { %3289 = vmatpush1.bf16.msra.mxu1 %v7166_v51 }
 0x1ec   :  { %3291 = vmatprep.subr.bf16.mxu1 %v7167_v60 }
 0x1ed   :  { %3673 = vmatpush1.bf16.msra.mxu0 %v7168_v34 }
 0x1ee   :  { %3675 = vmatprep.subr.bf16.mxu0 %v7169_v48 }
 0x1ef   :  { %3293 = vmatpush1.bf16.msra.mxu1 %v7170_v31 }
 0x1f0   :  { %3295 = vmatprep.subr.bf16.mxu1 %v7171_v52 }
 0x1f1   :  { %3677 = vmatpush1.bf16.msra.mxu0 %v7172_v33 }
 0x1f2   :  { %3679 = vmatprep.subr.bf16.mxu0 %v7173_v40 }
 0x1f3   :  { %3297 = vmatpush1.bf16.msra.mxu1 %v7174_v45 }
 0x1f4   :  { %3299 = vmatprep.subr.bf16.mxu1 %v7175_v22 }
 0x1f5   :  { %3681 = vmatpush1.bf16.msra.mxu0 %v7176_v53 }
 0x1f6   :  { %3683 = vmatprep.subr.bf16.mxu0 %v7177_v43 }
 0x1f7   :  { %3301 = vmatpush1.bf16.msra.mxu1 %v7178_v17 }
 0x1f9   :  { %3685 = vmatpush1.bf16.msra.mxu0 %v7179_v1 }
 0x1fa   :  { %1581 = vmatmul.mubr.f32.vlgmr.msra.gmra.mrb[0].mxu1 %v7114_v55 }
 0x1fc   :  { %2865 = vmatmul.mubr.f32.vlgmr.msra.gmra.mrb[0].mxu0 %v7117_v30 }
 0x2cd   :  { %v1582_v10 = vpop.f32.mrb[0].mxu1 }
 0x2ce   :  { %v3686_v27 = vadd.f32 %v1582_v10, %v302_v20  ;;  %v1584_v25 = vpop.f32.mrb[1].mxu1 }
 0x2cf   :  { %v2866_v50 = vpop.f32.mrb[0].mxu0  ;;  %v3688_v3 = vadd.f32 %v1584_v25, %v302_v20 }
 0x2d0   :  { %v3687_v47 = vadd.f32 %v3686_v27, %v2866_v50  ;;  %v2868_v61 = vpop.f32.mrb[1].mxu0 }
 0x2d1   :  { %v3689_v13 = vadd.f32 %v3688_v3, %v2868_v61 }
 0x2d2   :  { %v2915_v49 = vmul.f32 -1.442695, %v3687_v47 }
 0x2d3   :  { %v2916_v57 = vmul.f32 -1.442695, %v3689_v13 }
 0x2d4   :  { %3710 = vpow2.f32 %v2915_v49 }
 0x2d5   :  { %3712 = vpow2.f32 %v2916_v57 }
 0x2de   :  { %v3711_v26 = vpop.eup %3710 }
 0x2df   :  { %v3713_v55 = vpop.eup %3712  ;;  %v2877_v41 = vadd.f32 1.0, %v3711_v26 }
 0x2e0   :  { %v2878_v30 = vadd.f32 1.0, %v3713_v55 }
 0x2e1   :  { %3714 = vrcp.f32 %v2877_v41 }
 0x2e2   :  { %3716 = vrcp.f32 %v2878_v30 }
 0x2eb   :  { %v3715_v18 = vpop.eup %3714 }
 0x2ec   :  { %v3717_v39 = vpop.eup %3716 }
 0x2ed   :  { %v2885_v15 = vcombine.low %v3715_v18, %v3717_v39 }
 0x2ef   :  { %2917 = vst.sshfl [vmem:[%s5881_s3] sm:$0x33 pattern:$0x76325410] %v2885_v15 }

</bundles_post_ra>
